<compile_context>
chip_gen: v7x
topology: tpu7x:2x2x1
jax: 0.10.0
libtpu: 0.0.40
codegen_flags: <defaults>
</compile_context>

<pallas_src>
import jax
import jax.numpy as jnp
from jax.experimental import pallas as pl
from jax.experimental.pallas import tpu as pltpu

_LANE = 128
_SUBLANE = 8
_ALIGN = _SUBLANE * _LANE  # 1024 elements


def _exp_kernel(x_ref, o_ref):
    # Elementwise exp on the whole VMEM tile (transcendental goes to the EUP).
    o_ref[...] = jnp.exp(x_ref[...])


def exp_pallas(x, *, tile_rows=4096, min_pallas_elems=1 << 17):
    """Compute exp(x) elementwise, matching torch.exp semantics.

    Arbitrary input shape. Integer inputs are promoted to float32 (torch.exp
    on integer tensors returns a float tensor).
    """
    orig_shape = x.shape

    # torch.exp promotes integer inputs to float; mirror that.
    if not jnp.issubdtype(x.dtype, jnp.floating):
        x = x.astype(jnp.float32)
    out_dtype = x.dtype

    n = x.size
    # Small-input fast path: XLA's fused exp is already at roofline and the
    # pallas_call fixed overhead + pad/reshape would dominate.
    if n < min_pallas_elems:
        return jnp.exp(x)

    flat = x.reshape(-1)

    # Pad only to a (8, 128) tile multiple (tiny), NOT to a full block multiple;
    # the partial last *block* along the row axis is handled by Pallas.
    pad = (-n) % _ALIGN
    if pad:
        flat = jnp.pad(flat, (0, pad))
    rows = flat.size // _LANE
    x2d = flat.reshape(rows, _LANE)

    grid = (pl.cdiv(rows, tile_rows),)
    out2d = pl.pallas_call(
        _exp_kernel,
        out_shape=jax.ShapeDtypeStruct((rows, _LANE), out_dtype),
        grid=grid,
        in_specs=[pl.BlockSpec((tile_rows, _LANE), lambda i: (i, 0))],
        out_specs=pl.BlockSpec((tile_rows, _LANE), lambda i: (i, 0)),
        compiler_params=pltpu.CompilerParams(
            dimension_semantics=("parallel",)),
    )(x2d)

    out_flat = out2d.reshape(-1)
    if pad:
        out_flat = out_flat[:n]
    return out_flat.reshape(orig_shape)


if __name__ == "__main__":
    key = jax.random.PRNGKey(0)
    k1, k2, k3 = jax.random.split(key, 3)

    # 1) Small NCHW-style input (module's "arbitrary shape") -> fast path.
    x_small = jax.random.normal(k1, (2, 4, 16, 16), dtype=jnp.float32)
    out_small = jax.block_until_ready(exp_pallas(x_small))
    assert out_small.shape == x_small.shape and out_small.dtype == x_small.dtype
    assert jnp.allclose(out_small, jnp.exp(x_small), rtol=1e-5, atol=1e-6)

    # 2) Larger input that exercises the Pallas path with multiple grid steps
    #    and a partial last block (819200 elems -> 6400 rows, tile_rows=4096).
    x_big = jax.random.normal(k2, (8, 4, 160, 160), dtype=jnp.float32)
    out_big = jax.block_until_ready(exp_pallas(x_big))
    assert out_big.shape == x_big.shape and out_big.dtype == x_big.dtype
    assert jnp.allclose(out_big, jnp.exp(x_big), rtol=1e-5, atol=1e-6)

    # 3) Ragged size (not a multiple of 128) through the Pallas path,
    #    exercising the minimal lane-alignment padding + un-pad slice.
    x_ragged = jax.random.normal(k3, (5, 3, 127, 129), dtype=jnp.float32)
    out_ragged = jax.block_until_ready(exp_pallas(x_ragged))
    assert out_ragged.shape == x_ragged.shape and out_ragged.dtype == x_ragged.dtype
    assert jnp.allclose(out_ragged, jnp.exp(x_ragged), rtol=1e-5, atol=1e-6)

    print("KERNEL_OK")
</pallas_src>

<mosaic_0001>
module attributes {stable_mosaic.version = 11 : i64} {
  func.func @_exp_kernel(%arg0: i32, %arg1: memref<4096x128xf32, #tpu.memory_space<vmem>>, %arg2: memref<4096x128xf32, #tpu.memory_space<vmem>>) attributes {dimension_semantics = [#tpu.dimension_semantics<parallel>], iteration_bounds = array<i64: 2>, scalar_prefetch = 0 : i64, scratch_operands = 0 : i64, tpu.core_type = #tpu.core_type<tc>, window_params = [{transform_indices = @transform_0, window_bounds = array<i64: 4096, 128>}, {transform_indices = @transform_1, window_bounds = array<i64: 4096, 128>}]} {
    %c0 = arith.constant 0 : index
    %c0_0 = arith.constant 0 : index
    %0 = vector.load %arg1[%c0, %c0_0] : memref<4096x128xf32, #tpu.memory_space<vmem>>, vector<4096x128xf32>
    %1 = math.exp %0 : vector<4096x128xf32>
    %c0_1 = arith.constant 0 : index
    %c0_2 = arith.constant 0 : index
    %2 = vector.load %arg2[%c0_1, %c0_2] : memref<4096x128xf32, #tpu.memory_space<vmem>>, vector<4096x128xf32>
    tpu.vector_store %arg2[%c0_1, %c0_2], %1 {strides = array<i32>} : memref<4096x128xf32, #tpu.memory_space<vmem>>, vector<4096x128xf32>,
    return
  }
  func.func @transform_0(%arg0: i32) -> (i32, i32) {
    %c0_i32 = arith.constant 0 : i32
    %c0_i32_0 = arith.constant 0 : i32
    return %arg0, %c0_i32 : i32, i32
  }
  func.func @transform_1(%arg0: i32) -> (i32, i32) {
    %c0_i32 = arith.constant 0 : i32
    %c0_i32_0 = arith.constant 0 : i32
    return %arg0, %c0_i32 : i32, i32
  }
}

</mosaic_0001>

<bundles_post_ra>
// kernel: tpu_custom_call.1
= control target key start
LH: loop header
LB: loop body
LE: loop exit
PB: predicated region body
PF: predicated region fallthrough
CT: control target
= control target key end

     0   :  { %6 = vsyncpa [#allocation3], 0  ;;  %s4698_s0 = inlined_call_operand.hbm [shape: f32[6400,128], index: 0, kind: input, shape index: {}]   ;;  %s4699_s1 = inlined_call_operand.hbm [shape: f32[6400,128], index: 1, kind: output, shape index: {}]  }
   0x1   :  { %8 = vsyncpa [#allocation3 + $0x1], 0 }
   0x2   :  { %9 = vsyncpa [#allocation4], 0 }
   0x3   :  { %11 = vsyncpa [#allocation4 + $0x1], 0  ;;  %s3495_s6 = smov 0   ;;  %s3497_s7 = smov 0  }
   0x4   :  { %s3499_s8 = smov 0   ;;  %s3501_s9 = smov 0  }
   0x5 LB: > { %s3516_s10 = sadd.s32 4294967295, %s3477_s9   ;;  %s2292_s11 = sadd.s32 4294967294, %s3477_s9   ;;  %s3477_s9 = sphi %s3501_s9, %s4709_s9   ;;  %s3473_s8 = sphi %s3499_s8, %s4708_s8   ;;  %s3469_s7 = sphi %s3497_s7, %s4707_s7   ;;  %s3465_s6 = sphi %s3495_s6, %s4706_s6  }
   0x6   : > { %s3520_s12 = sadd.s32 1, %s3477_s9   ;;  %s24_s13 = sadd.s32 1, %s3473_s8 }
   0x7   : > { %s21_s14 = ssub.s32 %s3477_s9, %s3520_s12  ;;  %p31_p0 = scmp.ne.s32.totalorder %s3473_s8, %s3469_s7 }
   0x8   : > { %p22_p1 = scmp.eq.s32.totalorder %s21_s14, 0  ;;  %p32_p2 = scmp.eq.s32.totalorder %s3477_s9, 0 }
   0x9   : > { %p37_p3 = scmp.ne.s32.totalorder %s3469_s7, %s3465_s6  ;;  %p38_p4 = scmp.eq.s32.totalorder %s3516_s10, 0 }
   0xa   : > { %s3532_s15 = scalar_select %p22_p1, %s3473_s8, %s24_s13  }
   0xb   : > { %p33_p5 = por %p32_p2, %p31_p0  ;;  %p3534_p6 = por %p38_p4, %p37_p3 }
   0xc   : > { %p61_p7 = scmp.eq.s32.totalorder %s3516_s10, 1  ;;  %p67_p8 = scmp.eq.s32.totalorder %s2292_s11, 1 }
   0xd   : > { %p4700_p11 = scmp.ge.s32.totalorder %s3477_s9, 2 }
   0xe   : > { %p3539_p9 = por %p61_p7, %p31_p0  ;;  %p3543_p10 = por %p67_p8, %p37_p3 }
   0xf   : > { %83 = sbr.rel (%p4700_p11) target bundleno = 57 (0x39), region = 16 }
  0x10   : > { %s4703_s18 = scalar_select %p3543_p10, 1, 0 }
  0x16   : > { %86 = sbr.rel (!%p33_p5) target bundleno = 57 (0x39), region = 20  ;;  %s87_s19 = sand.u32 (%p33_p5), 1, %s3473_s8  }
  0x17   : > { %s2296_s20 = sshll.u32 (%p33_p5), %s3477_s9, 9  ;;  %s2295_s21 = sshll.u32 (%p33_p5), %s87_s19, 12 }
  0x18   : > { %s93_s22 = ssub.s32 (%p33_p5), 800, %s2296_s20  ;;  %s3555_s25 = scalar_lea.sflag (%p33_p5), [#allocation3], %s87_s19 }
  0x19   : > { %p94_p12 = scmp.lt.s32.totalorder (%p33_p5), %s93_s22, 512  ;;  %s91_s26 = scalar_lea.vmem (%p33_p5), [#allocation2], %s2295_s21 }
  0x1d   : > { %s4711_s22 = smov (!%p94_p12, %s93_s22), 512 }
  0x1e   : > { %s3552_s23 = sshll.u32 %s4711_s22, 7 }
  0x1f   : > { %s98_s24 = ssub.s32 65536, %s3552_s23 }
  0x20   : > { %99 = vsyncadd %s3555_s25, %s98_s24  ;;  %p2298_p13 = scmp.ne.s32.totalorder %s3552_s23, 0  ;;  %s2314_s27 = sshll.u32 %s3477_s9, 16 }
  0x21   : > { %s3563_s30 = scalar_lea.hbm %s4698_s0, %s2314_s27  ;;  %s104_s2 = sshll.u32 %s91_s26, 4  ;;  %s3565_s2 = int_to_ptr.vmem [resolvable:$true] %s104_s2 }
  0x22   : > { %s3383_s3 = scalar_lea.hbm %s3563_s30, %s3552_s23  ;;  %s3387_s11 = scalar_lea.hbm %s4698_s0, 102400 }
  0x23   : > { %p3384_p0 = scmp.ne.s32.totalorder %s3563_s30, %s3383_s3  ;;  %p3388_p3 = scmp.lt.u32.totalorder %s3563_s30, %s4698_s0 }
  0x24   : > { %p3389_p4 = scmp.lt.u32.totalorder %s3387_s11, %s3383_s3  ;;  %p3391_p7 = scmp.lt.u32.totalorder %s3383_s3, %s3563_s30 }
  0x25   : > { %p3385_p1 = pnand %p3384_p0, %p2298_p13 }
  0x26   : > { %p3390_p5 = por %p3389_p4, %p3388_p3 }
  0x27   : > { %p3386_p2 = pneg %p3385_p1 }
  0x28   : > { %p3392_p8 = por %p3391_p7, %p3390_p5 }
  0x2a   : > { %p3393_p12 = pnand %p3392_p8, %p3386_p2 }
  0x2c   : > { %3396 = shalt.err (!%p3393_p12)
}
  0x2d   : > { %s3397_s19 = scalar_lea.vmem %s3565_s2, %s3552_s23  ;;  %s3479_s20 = smov [#allocation2]  }
  0x2e   : > { %p3398_p0 = scmp.ne.s32.totalorder %s3565_s2, %s3397_s19  ;;  %s3401_s21 = sshll.u32 %s3479_s20, 4  ;;  %s3402_s21 = int_to_ptr.vmem [resolvable:$false] %s3401_s21 }
  0x2f   : > { %s3403_s22 = scalar_lea.vmem %s3402_s21, 131072  ;;  %p3404_p10 = scmp.lt.s32.totalorder %s3565_s2, %s3402_s21 }
  0x30   : > { %p3399_p1 = pnand %p3398_p0, %p2298_p13  ;;  %p3405_p3 = scmp.lt.s32.totalorder %s3403_s22, %s3397_s19 }
  0x32   : > { %p3400_p11 = pneg %p3399_p1  ;;  %p3406_p4 = por %p3405_p3, %p3404_p10 }
  0x34   : > { %p3407_p5 = pnand %p3406_p4, %p3400_p11 }
  0x36   : > { %3410 = shalt.err (!%p3407_p5)
}
  0x37   : > { %s3480_s24 = smov 128   ;;  %s3481_s26 = smov 8  }
  0x38   : > { %110 = dma.hbm_to_vmem [thread:$0]  (%p2298_p13), %s3563_s30, %s3552_s23, %s3565_s2, %s3555_s25, %s3480_s24, %s3480_s24, %s3481_s26  }
  0x39 PF: > { %p2302_p2 = scmp.ge.s32.totalorder %s3477_s9, 1  ;;  %p112_p7 = scmp.lt.s32.totalorder %s3477_s9, 3 }
  0x3b   : > { %p113_p8 = pnand %p2302_p2, %p112_p7 }
  0x3c   : > { %s3595_s27 = sand.u32 (!%p113_p8), 1, %s3469_s7  }
  0x3d   : > { %116 = sbr.rel (%p113_p8) target bundleno = 623 (0x26f), region = 24  ;;  %s2303_s28 = sshll.u32 (!%p113_p8), %s3595_s27, 12 }
  0x3e   : > { %s119_s29 = scalar_lea.sflag (!%p113_p8), [#allocation3], %s3595_s27  ;;  %s3601_s3 = scalar_lea.vmem (!%p113_p8), [#allocation2], %s2303_s28 }
  0x44   : > { %3456 = dma.done.wait (%p3534_p6), %s119_s29, 65536  }
  0x45   : > { %3458 = vsyncadd (%p3534_p6), %s119_s29, 4294901760  ;;  %v151_v0 = vld [vmem:[%s3601_s3] sm:$0xff]  ;;  %v152_v1 = vld [vmem:[%s3601_s3 + $0x8] sm:$0xff]  ;;  %s3627_s16 = scalar_lea.vmem [#allocation5], %s2303_s28  ;;  %s2200_s23 = scalar_lea.sflag [#allocation4], %s3595_s27 }
  0x46   : > { %v153_v2 = vld [vmem:[%s3601_s3 + $0x10] sm:$0xff]  ;;  %v663_v3 = vmul.f32 1.442695, %v151_v0  ;;  %v665_v4 = vmul.f32 1.442695, %v152_v1  ;;  %v154_v6 = vld [vmem:[%s3601_s3 + $0x18] sm:$0xff] }
  0x47   : > { %v667_v5 = vmul.f32 1.442695, %v153_v2  ;;  %v155_v7 = vld [vmem:[%s3601_s3 + $0x20] sm:$0xff]  ;;  %v156_v8 = vld [vmem:[%s3601_s3 + $0x28] sm:$0xff]  ;;  %v669_v9 = vmul.f32 1.442695, %v154_v6 }
  0x48   : > { %2359 = vpow2.f32 %v663_v3  ;;  %v671_v10 = vmul.f32 1.442695, %v155_v7  ;;  %v673_v11 = vmul.f32 1.442695, %v156_v8  ;;  %v157_v12 = vld [vmem:[%s3601_s3 + $0x30] sm:$0xff]  ;;  %v158_v13 = vld [vmem:[%s3601_s3 + $0x38] sm:$0xff] }
  0x49   : > { %2361 = vpow2.f32 %v665_v4  ;;  %v159_v14 = vld [vmem:[%s3601_s3 + $0x40] sm:$0xff]  ;;  %v675_v15 = vmul.f32 1.442695, %v157_v12  ;;  %v677_v16 = vmul.f32 1.442695, %v158_v13  ;;  %v160_v17 = vld [vmem:[%s3601_s3 + $0x48] sm:$0xff] }
  0x4a   : > { %2363 = vpow2.f32 %v667_v5  ;;  %v161_v18 = vld [vmem:[%s3601_s3 + $0x50] sm:$0xff]  ;;  %v679_v19 = vmul.f32 1.442695, %v159_v14  ;;  %v162_v20 = vld [vmem:[%s3601_s3 + $0x58] sm:$0xff]  ;;  %v681_v21 = vmul.f32 1.442695, %v160_v17 }
  0x4b   : > { %2365 = vpow2.f32 %v669_v9  ;;  %v163_v22 = vld [vmem:[%s3601_s3 + $0x60] sm:$0xff]  ;;  %v683_v23 = vmul.f32 1.442695, %v161_v18  ;;  %v164_v24 = vld [vmem:[%s3601_s3 + $0x68] sm:$0xff]  ;;  %v685_v25 = vmul.f32 1.442695, %v162_v20 }
  0x4c   : > { %2367 = vpow2.f32 %v671_v10  ;;  %v165_v26 = vld [vmem:[%s3601_s3 + $0x70] sm:$0xff]  ;;  %v687_v27 = vmul.f32 1.442695, %v163_v22  ;;  %v166_v28 = vld [vmem:[%s3601_s3 + $0x78] sm:$0xff]  ;;  %v689_v29 = vmul.f32 1.442695, %v164_v24 }
  0x4d   : > { %2369 = vpow2.f32 %v673_v11  ;;  %v167_v30 = vld [vmem:[%s3601_s3 + $0x80] sm:$0xff]  ;;  %v691_v32 = vmul.f32 1.442695, %v165_v26  ;;  %v168_v33 = vld [vmem:[%s3601_s3 + $0x88] sm:$0xff]  ;;  %v693_v35 = vmul.f32 1.442695, %v166_v28 }
  0x4e   : > { %2371 = vpow2.f32 %v675_v15  ;;  %v169_v36 = vld [vmem:[%s3601_s3 + $0x90] sm:$0xff]  ;;  %v695_v38 = vmul.f32 1.442695, %v167_v30  ;;  %v170_v39 = vld [vmem:[%s3601_s3 + $0x98] sm:$0xff]  ;;  %v697_v41 = vmul.f32 1.442695, %v168_v33 }
  0x4f   : > { %2373 = vpow2.f32 %v677_v16  ;;  %v171_v42 = vld [vmem:[%s3601_s3 + $0xa0] sm:$0xff]  ;;  %v699_v44 = vmul.f32 1.442695, %v169_v36  ;;  %v172_v45 = vld [vmem:[%s3601_s3 + $0xa8] sm:$0xff]  ;;  %v701_v47 = vmul.f32 1.442695, %v170_v39 }
  0x50   : > { %2375 = vpow2.f32 %v679_v19  ;;  %v173_v48 = vld [vmem:[%s3601_s3 + $0xb0] sm:$0xff]  ;;  %v703_v50 = vmul.f32 1.442695, %v171_v42  ;;  %v174_v51 = vld [vmem:[%s3601_s3 + $0xb8] sm:$0xff]  ;;  %v705_v53 = vmul.f32 1.442695, %v172_v45 }
  0x51   : > { %2377 = vpow2.f32 %v681_v21  ;;  %v175_v54 = vld [vmem:[%s3601_s3 + $0xc0] sm:$0xff]  ;;  %v707_v56 = vmul.f32 1.442695, %v173_v48  ;;  %v176_v57 = vld [vmem:[%s3601_s3 + $0xc8] sm:$0xff]  ;;  %v709_v59 = vmul.f32 1.442695, %v174_v51 }
  0x52   : > { %v2360_v31 = vpop.eup %2359  ;;  %2379 = vpow2.f32 %v683_v23  ;;  %v177_v60 = vld [vmem:[%s3601_s3 + $0xd0] sm:$0xff]  ;;  %v711_v62 = vmul.f32 1.442695, %v175_v54  ;;  %v178_v63 = vld [vmem:[%s3601_s3 + $0xd8] sm:$0xff]  ;;  %v713_v1 = vmul.f32 1.442695, %v176_v57 }
  0x53   : > { %v2362_v34 = vpop.eup %2361  ;;  %1687 = vst [vmem:[%s3627_s16] sm:$0xff] %v2360_v31  ;;  %2381 = vpow2.f32 %v685_v25  ;;  %v179_v2 = vld [vmem:[%s3601_s3 + $0xe0] sm:$0xff]  ;;  %v715_v4 = vmul.f32 1.442695, %v177_v60  ;;  %v180_v5 = vld [vmem:[%s3601_s3 + $0xe8] sm:$0xff]  ;;  %v717_v7 = vmul.f32 1.442695, %v178_v63 }
  0x54   : > { %v2364_v37 = vpop.eup %2363  ;;  %1688 = vst [vmem:[%s3627_s16 + $0x8] sm:$0xff] %v2362_v34  ;;  %2383 = vpow2.f32 %v687_v27  ;;  %v181_v8 = vld [vmem:[%s3601_s3 + $0xf0] sm:$0xff]  ;;  %v719_v10 = vmul.f32 1.442695, %v179_v2  ;;  %v182_v11 = vld [vmem:[%s3601_s3 + $0xf8] sm:$0xff]  ;;  %v183_v14 = vld [vmem:[%s3601_s3 + $0x100] sm:$0xff] }
  0x55   : > { %v2366_v40 = vpop.eup %2365  ;;  %1689 = vst [vmem:[%s3627_s16 + $0x10] sm:$0xff] %v2364_v37  ;;  %2385 = vpow2.f32 %v689_v29  ;;  %v721_v13 = vmul.f32 1.442695, %v180_v5  ;;  %v723_v16 = vmul.f32 1.442695, %v181_v8  ;;  %v184_v17 = vld [vmem:[%s3601_s3 + $0x108] sm:$0xff] }
  0x56   : > { %v2368_v43 = vpop.eup %2367  ;;  %1690 = vst [vmem:[%s3627_s16 + $0x18] sm:$0xff] %v2366_v40  ;;  %2387 = vpow2.f32 %v691_v32  ;;  %v725_v19 = vmul.f32 1.442695, %v182_v11  ;;  %v185_v20 = vld [vmem:[%s3601_s3 + $0x110] sm:$0xff]  ;;  %v727_v22 = vmul.f32 1.442695, %v183_v14 }
  0x57   : > { %v2370_v46 = vpop.eup %2369  ;;  %1691 = vst [vmem:[%s3627_s16 + $0x20] sm:$0xff] %v2368_v43  ;;  %2389 = vpow2.f32 %v693_v35  ;;  %v186_v23 = vld [vmem:[%s3601_s3 + $0x118] sm:$0xff]  ;;  %v729_v25 = vmul.f32 1.442695, %v184_v17  ;;  %v187_v26 = vld [vmem:[%s3601_s3 + $0x120] sm:$0xff]  ;;  %v188_v29 = vld [vmem:[%s3601_s3 + $0x128] sm:$0xff] }
  0x58   : > { %v2372_v49 = vpop.eup %2371  ;;  %1692 = vst [vmem:[%s3627_s16 + $0x28] sm:$0xff] %v2370_v46  ;;  %2391 = vpow2.f32 %v695_v38  ;;  %v731_v28 = vmul.f32 1.442695, %v185_v20  ;;  %v733_v31 = vmul.f32 1.442695, %v186_v23  ;;  %v189_v32 = vld [vmem:[%s3601_s3 + $0x130] sm:$0xff] }
  0x59   : > { %v2374_v52 = vpop.eup %2373  ;;  %1693 = vst [vmem:[%s3627_s16 + $0x30] sm:$0xff] %v2372_v49  ;;  %2393 = vpow2.f32 %v697_v41  ;;  %v735_v34 = vmul.f32 1.442695, %v187_v26  ;;  %v190_v35 = vld [vmem:[%s3601_s3 + $0x138] sm:$0xff]  ;;  %v737_v37 = vmul.f32 1.442695, %v188_v29 }
  0x5a   : > { %v2376_v55 = vpop.eup %2375  ;;  %1694 = vst [vmem:[%s3627_s16 + $0x38] sm:$0xff] %v2374_v52  ;;  %2395 = vpow2.f32 %v699_v44  ;;  %v191_v38 = vld [vmem:[%s3601_s3 + $0x140] sm:$0xff]  ;;  %v739_v40 = vmul.f32 1.442695, %v189_v32  ;;  %v192_v41 = vld [vmem:[%s3601_s3 + $0x148] sm:$0xff]  ;;  %v193_v44 = vld [vmem:[%s3601_s3 + $0x150] sm:$0xff] }
  0x5b   : > { %v2378_v58 = vpop.eup %2377  ;;  %1695 = vst [vmem:[%s3627_s16 + $0x40] sm:$0xff] %v2376_v55  ;;  %2397 = vpow2.f32 %v701_v47  ;;  %v741_v43 = vmul.f32 1.442695, %v190_v35  ;;  %v743_v46 = vmul.f32 1.442695, %v191_v38  ;;  %v194_v47 = vld [vmem:[%s3601_s3 + $0x158] sm:$0xff] }
  0x5c   : > { %v2380_v61 = vpop.eup %2379  ;;  %1696 = vst [vmem:[%s3627_s16 + $0x48] sm:$0xff] %v2378_v58  ;;  %2399 = vpow2.f32 %v703_v50  ;;  %v745_v49 = vmul.f32 1.442695, %v192_v41  ;;  %v195_v50 = vld [vmem:[%s3601_s3 + $0x160] sm:$0xff]  ;;  %v747_v52 = vmul.f32 1.442695, %v193_v44 }
  0x5d   : > { %v2382_v0 = vpop.eup %2381  ;;  %1697 = vst [vmem:[%s3627_s16 + $0x50] sm:$0xff] %v2380_v61  ;;  %2401 = vpow2.f32 %v705_v53  ;;  %v196_v53 = vld [vmem:[%s3601_s3 + $0x168] sm:$0xff]  ;;  %v749_v55 = vmul.f32 1.442695, %v194_v47  ;;  %v751_v58 = vmul.f32 1.442695, %v195_v50 }
  0x5e   : > { %v2384_v3 = vpop.eup %2383  ;;  %1698 = vst [vmem:[%s3627_s16 + $0x58] sm:$0xff] %v2382_v0  ;;  %2403 = vpow2.f32 %v707_v56  ;;  %v197_v56 = vld [vmem:[%s3601_s3 + $0x170] sm:$0xff]  ;;  %v753_v61 = vmul.f32 1.442695, %v196_v53  ;;  %s2306_s25 = sshll.u32 (%p3539_p9), %s3516_s10, 9 }
  0x5f   : > { %v2386_v6 = vpop.eup %2385  ;;  %1699 = vst [vmem:[%s3627_s16 + $0x60] sm:$0xff] %v2384_v3  ;;  %2405 = vpow2.f32 %v709_v59  ;;  %v198_v59 = vld [vmem:[%s3601_s3 + $0x178] sm:$0xff]  ;;  %v755_v0 = vmul.f32 1.442695, %v197_v56  ;;  %s2208_s30 = ssub.s32 (%p3539_p9), 800, %s2306_s25 }
  0x60   : > { %v2388_v9 = vpop.eup %2387  ;;  %1700 = vst [vmem:[%s3627_s16 + $0x68] sm:$0xff] %v2386_v6  ;;  %2407 = vpow2.f32 %v711_v62  ;;  %v199_v62 = vld [vmem:[%s3601_s3 + $0x180] sm:$0xff]  ;;  %v757_v3 = vmul.f32 1.442695, %v198_v59  ;;  %p2209_p6 = scmp.lt.s32.totalorder (%p3539_p9), %s2208_s30, 512 }
  0x61   : > { %v2390_v12 = vpop.eup %2389  ;;  %1701 = vst [vmem:[%s3627_s16 + $0x70] sm:$0xff] %v2388_v9  ;;  %2409 = vpow2.f32 %v713_v1  ;;  %v200_v1 = vld [vmem:[%s3601_s3 + $0x188] sm:$0xff]  ;;  %v759_v6 = vmul.f32 1.442695, %v199_v62 }
  0x62   : > { %v2392_v15 = vpop.eup %2391  ;;  %1702 = vst [vmem:[%s3627_s16 + $0x78] sm:$0xff] %v2390_v12  ;;  %2411 = vpow2.f32 %v715_v4  ;;  %v201_v4 = vld [vmem:[%s3601_s3 + $0x190] sm:$0xff]  ;;  %v761_v9 = vmul.f32 1.442695, %v200_v1 }
  0x63   : > { %v2394_v18 = vpop.eup %2393  ;;  %1703 = vst [vmem:[%s3627_s16 + $0x80] sm:$0xff] %v2392_v15  ;;  %2413 = vpow2.f32 %v717_v7  ;;  %v202_v7 = vld [vmem:[%s3601_s3 + $0x198] sm:$0xff]  ;;  %v763_v12 = vmul.f32 1.442695, %v201_v4 }
  0x64   : > { %v2396_v21 = vpop.eup %2395  ;;  %1704 = vst [vmem:[%s3627_s16 + $0x88] sm:$0xff] %v2394_v18  ;;  %2415 = vpow2.f32 %v719_v10  ;;  %v203_v10 = vld [vmem:[%s3601_s3 + $0x1a0] sm:$0xff]  ;;  %v765_v15 = vmul.f32 1.442695, %v202_v7 }
  0x65   : > { %v2398_v24 = vpop.eup %2397  ;;  %1705 = vst [vmem:[%s3627_s16 + $0x90] sm:$0xff] %v2396_v21  ;;  %2417 = vpow2.f32 %v721_v13  ;;  %v204_v13 = vld [vmem:[%s3601_s3 + $0x1a8] sm:$0xff]  ;;  %v767_v18 = vmul.f32 1.442695, %v203_v10 }
  0x66   : > { %v2400_v27 = vpop.eup %2399  ;;  %1706 = vst [vmem:[%s3627_s16 + $0x98] sm:$0xff] %v2398_v24  ;;  %2419 = vpow2.f32 %v723_v16  ;;  %v205_v16 = vld [vmem:[%s3601_s3 + $0x1b0] sm:$0xff]  ;;  %v769_v21 = vmul.f32 1.442695, %v204_v13 }
  0x67   : > { %v2402_v30 = vpop.eup %2401  ;;  %1707 = vst [vmem:[%s3627_s16 + $0xa0] sm:$0xff] %v2400_v27  ;;  %2421 = vpow2.f32 %v725_v19  ;;  %v206_v19 = vld [vmem:[%s3601_s3 + $0x1b8] sm:$0xff]  ;;  %v771_v24 = vmul.f32 1.442695, %v205_v16 }
  0x68   : > { %v2404_v33 = vpop.eup %2403  ;;  %1708 = vst [vmem:[%s3627_s16 + $0xa8] sm:$0xff] %v2402_v30  ;;  %2423 = vpow2.f32 %v727_v22  ;;  %v207_v22 = vld [vmem:[%s3601_s3 + $0x1c0] sm:$0xff]  ;;  %v773_v27 = vmul.f32 1.442695, %v206_v19 }
  0x69   : > { %v2406_v36 = vpop.eup %2405  ;;  %1709 = vst [vmem:[%s3627_s16 + $0xb0] sm:$0xff] %v2404_v33  ;;  %2425 = vpow2.f32 %v729_v25  ;;  %v208_v25 = vld [vmem:[%s3601_s3 + $0x1c8] sm:$0xff]  ;;  %v775_v30 = vmul.f32 1.442695, %v207_v22 }
  0x6a   : > { %v2408_v39 = vpop.eup %2407  ;;  %1710 = vst [vmem:[%s3627_s16 + $0xb8] sm:$0xff] %v2406_v36  ;;  %2427 = vpow2.f32 %v731_v28  ;;  %v209_v28 = vld [vmem:[%s3601_s3 + $0x1d0] sm:$0xff]  ;;  %v777_v33 = vmul.f32 1.442695, %v208_v25 }
  0x6b   : > { %v2410_v42 = vpop.eup %2409  ;;  %1711 = vst [vmem:[%s3627_s16 + $0xc0] sm:$0xff] %v2408_v39  ;;  %2429 = vpow2.f32 %v733_v31  ;;  %v210_v31 = vld [vmem:[%s3601_s3 + $0x1d8] sm:$0xff]  ;;  %v779_v36 = vmul.f32 1.442695, %v209_v28 }
  0x6c   : > { %v2412_v45 = vpop.eup %2411  ;;  %1712 = vst [vmem:[%s3627_s16 + $0xc8] sm:$0xff] %v2410_v42  ;;  %2431 = vpow2.f32 %v735_v34  ;;  %v211_v34 = vld [vmem:[%s3601_s3 + $0x1e0] sm:$0xff]  ;;  %v781_v39 = vmul.f32 1.442695, %v210_v31 }
  0x6d   : > { %v2414_v48 = vpop.eup %2413  ;;  %1713 = vst [vmem:[%s3627_s16 + $0xd0] sm:$0xff] %v2412_v45  ;;  %2433 = vpow2.f32 %v737_v37  ;;  %v212_v37 = vld [vmem:[%s3601_s3 + $0x1e8] sm:$0xff]  ;;  %v783_v42 = vmul.f32 1.442695, %v211_v34 }
  0x6e   : > { %v2416_v51 = vpop.eup %2415  ;;  %1714 = vst [vmem:[%s3627_s16 + $0xd8] sm:$0xff] %v2414_v48  ;;  %2435 = vpow2.f32 %v739_v40  ;;  %v213_v40 = vld [vmem:[%s3601_s3 + $0x1f0] sm:$0xff]  ;;  %v785_v45 = vmul.f32 1.442695, %v212_v37 }
  0x6f   : > { %v2418_v54 = vpop.eup %2417  ;;  %1715 = vst [vmem:[%s3627_s16 + $0xe0] sm:$0xff] %v2416_v51  ;;  %2437 = vpow2.f32 %v741_v43  ;;  %v214_v43 = vld [vmem:[%s3601_s3 + $0x1f8] sm:$0xff]  ;;  %v787_v48 = vmul.f32 1.442695, %v213_v40 }
  0x70   : > { %v2420_v57 = vpop.eup %2419  ;;  %1716 = vst [vmem:[%s3627_s16 + $0xe8] sm:$0xff] %v2418_v54  ;;  %2439 = vpow2.f32 %v743_v46  ;;  %v215_v46 = vld [vmem:[%s3601_s3 + $0x200] sm:$0xff]  ;;  %v789_v51 = vmul.f32 1.442695, %v214_v43 }
  0x71   : > { %v2422_v60 = vpop.eup %2421  ;;  %1717 = vst [vmem:[%s3627_s16 + $0xf0] sm:$0xff] %v2420_v57  ;;  %2441 = vpow2.f32 %v745_v49  ;;  %v216_v49 = vld [vmem:[%s3601_s3 + $0x208] sm:$0xff]  ;;  %v791_v54 = vmul.f32 1.442695, %v215_v46 }
  0x72   : > { %v2424_v63 = vpop.eup %2423  ;;  %1718 = vst [vmem:[%s3627_s16 + $0xf8] sm:$0xff] %v2422_v60  ;;  %2443 = vpow2.f32 %v747_v52  ;;  %v217_v52 = vld [vmem:[%s3601_s3 + $0x210] sm:$0xff]  ;;  %v793_v57 = vmul.f32 1.442695, %v216_v49 }
  0x73   : > { %v2426_v2 = vpop.eup %2425  ;;  %1719 = vst [vmem:[%s3627_s16 + $0x100] sm:$0xff] %v2424_v63  ;;  %2445 = vpow2.f32 %v749_v55  ;;  %v218_v55 = vld [vmem:[%s3601_s3 + $0x218] sm:$0xff]  ;;  %v795_v60 = vmul.f32 1.442695, %v217_v52 }
  0x74   : > { %v2428_v5 = vpop.eup %2427  ;;  %1720 = vst [vmem:[%s3627_s16 + $0x108] sm:$0xff] %v2426_v2  ;;  %2447 = vpow2.f32 %v751_v58  ;;  %v219_v58 = vld [vmem:[%s3601_s3 + $0x220] sm:$0xff]  ;;  %v797_v63 = vmul.f32 1.442695, %v218_v55 }
  0x75   : > { %v2430_v8 = vpop.eup %2429  ;;  %1721 = vst [vmem:[%s3627_s16 + $0x110] sm:$0xff] %v2428_v5  ;;  %2449 = vpow2.f32 %v753_v61  ;;  %v220_v61 = vld [vmem:[%s3601_s3 + $0x228] sm:$0xff]  ;;  %v799_v2 = vmul.f32 1.442695, %v219_v58 }
  0x76   : > { %v2432_v11 = vpop.eup %2431  ;;  %1722 = vst [vmem:[%s3627_s16 + $0x118] sm:$0xff] %v2430_v8  ;;  %2451 = vpow2.f32 %v755_v0  ;;  %v221_v0 = vld [vmem:[%s3601_s3 + $0x230] sm:$0xff]  ;;  %v801_v5 = vmul.f32 1.442695, %v220_v61 }
  0x77   : > { %v2434_v14 = vpop.eup %2433  ;;  %1723 = vst [vmem:[%s3627_s16 + $0x120] sm:$0xff] %v2432_v11  ;;  %2453 = vpow2.f32 %v757_v3  ;;  %v222_v3 = vld [vmem:[%s3601_s3 + $0x238] sm:$0xff]  ;;  %v803_v8 = vmul.f32 1.442695, %v221_v0 }
  0x78   : > { %v2436_v17 = vpop.eup %2435  ;;  %1724 = vst [vmem:[%s3627_s16 + $0x128] sm:$0xff] %v2434_v14  ;;  %2455 = vpow2.f32 %v759_v6  ;;  %v223_v6 = vld [vmem:[%s3601_s3 + $0x240] sm:$0xff]  ;;  %v805_v11 = vmul.f32 1.442695, %v222_v3 }
  0x79   : > { %v2438_v20 = vpop.eup %2437  ;;  %1725 = vst [vmem:[%s3627_s16 + $0x130] sm:$0xff] %v2436_v17  ;;  %2457 = vpow2.f32 %v761_v9  ;;  %v224_v9 = vld [vmem:[%s3601_s3 + $0x248] sm:$0xff]  ;;  %v807_v14 = vmul.f32 1.442695, %v223_v6 }
  0x7a   : > { %v2440_v23 = vpop.eup %2439  ;;  %1726 = vst [vmem:[%s3627_s16 + $0x138] sm:$0xff] %v2438_v20  ;;  %2459 = vpow2.f32 %v763_v12  ;;  %v225_v12 = vld [vmem:[%s3601_s3 + $0x250] sm:$0xff]  ;;  %v809_v17 = vmul.f32 1.442695, %v224_v9 }
  0x7b   : > { %v2442_v26 = vpop.eup %2441  ;;  %1727 = vst [vmem:[%s3627_s16 + $0x140] sm:$0xff] %v2440_v23  ;;  %2461 = vpow2.f32 %v765_v15  ;;  %v226_v15 = vld [vmem:[%s3601_s3 + $0x258] sm:$0xff]  ;;  %v811_v20 = vmul.f32 1.442695, %v225_v12 }
  0x7c   : > { %v2444_v29 = vpop.eup %2443  ;;  %1728 = vst [vmem:[%s3627_s16 + $0x148] sm:$0xff] %v2442_v26  ;;  %2463 = vpow2.f32 %v767_v18  ;;  %v227_v18 = vld [vmem:[%s3601_s3 + $0x260] sm:$0xff]  ;;  %v813_v23 = vmul.f32 1.442695, %v226_v15 }
  0x7d   : > { %v2446_v32 = vpop.eup %2445  ;;  %1729 = vst [vmem:[%s3627_s16 + $0x150] sm:$0xff] %v2444_v29  ;;  %2465 = vpow2.f32 %v769_v21  ;;  %v228_v21 = vld [vmem:[%s3601_s3 + $0x268] sm:$0xff]  ;;  %v815_v26 = vmul.f32 1.442695, %v227_v18 }
  0x7e   : > { %v2448_v35 = vpop.eup %2447  ;;  %1730 = vst [vmem:[%s3627_s16 + $0x158] sm:$0xff] %v2446_v32  ;;  %2467 = vpow2.f32 %v771_v24  ;;  %v229_v24 = vld [vmem:[%s3601_s3 + $0x270] sm:$0xff]  ;;  %v817_v29 = vmul.f32 1.442695, %v228_v21 }
  0x7f   : > { %v2450_v38 = vpop.eup %2449  ;;  %1731 = vst [vmem:[%s3627_s16 + $0x160] sm:$0xff] %v2448_v35  ;;  %2469 = vpow2.f32 %v773_v27  ;;  %v230_v27 = vld [vmem:[%s3601_s3 + $0x278] sm:$0xff]  ;;  %v819_v32 = vmul.f32 1.442695, %v229_v24 }
  0x80   : > { %v2452_v41 = vpop.eup %2451  ;;  %1732 = vst [vmem:[%s3627_s16 + $0x168] sm:$0xff] %v2450_v38  ;;  %2471 = vpow2.f32 %v775_v30  ;;  %v231_v30 = vld [vmem:[%s3601_s3 + $0x280] sm:$0xff]  ;;  %v821_v35 = vmul.f32 1.442695, %v230_v27 }
  0x81   : > { %v2454_v44 = vpop.eup %2453  ;;  %1733 = vst [vmem:[%s3627_s16 + $0x170] sm:$0xff] %v2452_v41  ;;  %2473 = vpow2.f32 %v777_v33  ;;  %v232_v33 = vld [vmem:[%s3601_s3 + $0x288] sm:$0xff]  ;;  %v823_v38 = vmul.f32 1.442695, %v231_v30 }
  0x82   : > { %v2456_v47 = vpop.eup %2455  ;;  %1734 = vst [vmem:[%s3627_s16 + $0x178] sm:$0xff] %v2454_v44  ;;  %2475 = vpow2.f32 %v779_v36  ;;  %v233_v36 = vld [vmem:[%s3601_s3 + $0x290] sm:$0xff]  ;;  %v825_v41 = vmul.f32 1.442695, %v232_v33 }
  0x83   : > { %v2458_v50 = vpop.eup %2457  ;;  %1735 = vst [vmem:[%s3627_s16 + $0x180] sm:$0xff] %v2456_v47  ;;  %2477 = vpow2.f32 %v781_v39  ;;  %v234_v39 = vld [vmem:[%s3601_s3 + $0x298] sm:$0xff]  ;;  %v827_v44 = vmul.f32 1.442695, %v233_v36 }
  0x84   : > { %v2460_v53 = vpop.eup %2459  ;;  %1736 = vst [vmem:[%s3627_s16 + $0x188] sm:$0xff] %v2458_v50  ;;  %2479 = vpow2.f32 %v783_v42  ;;  %v235_v42 = vld [vmem:[%s3601_s3 + $0x2a0] sm:$0xff]  ;;  %v829_v47 = vmul.f32 1.442695, %v234_v39 }
  0x85   : > { %v2462_v56 = vpop.eup %2461  ;;  %1737 = vst [vmem:[%s3627_s16 + $0x190] sm:$0xff] %v2460_v53  ;;  %2481 = vpow2.f32 %v785_v45  ;;  %v236_v45 = vld [vmem:[%s3601_s3 + $0x2a8] sm:$0xff]  ;;  %v831_v50 = vmul.f32 1.442695, %v235_v42 }
  0x86   : > { %v2464_v59 = vpop.eup %2463  ;;  %1738 = vst [vmem:[%s3627_s16 + $0x198] sm:$0xff] %v2462_v56  ;;  %2483 = vpow2.f32 %v787_v48  ;;  %v237_v48 = vld [vmem:[%s3601_s3 + $0x2b0] sm:$0xff]  ;;  %v833_v53 = vmul.f32 1.442695, %v236_v45 }
  0x87   : > { %v2466_v62 = vpop.eup %2465  ;;  %1739 = vst [vmem:[%s3627_s16 + $0x1a0] sm:$0xff] %v2464_v59  ;;  %2485 = vpow2.f32 %v789_v51  ;;  %v238_v51 = vld [vmem:[%s3601_s3 + $0x2b8] sm:$0xff]  ;;  %v835_v56 = vmul.f32 1.442695, %v237_v48 }
  0x88   : > { %v2468_v1 = vpop.eup %2467  ;;  %1740 = vst [vmem:[%s3627_s16 + $0x1a8] sm:$0xff] %v2466_v62  ;;  %2487 = vpow2.f32 %v791_v54  ;;  %v239_v54 = vld [vmem:[%s3601_s3 + $0x2c0] sm:$0xff]  ;;  %v837_v59 = vmul.f32 1.442695, %v238_v51 }
  0x89   : > { %v2470_v4 = vpop.eup %2469  ;;  %1741 = vst [vmem:[%s3627_s16 + $0x1b0] sm:$0xff] %v2468_v1  ;;  %2489 = vpow2.f32 %v793_v57  ;;  %v240_v57 = vld [vmem:[%s3601_s3 + $0x2c8] sm:$0xff]  ;;  %v839_v62 = vmul.f32 1.442695, %v239_v54 }
  0x8a   : > { %v2472_v7 = vpop.eup %2471  ;;  %1742 = vst [vmem:[%s3627_s16 + $0x1b8] sm:$0xff] %v2470_v4  ;;  %2491 = vpow2.f32 %v795_v60  ;;  %v241_v60 = vld [vmem:[%s3601_s3 + $0x2d0] sm:$0xff]  ;;  %v841_v1 = vmul.f32 1.442695, %v240_v57 }
  0x8b   : > { %v2474_v10 = vpop.eup %2473  ;;  %1743 = vst [vmem:[%s3627_s16 + $0x1c0] sm:$0xff] %v2472_v7  ;;  %2493 = vpow2.f32 %v797_v63  ;;  %v242_v63 = vld [vmem:[%s3601_s3 + $0x2d8] sm:$0xff]  ;;  %v843_v4 = vmul.f32 1.442695, %v241_v60 }
  0x8c   : > { %v2476_v13 = vpop.eup %2475  ;;  %1744 = vst [vmem:[%s3627_s16 + $0x1c8] sm:$0xff] %v2474_v10  ;;  %2495 = vpow2.f32 %v799_v2  ;;  %v243_v2 = vld [vmem:[%s3601_s3 + $0x2e0] sm:$0xff]  ;;  %v845_v7 = vmul.f32 1.442695, %v242_v63 }
  0x8d   : > { %v2478_v16 = vpop.eup %2477  ;;  %1745 = vst [vmem:[%s3627_s16 + $0x1d0] sm:$0xff] %v2476_v13  ;;  %2497 = vpow2.f32 %v801_v5  ;;  %v244_v5 = vld [vmem:[%s3601_s3 + $0x2e8] sm:$0xff]  ;;  %v847_v10 = vmul.f32 1.442695, %v243_v2 }
  0x8e   : > { %v2480_v19 = vpop.eup %2479  ;;  %1746 = vst [vmem:[%s3627_s16 + $0x1d8] sm:$0xff] %v2478_v16  ;;  %2499 = vpow2.f32 %v803_v8  ;;  %v245_v8 = vld [vmem:[%s3601_s3 + $0x2f0] sm:$0xff]  ;;  %v849_v13 = vmul.f32 1.442695, %v244_v5 }
  0x8f   : > { %v2482_v22 = vpop.eup %2481  ;;  %1747 = vst [vmem:[%s3627_s16 + $0x1e0] sm:$0xff] %v2480_v19  ;;  %2501 = vpow2.f32 %v805_v11  ;;  %v246_v11 = vld [vmem:[%s3601_s3 + $0x2f8] sm:$0xff]  ;;  %v851_v16 = vmul.f32 1.442695, %v245_v8 }
  0x90   : > { %v2484_v25 = vpop.eup %2483  ;;  %1748 = vst [vmem:[%s3627_s16 + $0x1e8] sm:$0xff] %v2482_v22  ;;  %2503 = vpow2.f32 %v807_v14  ;;  %v247_v14 = vld [vmem:[%s3601_s3 + $0x300] sm:$0xff]  ;;  %v853_v19 = vmul.f32 1.442695, %v246_v11 }
  0x91   : > { %v2486_v28 = vpop.eup %2485  ;;  %1749 = vst [vmem:[%s3627_s16 + $0x1f0] sm:$0xff] %v2484_v25  ;;  %2505 = vpow2.f32 %v809_v17  ;;  %v248_v17 = vld [vmem:[%s3601_s3 + $0x308] sm:$0xff]  ;;  %v855_v22 = vmul.f32 1.442695, %v247_v14 }
  0x92   : > { %v2488_v31 = vpop.eup %2487  ;;  %1750 = vst [vmem:[%s3627_s16 + $0x1f8] sm:$0xff] %v2486_v28  ;;  %2507 = vpow2.f32 %v811_v20  ;;  %v249_v20 = vld [vmem:[%s3601_s3 + $0x310] sm:$0xff]  ;;  %v857_v25 = vmul.f32 1.442695, %v248_v17 }
  0x93   : > { %v2490_v34 = vpop.eup %2489  ;;  %1751 = vst [vmem:[%s3627_s16 + $0x200] sm:$0xff] %v2488_v31  ;;  %2509 = vpow2.f32 %v813_v23  ;;  %v250_v23 = vld [vmem:[%s3601_s3 + $0x318] sm:$0xff]  ;;  %v859_v28 = vmul.f32 1.442695, %v249_v20 }
  0x94   : > { %v2492_v37 = vpop.eup %2491  ;;  %1752 = vst [vmem:[%s3627_s16 + $0x208] sm:$0xff] %v2490_v34  ;;  %2511 = vpow2.f32 %v815_v26  ;;  %v251_v26 = vld [vmem:[%s3601_s3 + $0x320] sm:$0xff]  ;;  %v861_v31 = vmul.f32 1.442695, %v250_v23 }
  0x95   : > { %v2494_v40 = vpop.eup %2493  ;;  %1753 = vst [vmem:[%s3627_s16 + $0x210] sm:$0xff] %v2492_v37  ;;  %2513 = vpow2.f32 %v817_v29  ;;  %v252_v29 = vld [vmem:[%s3601_s3 + $0x328] sm:$0xff]  ;;  %v863_v34 = vmul.f32 1.442695, %v251_v26 }
  0x96   : > { %v2496_v43 = vpop.eup %2495  ;;  %1754 = vst [vmem:[%s3627_s16 + $0x218] sm:$0xff] %v2494_v40  ;;  %2515 = vpow2.f32 %v819_v32  ;;  %v253_v32 = vld [vmem:[%s3601_s3 + $0x330] sm:$0xff]  ;;  %v865_v37 = vmul.f32 1.442695, %v252_v29 }
  0x97   : > { %v2498_v46 = vpop.eup %2497  ;;  %1755 = vst [vmem:[%s3627_s16 + $0x220] sm:$0xff] %v2496_v43  ;;  %2517 = vpow2.f32 %v821_v35  ;;  %v254_v35 = vld [vmem:[%s3601_s3 + $0x338] sm:$0xff]  ;;  %v867_v40 = vmul.f32 1.442695, %v253_v32 }
  0x98   : > { %v2500_v49 = vpop.eup %2499  ;;  %1756 = vst [vmem:[%s3627_s16 + $0x228] sm:$0xff] %v2498_v46  ;;  %2519 = vpow2.f32 %v823_v38  ;;  %v255_v38 = vld [vmem:[%s3601_s3 + $0x340] sm:$0xff]  ;;  %v869_v43 = vmul.f32 1.442695, %v254_v35 }
  0x99   : > { %v2502_v52 = vpop.eup %2501  ;;  %1757 = vst [vmem:[%s3627_s16 + $0x230] sm:$0xff] %v2500_v49  ;;  %2521 = vpow2.f32 %v825_v41  ;;  %v256_v41 = vld [vmem:[%s3601_s3 + $0x348] sm:$0xff]  ;;  %v871_v46 = vmul.f32 1.442695, %v255_v38 }
  0x9a   : > { %v2504_v55 = vpop.eup %2503  ;;  %1758 = vst [vmem:[%s3627_s16 + $0x238] sm:$0xff] %v2502_v52  ;;  %2523 = vpow2.f32 %v827_v44  ;;  %v257_v44 = vld [vmem:[%s3601_s3 + $0x350] sm:$0xff]  ;;  %v873_v49 = vmul.f32 1.442695, %v256_v41 }
  0x9b   : > { %v2506_v58 = vpop.eup %2505  ;;  %1759 = vst [vmem:[%s3627_s16 + $0x240] sm:$0xff] %v2504_v55  ;;  %2525 = vpow2.f32 %v829_v47  ;;  %v258_v47 = vld [vmem:[%s3601_s3 + $0x358] sm:$0xff]  ;;  %v875_v52 = vmul.f32 1.442695, %v257_v44 }
  0x9c   : > { %v2508_v61 = vpop.eup %2507  ;;  %1760 = vst [vmem:[%s3627_s16 + $0x248] sm:$0xff] %v2506_v58  ;;  %2527 = vpow2.f32 %v831_v50  ;;  %v259_v50 = vld [vmem:[%s3601_s3 + $0x360] sm:$0xff]  ;;  %v877_v55 = vmul.f32 1.442695, %v258_v47 }
  0x9d   : > { %v2510_v0 = vpop.eup %2509  ;;  %1761 = vst [vmem:[%s3627_s16 + $0x250] sm:$0xff] %v2508_v61  ;;  %2529 = vpow2.f32 %v833_v53  ;;  %v260_v53 = vld [vmem:[%s3601_s3 + $0x368] sm:$0xff]  ;;  %v879_v58 = vmul.f32 1.442695, %v259_v50 }
  0x9e   : > { %v2512_v3 = vpop.eup %2511  ;;  %1762 = vst [vmem:[%s3627_s16 + $0x258] sm:$0xff] %v2510_v0  ;;  %2531 = vpow2.f32 %v835_v56  ;;  %v261_v56 = vld [vmem:[%s3601_s3 + $0x370] sm:$0xff]  ;;  %v881_v61 = vmul.f32 1.442695, %v260_v53 }
  0x9f   : > { %v2514_v6 = vpop.eup %2513  ;;  %1763 = vst [vmem:[%s3627_s16 + $0x260] sm:$0xff] %v2512_v3  ;;  %2533 = vpow2.f32 %v837_v59  ;;  %v262_v59 = vld [vmem:[%s3601_s3 + $0x378] sm:$0xff]  ;;  %v883_v0 = vmul.f32 1.442695, %v261_v56 }
  0xa0   : > { %v2516_v9 = vpop.eup %2515  ;;  %1764 = vst [vmem:[%s3627_s16 + $0x268] sm:$0xff] %v2514_v6  ;;  %2535 = vpow2.f32 %v839_v62  ;;  %v263_v62 = vld [vmem:[%s3601_s3 + $0x380] sm:$0xff]  ;;  %v885_v3 = vmul.f32 1.442695, %v262_v59 }
  0xa1   : > { %v2518_v12 = vpop.eup %2517  ;;  %1765 = vst [vmem:[%s3627_s16 + $0x270] sm:$0xff] %v2516_v9  ;;  %2537 = vpow2.f32 %v841_v1  ;;  %v264_v1 = vld [vmem:[%s3601_s3 + $0x388] sm:$0xff]  ;;  %v887_v6 = vmul.f32 1.442695, %v263_v62 }
  0xa2   : > { %v2520_v15 = vpop.eup %2519  ;;  %1766 = vst [vmem:[%s3627_s16 + $0x278] sm:$0xff] %v2518_v12  ;;  %2539 = vpow2.f32 %v843_v4  ;;  %v265_v4 = vld [vmem:[%s3601_s3 + $0x390] sm:$0xff]  ;;  %v889_v9 = vmul.f32 1.442695, %v264_v1 }
  0xa3   : > { %v2522_v18 = vpop.eup %2521  ;;  %1767 = vst [vmem:[%s3627_s16 + $0x280] sm:$0xff] %v2520_v15  ;;  %2541 = vpow2.f32 %v845_v7  ;;  %v266_v7 = vld [vmem:[%s3601_s3 + $0x398] sm:$0xff]  ;;  %v891_v12 = vmul.f32 1.442695, %v265_v4 }
  0xa4   : > { %v2524_v21 = vpop.eup %2523  ;;  %1768 = vst [vmem:[%s3627_s16 + $0x288] sm:$0xff] %v2522_v18  ;;  %2543 = vpow2.f32 %v847_v10  ;;  %v267_v10 = vld [vmem:[%s3601_s3 + $0x3a0] sm:$0xff]  ;;  %v893_v15 = vmul.f32 1.442695, %v266_v7 }
  0xa5   : > { %v2526_v24 = vpop.eup %2525  ;;  %1769 = vst [vmem:[%s3627_s16 + $0x290] sm:$0xff] %v2524_v21  ;;  %2545 = vpow2.f32 %v849_v13  ;;  %v268_v13 = vld [vmem:[%s3601_s3 + $0x3a8] sm:$0xff]  ;;  %v895_v18 = vmul.f32 1.442695, %v267_v10 }
  0xa6   : > { %v2528_v27 = vpop.eup %2527  ;;  %1770 = vst [vmem:[%s3627_s16 + $0x298] sm:$0xff] %v2526_v24  ;;  %2547 = vpow2.f32 %v851_v16  ;;  %v269_v16 = vld [vmem:[%s3601_s3 + $0x3b0] sm:$0xff]  ;;  %v897_v21 = vmul.f32 1.442695, %v268_v13 }
  0xa7   : > { %v2530_v30 = vpop.eup %2529  ;;  %1771 = vst [vmem:[%s3627_s16 + $0x2a0] sm:$0xff] %v2528_v27  ;;  %2549 = vpow2.f32 %v853_v19  ;;  %v270_v19 = vld [vmem:[%s3601_s3 + $0x3b8] sm:$0xff]  ;;  %v899_v24 = vmul.f32 1.442695, %v269_v16 }
  0xa8   : > { %v2532_v33 = vpop.eup %2531  ;;  %1772 = vst [vmem:[%s3627_s16 + $0x2a8] sm:$0xff] %v2530_v30  ;;  %2551 = vpow2.f32 %v855_v22  ;;  %v271_v22 = vld [vmem:[%s3601_s3 + $0x3c0] sm:$0xff]  ;;  %v901_v27 = vmul.f32 1.442695, %v270_v19 }
  0xa9   : > { %v2534_v36 = vpop.eup %2533  ;;  %1773 = vst [vmem:[%s3627_s16 + $0x2b0] sm:$0xff] %v2532_v33  ;;  %2553 = vpow2.f32 %v857_v25  ;;  %v272_v25 = vld [vmem:[%s3601_s3 + $0x3c8] sm:$0xff]  ;;  %v903_v30 = vmul.f32 1.442695, %v271_v22 }
  0xaa   : > { %v2536_v39 = vpop.eup %2535  ;;  %1774 = vst [vmem:[%s3627_s16 + $0x2b8] sm:$0xff] %v2534_v36  ;;  %2555 = vpow2.f32 %v859_v28  ;;  %v273_v28 = vld [vmem:[%s3601_s3 + $0x3d0] sm:$0xff]  ;;  %v905_v33 = vmul.f32 1.442695, %v272_v25 }
  0xab   : > { %v2538_v42 = vpop.eup %2537  ;;  %1775 = vst [vmem:[%s3627_s16 + $0x2c0] sm:$0xff] %v2536_v39  ;;  %2557 = vpow2.f32 %v861_v31  ;;  %v274_v31 = vld [vmem:[%s3601_s3 + $0x3d8] sm:$0xff]  ;;  %v907_v36 = vmul.f32 1.442695, %v273_v28 }
  0xac   : > { %v2540_v45 = vpop.eup %2539  ;;  %1776 = vst [vmem:[%s3627_s16 + $0x2c8] sm:$0xff] %v2538_v42  ;;  %2559 = vpow2.f32 %v863_v34  ;;  %v275_v34 = vld [vmem:[%s3601_s3 + $0x3e0] sm:$0xff]  ;;  %v909_v39 = vmul.f32 1.442695, %v274_v31 }
  0xad   : > { %v2542_v48 = vpop.eup %2541  ;;  %1777 = vst [vmem:[%s3627_s16 + $0x2d0] sm:$0xff] %v2540_v45  ;;  %2561 = vpow2.f32 %v865_v37  ;;  %v276_v37 = vld [vmem:[%s3601_s3 + $0x3e8] sm:$0xff]  ;;  %v911_v42 = vmul.f32 1.442695, %v275_v34 }
  0xae   : > { %v2544_v51 = vpop.eup %2543  ;;  %1778 = vst [vmem:[%s3627_s16 + $0x2d8] sm:$0xff] %v2542_v48  ;;  %2563 = vpow2.f32 %v867_v40  ;;  %v277_v40 = vld [vmem:[%s3601_s3 + $0x3f0] sm:$0xff]  ;;  %v913_v45 = vmul.f32 1.442695, %v276_v37 }
  0xaf   : > { %v2546_v54 = vpop.eup %2545  ;;  %1779 = vst [vmem:[%s3627_s16 + $0x2e0] sm:$0xff] %v2544_v51  ;;  %2565 = vpow2.f32 %v869_v43  ;;  %v278_v43 = vld [vmem:[%s3601_s3 + $0x3f8] sm:$0xff]  ;;  %v915_v48 = vmul.f32 1.442695, %v277_v40 }
  0xb0   : > { %v2548_v57 = vpop.eup %2547  ;;  %1780 = vst [vmem:[%s3627_s16 + $0x2e8] sm:$0xff] %v2546_v54  ;;  %2567 = vpow2.f32 %v871_v46  ;;  %v279_v46 = vld [vmem:[%s3601_s3 + $0x400] sm:$0xff]  ;;  %v917_v51 = vmul.f32 1.442695, %v278_v43 }
  0xb1   : > { %v2550_v60 = vpop.eup %2549  ;;  %1781 = vst [vmem:[%s3627_s16 + $0x2f0] sm:$0xff] %v2548_v57  ;;  %2569 = vpow2.f32 %v873_v49  ;;  %v280_v49 = vld [vmem:[%s3601_s3 + $0x408] sm:$0xff]  ;;  %v919_v54 = vmul.f32 1.442695, %v279_v46 }
  0xb2   : > { %v2552_v63 = vpop.eup %2551  ;;  %1782 = vst [vmem:[%s3627_s16 + $0x2f8] sm:$0xff] %v2550_v60  ;;  %2571 = vpow2.f32 %v875_v52  ;;  %v281_v52 = vld [vmem:[%s3601_s3 + $0x410] sm:$0xff]  ;;  %v921_v57 = vmul.f32 1.442695, %v280_v49 }
  0xb3   : > { %v2554_v2 = vpop.eup %2553  ;;  %1783 = vst [vmem:[%s3627_s16 + $0x300] sm:$0xff] %v2552_v63  ;;  %2573 = vpow2.f32 %v877_v55  ;;  %v282_v55 = vld [vmem:[%s3601_s3 + $0x418] sm:$0xff]  ;;  %v923_v60 = vmul.f32 1.442695, %v281_v52 }
  0xb4   : > { %v2556_v5 = vpop.eup %2555  ;;  %1784 = vst [vmem:[%s3627_s16 + $0x308] sm:$0xff] %v2554_v2  ;;  %2575 = vpow2.f32 %v879_v58  ;;  %v283_v58 = vld [vmem:[%s3601_s3 + $0x420] sm:$0xff]  ;;  %v925_v63 = vmul.f32 1.442695, %v282_v55 }
  0xb5   : > { %v2558_v8 = vpop.eup %2557  ;;  %1785 = vst [vmem:[%s3627_s16 + $0x310] sm:$0xff] %v2556_v5  ;;  %2577 = vpow2.f32 %v881_v61  ;;  %v284_v61 = vld [vmem:[%s3601_s3 + $0x428] sm:$0xff]  ;;  %v927_v2 = vmul.f32 1.442695, %v283_v58 }
  0xb6   : > { %v2560_v11 = vpop.eup %2559  ;;  %1786 = vst [vmem:[%s3627_s16 + $0x318] sm:$0xff] %v2558_v8  ;;  %2579 = vpow2.f32 %v883_v0  ;;  %v285_v0 = vld [vmem:[%s3601_s3 + $0x430] sm:$0xff]  ;;  %v929_v5 = vmul.f32 1.442695, %v284_v61 }
  0xb7   : > { %v2562_v14 = vpop.eup %2561  ;;  %1787 = vst [vmem:[%s3627_s16 + $0x320] sm:$0xff] %v2560_v11  ;;  %2581 = vpow2.f32 %v885_v3  ;;  %v286_v3 = vld [vmem:[%s3601_s3 + $0x438] sm:$0xff]  ;;  %v931_v8 = vmul.f32 1.442695, %v285_v0 }
  0xb8   : > { %v2564_v17 = vpop.eup %2563  ;;  %1788 = vst [vmem:[%s3627_s16 + $0x328] sm:$0xff] %v2562_v14  ;;  %2583 = vpow2.f32 %v887_v6  ;;  %v287_v6 = vld [vmem:[%s3601_s3 + $0x440] sm:$0xff]  ;;  %v933_v11 = vmul.f32 1.442695, %v286_v3 }
  0xb9   : > { %v2566_v20 = vpop.eup %2565  ;;  %1789 = vst [vmem:[%s3627_s16 + $0x330] sm:$0xff] %v2564_v17  ;;  %2585 = vpow2.f32 %v889_v9  ;;  %v288_v9 = vld [vmem:[%s3601_s3 + $0x448] sm:$0xff]  ;;  %v935_v14 = vmul.f32 1.442695, %v287_v6 }
  0xba   : > { %v2568_v23 = vpop.eup %2567  ;;  %1790 = vst [vmem:[%s3627_s16 + $0x338] sm:$0xff] %v2566_v20  ;;  %2587 = vpow2.f32 %v891_v12  ;;  %v289_v12 = vld [vmem:[%s3601_s3 + $0x450] sm:$0xff]  ;;  %v937_v17 = vmul.f32 1.442695, %v288_v9 }
  0xbb   : > { %v2570_v26 = vpop.eup %2569  ;;  %1791 = vst [vmem:[%s3627_s16 + $0x340] sm:$0xff] %v2568_v23  ;;  %2589 = vpow2.f32 %v893_v15  ;;  %v290_v15 = vld [vmem:[%s3601_s3 + $0x458] sm:$0xff]  ;;  %v939_v20 = vmul.f32 1.442695, %v289_v12 }
  0xbc   : > { %v2572_v29 = vpop.eup %2571  ;;  %1792 = vst [vmem:[%s3627_s16 + $0x348] sm:$0xff] %v2570_v26  ;;  %2591 = vpow2.f32 %v895_v18  ;;  %v291_v18 = vld [vmem:[%s3601_s3 + $0x460] sm:$0xff]  ;;  %v941_v23 = vmul.f32 1.442695, %v290_v15 }
  0xbd   : > { %v2574_v32 = vpop.eup %2573  ;;  %1793 = vst [vmem:[%s3627_s16 + $0x350] sm:$0xff] %v2572_v29  ;;  %2593 = vpow2.f32 %v897_v21  ;;  %v292_v21 = vld [vmem:[%s3601_s3 + $0x468] sm:$0xff]  ;;  %v943_v26 = vmul.f32 1.442695, %v291_v18 }
  0xbe   : > { %v2576_v35 = vpop.eup %2575  ;;  %1794 = vst [vmem:[%s3627_s16 + $0x358] sm:$0xff] %v2574_v32  ;;  %2595 = vpow2.f32 %v899_v24  ;;  %v293_v24 = vld [vmem:[%s3601_s3 + $0x470] sm:$0xff]  ;;  %v945_v29 = vmul.f32 1.442695, %v292_v21 }
  0xbf   : > { %v2578_v38 = vpop.eup %2577  ;;  %1795 = vst [vmem:[%s3627_s16 + $0x360] sm:$0xff] %v2576_v35  ;;  %2597 = vpow2.f32 %v901_v27  ;;  %v294_v27 = vld [vmem:[%s3601_s3 + $0x478] sm:$0xff]  ;;  %v947_v32 = vmul.f32 1.442695, %v293_v24 }
  0xc0   : > { %v2580_v41 = vpop.eup %2579  ;;  %1796 = vst [vmem:[%s3627_s16 + $0x368] sm:$0xff] %v2578_v38  ;;  %2599 = vpow2.f32 %v903_v30  ;;  %v295_v30 = vld [vmem:[%s3601_s3 + $0x480] sm:$0xff]  ;;  %v949_v35 = vmul.f32 1.442695, %v294_v27 }
  0xc1   : > { %v2582_v44 = vpop.eup %2581  ;;  %1797 = vst [vmem:[%s3627_s16 + $0x370] sm:$0xff] %v2580_v41  ;;  %2601 = vpow2.f32 %v905_v33  ;;  %v296_v33 = vld [vmem:[%s3601_s3 + $0x488] sm:$0xff]  ;;  %v951_v38 = vmul.f32 1.442695, %v295_v30 }
  0xc2   : > { %v2584_v47 = vpop.eup %2583  ;;  %1798 = vst [vmem:[%s3627_s16 + $0x378] sm:$0xff] %v2582_v44  ;;  %2603 = vpow2.f32 %v907_v36  ;;  %v297_v36 = vld [vmem:[%s3601_s3 + $0x490] sm:$0xff]  ;;  %v953_v41 = vmul.f32 1.442695, %v296_v33 }
  0xc3   : > { %v2586_v50 = vpop.eup %2585  ;;  %1799 = vst [vmem:[%s3627_s16 + $0x380] sm:$0xff] %v2584_v47  ;;  %2605 = vpow2.f32 %v909_v39  ;;  %v298_v39 = vld [vmem:[%s3601_s3 + $0x498] sm:$0xff]  ;;  %v955_v44 = vmul.f32 1.442695, %v297_v36 }
  0xc4   : > { %v2588_v53 = vpop.eup %2587  ;;  %1800 = vst [vmem:[%s3627_s16 + $0x388] sm:$0xff] %v2586_v50  ;;  %2607 = vpow2.f32 %v911_v42  ;;  %v299_v42 = vld [vmem:[%s3601_s3 + $0x4a0] sm:$0xff]  ;;  %v957_v47 = vmul.f32 1.442695, %v298_v39 }
  0xc5   : > { %v2590_v56 = vpop.eup %2589  ;;  %1801 = vst [vmem:[%s3627_s16 + $0x390] sm:$0xff] %v2588_v53  ;;  %2609 = vpow2.f32 %v913_v45  ;;  %v300_v45 = vld [vmem:[%s3601_s3 + $0x4a8] sm:$0xff]  ;;  %v959_v50 = vmul.f32 1.442695, %v299_v42 }
  0xc6   : > { %v2592_v59 = vpop.eup %2591  ;;  %1802 = vst [vmem:[%s3627_s16 + $0x398] sm:$0xff] %v2590_v56  ;;  %2611 = vpow2.f32 %v915_v48  ;;  %v301_v48 = vld [vmem:[%s3601_s3 + $0x4b0] sm:$0xff]  ;;  %v961_v53 = vmul.f32 1.442695, %v300_v45 }
  0xc7   : > { %v2594_v62 = vpop.eup %2593  ;;  %1803 = vst [vmem:[%s3627_s16 + $0x3a0] sm:$0xff] %v2592_v59  ;;  %2613 = vpow2.f32 %v917_v51  ;;  %v302_v51 = vld [vmem:[%s3601_s3 + $0x4b8] sm:$0xff]  ;;  %v963_v56 = vmul.f32 1.442695, %v301_v48 }
  0xc8   : > { %v2596_v1 = vpop.eup %2595  ;;  %1804 = vst [vmem:[%s3627_s16 + $0x3a8] sm:$0xff] %v2594_v62  ;;  %2615 = vpow2.f32 %v919_v54  ;;  %v303_v54 = vld [vmem:[%s3601_s3 + $0x4c0] sm:$0xff]  ;;  %v965_v59 = vmul.f32 1.442695, %v302_v51 }
  0xc9   : > { %v2598_v4 = vpop.eup %2597  ;;  %1805 = vst [vmem:[%s3627_s16 + $0x3b0] sm:$0xff] %v2596_v1  ;;  %2617 = vpow2.f32 %v921_v57  ;;  %v304_v57 = vld [vmem:[%s3601_s3 + $0x4c8] sm:$0xff]  ;;  %v967_v62 = vmul.f32 1.442695, %v303_v54 }
  0xca   : > { %v2600_v7 = vpop.eup %2599  ;;  %1806 = vst [vmem:[%s3627_s16 + $0x3b8] sm:$0xff] %v2598_v4  ;;  %2619 = vpow2.f32 %v923_v60  ;;  %v305_v60 = vld [vmem:[%s3601_s3 + $0x4d0] sm:$0xff]  ;;  %v969_v1 = vmul.f32 1.442695, %v304_v57 }
  0xcb   : > { %v2602_v10 = vpop.eup %2601  ;;  %1807 = vst [vmem:[%s3627_s16 + $0x3c0] sm:$0xff] %v2600_v7  ;;  %2621 = vpow2.f32 %v925_v63  ;;  %v306_v63 = vld [vmem:[%s3601_s3 + $0x4d8] sm:$0xff]  ;;  %v971_v4 = vmul.f32 1.442695, %v305_v60 }
  0xcc   : > { %v2604_v13 = vpop.eup %2603  ;;  %1808 = vst [vmem:[%s3627_s16 + $0x3c8] sm:$0xff] %v2602_v10  ;;  %2623 = vpow2.f32 %v927_v2  ;;  %v307_v2 = vld [vmem:[%s3601_s3 + $0x4e0] sm:$0xff]  ;;  %v973_v7 = vmul.f32 1.442695, %v306_v63 }
  0xcd   : > { %v2606_v16 = vpop.eup %2605  ;;  %1809 = vst [vmem:[%s3627_s16 + $0x3d0] sm:$0xff] %v2604_v13  ;;  %2625 = vpow2.f32 %v929_v5  ;;  %v308_v5 = vld [vmem:[%s3601_s3 + $0x4e8] sm:$0xff]  ;;  %v975_v10 = vmul.f32 1.442695, %v307_v2 }
  0xce   : > { %v2608_v19 = vpop.eup %2607  ;;  %1810 = vst [vmem:[%s3627_s16 + $0x3d8] sm:$0xff] %v2606_v16  ;;  %2627 = vpow2.f32 %v931_v8  ;;  %v309_v8 = vld [vmem:[%s3601_s3 + $0x4f0] sm:$0xff]  ;;  %v977_v13 = vmul.f32 1.442695, %v308_v5 }
  0xcf   : > { %v2610_v22 = vpop.eup %2609  ;;  %1811 = vst [vmem:[%s3627_s16 + $0x3e0] sm:$0xff] %v2608_v19  ;;  %2629 = vpow2.f32 %v933_v11  ;;  %v310_v11 = vld [vmem:[%s3601_s3 + $0x4f8] sm:$0xff]  ;;  %v979_v16 = vmul.f32 1.442695, %v309_v8 }
  0xd0   : > { %v2612_v25 = vpop.eup %2611  ;;  %1812 = vst [vmem:[%s3627_s16 + $0x3e8] sm:$0xff] %v2610_v22  ;;  %2631 = vpow2.f32 %v935_v14  ;;  %v311_v14 = vld [vmem:[%s3601_s3 + $0x500] sm:$0xff]  ;;  %v981_v19 = vmul.f32 1.442695, %v310_v11 }
  0xd1   : > { %v2614_v28 = vpop.eup %2613  ;;  %1813 = vst [vmem:[%s3627_s16 + $0x3f0] sm:$0xff] %v2612_v25  ;;  %2633 = vpow2.f32 %v937_v17  ;;  %v312_v17 = vld [vmem:[%s3601_s3 + $0x508] sm:$0xff]  ;;  %v983_v22 = vmul.f32 1.442695, %v311_v14 }
  0xd2   : > { %v2616_v31 = vpop.eup %2615  ;;  %1814 = vst [vmem:[%s3627_s16 + $0x3f8] sm:$0xff] %v2614_v28  ;;  %2635 = vpow2.f32 %v939_v20  ;;  %v313_v20 = vld [vmem:[%s3601_s3 + $0x510] sm:$0xff]  ;;  %v985_v25 = vmul.f32 1.442695, %v312_v17 }
  0xd3   : > { %v2618_v34 = vpop.eup %2617  ;;  %1815 = vst [vmem:[%s3627_s16 + $0x400] sm:$0xff] %v2616_v31  ;;  %2637 = vpow2.f32 %v941_v23  ;;  %v314_v23 = vld [vmem:[%s3601_s3 + $0x518] sm:$0xff]  ;;  %v987_v28 = vmul.f32 1.442695, %v313_v20 }
  0xd4   : > { %v2620_v37 = vpop.eup %2619  ;;  %1816 = vst [vmem:[%s3627_s16 + $0x408] sm:$0xff] %v2618_v34  ;;  %2639 = vpow2.f32 %v943_v26  ;;  %v315_v26 = vld [vmem:[%s3601_s3 + $0x520] sm:$0xff]  ;;  %v989_v31 = vmul.f32 1.442695, %v314_v23 }
  0xd5   : > { %v2622_v40 = vpop.eup %2621  ;;  %1817 = vst [vmem:[%s3627_s16 + $0x410] sm:$0xff] %v2620_v37  ;;  %2641 = vpow2.f32 %v945_v29  ;;  %v316_v29 = vld [vmem:[%s3601_s3 + $0x528] sm:$0xff]  ;;  %v991_v34 = vmul.f32 1.442695, %v315_v26 }
  0xd6   : > { %v2624_v43 = vpop.eup %2623  ;;  %1818 = vst [vmem:[%s3627_s16 + $0x418] sm:$0xff] %v2622_v40  ;;  %2643 = vpow2.f32 %v947_v32  ;;  %v317_v32 = vld [vmem:[%s3601_s3 + $0x530] sm:$0xff]  ;;  %v993_v37 = vmul.f32 1.442695, %v316_v29 }
  0xd7   : > { %v2626_v46 = vpop.eup %2625  ;;  %1819 = vst [vmem:[%s3627_s16 + $0x420] sm:$0xff] %v2624_v43  ;;  %2645 = vpow2.f32 %v949_v35  ;;  %v318_v35 = vld [vmem:[%s3601_s3 + $0x538] sm:$0xff]  ;;  %v995_v40 = vmul.f32 1.442695, %v317_v32 }
  0xd8   : > { %v2628_v49 = vpop.eup %2627  ;;  %1820 = vst [vmem:[%s3627_s16 + $0x428] sm:$0xff] %v2626_v46  ;;  %2647 = vpow2.f32 %v951_v38  ;;  %v319_v38 = vld [vmem:[%s3601_s3 + $0x540] sm:$0xff]  ;;  %v997_v43 = vmul.f32 1.442695, %v318_v35 }
  0xd9   : > { %v2630_v52 = vpop.eup %2629  ;;  %1821 = vst [vmem:[%s3627_s16 + $0x430] sm:$0xff] %v2628_v49  ;;  %2649 = vpow2.f32 %v953_v41  ;;  %v320_v41 = vld [vmem:[%s3601_s3 + $0x548] sm:$0xff]  ;;  %v999_v46 = vmul.f32 1.442695, %v319_v38 }
  0xda   : > { %v2632_v55 = vpop.eup %2631  ;;  %1822 = vst [vmem:[%s3627_s16 + $0x438] sm:$0xff] %v2630_v52  ;;  %2651 = vpow2.f32 %v955_v44  ;;  %v321_v44 = vld [vmem:[%s3601_s3 + $0x550] sm:$0xff]  ;;  %v1001_v49 = vmul.f32 1.442695, %v320_v41 }
  0xdb   : > { %v2634_v58 = vpop.eup %2633  ;;  %1823 = vst [vmem:[%s3627_s16 + $0x440] sm:$0xff] %v2632_v55  ;;  %2653 = vpow2.f32 %v957_v47  ;;  %v322_v47 = vld [vmem:[%s3601_s3 + $0x558] sm:$0xff]  ;;  %v1003_v52 = vmul.f32 1.442695, %v321_v44 }
  0xdc   : > { %v2636_v61 = vpop.eup %2635  ;;  %1824 = vst [vmem:[%s3627_s16 + $0x448] sm:$0xff] %v2634_v58  ;;  %2655 = vpow2.f32 %v959_v50  ;;  %v323_v50 = vld [vmem:[%s3601_s3 + $0x560] sm:$0xff]  ;;  %v1005_v55 = vmul.f32 1.442695, %v322_v47 }
  0xdd   : > { %v2638_v0 = vpop.eup %2637  ;;  %1825 = vst [vmem:[%s3627_s16 + $0x450] sm:$0xff] %v2636_v61  ;;  %2657 = vpow2.f32 %v961_v53  ;;  %v324_v53 = vld [vmem:[%s3601_s3 + $0x568] sm:$0xff]  ;;  %v1007_v58 = vmul.f32 1.442695, %v323_v50 }
  0xde   : > { %v2640_v3 = vpop.eup %2639  ;;  %1826 = vst [vmem:[%s3627_s16 + $0x458] sm:$0xff] %v2638_v0  ;;  %2659 = vpow2.f32 %v963_v56  ;;  %v325_v56 = vld [vmem:[%s3601_s3 + $0x570] sm:$0xff]  ;;  %v1009_v61 = vmul.f32 1.442695, %v324_v53 }
  0xdf   : > { %v2642_v6 = vpop.eup %2641  ;;  %1827 = vst [vmem:[%s3627_s16 + $0x460] sm:$0xff] %v2640_v3  ;;  %2661 = vpow2.f32 %v965_v59  ;;  %v326_v59 = vld [vmem:[%s3601_s3 + $0x578] sm:$0xff]  ;;  %v1011_v0 = vmul.f32 1.442695, %v325_v56 }
  0xe0   : > { %v2644_v9 = vpop.eup %2643  ;;  %1828 = vst [vmem:[%s3627_s16 + $0x468] sm:$0xff] %v2642_v6  ;;  %2663 = vpow2.f32 %v967_v62  ;;  %v327_v62 = vld [vmem:[%s3601_s3 + $0x580] sm:$0xff]  ;;  %v1013_v3 = vmul.f32 1.442695, %v326_v59 }
  0xe1   : > { %v2646_v12 = vpop.eup %2645  ;;  %1829 = vst [vmem:[%s3627_s16 + $0x470] sm:$0xff] %v2644_v9  ;;  %2665 = vpow2.f32 %v969_v1  ;;  %v328_v1 = vld [vmem:[%s3601_s3 + $0x588] sm:$0xff]  ;;  %v1015_v6 = vmul.f32 1.442695, %v327_v62 }
  0xe2   : > { %v2648_v15 = vpop.eup %2647  ;;  %1830 = vst [vmem:[%s3627_s16 + $0x478] sm:$0xff] %v2646_v12  ;;  %2667 = vpow2.f32 %v971_v4  ;;  %v329_v4 = vld [vmem:[%s3601_s3 + $0x590] sm:$0xff]  ;;  %v1017_v9 = vmul.f32 1.442695, %v328_v1 }
  0xe3   : > { %v2650_v18 = vpop.eup %2649  ;;  %1831 = vst [vmem:[%s3627_s16 + $0x480] sm:$0xff] %v2648_v15  ;;  %2669 = vpow2.f32 %v973_v7  ;;  %v330_v7 = vld [vmem:[%s3601_s3 + $0x598] sm:$0xff]  ;;  %v1019_v12 = vmul.f32 1.442695, %v329_v4 }
  0xe4   : > { %v2652_v21 = vpop.eup %2651  ;;  %1832 = vst [vmem:[%s3627_s16 + $0x488] sm:$0xff] %v2650_v18  ;;  %2671 = vpow2.f32 %v975_v10  ;;  %v331_v10 = vld [vmem:[%s3601_s3 + $0x5a0] sm:$0xff]  ;;  %v1021_v15 = vmul.f32 1.442695, %v330_v7 }
  0xe5   : > { %v2654_v24 = vpop.eup %2653  ;;  %1833 = vst [vmem:[%s3627_s16 + $0x490] sm:$0xff] %v2652_v21  ;;  %2673 = vpow2.f32 %v977_v13  ;;  %v332_v13 = vld [vmem:[%s3601_s3 + $0x5a8] sm:$0xff]  ;;  %v1023_v18 = vmul.f32 1.442695, %v331_v10 }
  0xe6   : > { %v2656_v27 = vpop.eup %2655  ;;  %1834 = vst [vmem:[%s3627_s16 + $0x498] sm:$0xff] %v2654_v24  ;;  %2675 = vpow2.f32 %v979_v16  ;;  %v333_v16 = vld [vmem:[%s3601_s3 + $0x5b0] sm:$0xff]  ;;  %v1025_v21 = vmul.f32 1.442695, %v332_v13 }
  0xe7   : > { %v2658_v30 = vpop.eup %2657  ;;  %1835 = vst [vmem:[%s3627_s16 + $0x4a0] sm:$0xff] %v2656_v27  ;;  %2677 = vpow2.f32 %v981_v19  ;;  %v334_v19 = vld [vmem:[%s3601_s3 + $0x5b8] sm:$0xff]  ;;  %v1027_v24 = vmul.f32 1.442695, %v333_v16 }
  0xe8   : > { %v2660_v33 = vpop.eup %2659  ;;  %1836 = vst [vmem:[%s3627_s16 + $0x4a8] sm:$0xff] %v2658_v30  ;;  %2679 = vpow2.f32 %v983_v22  ;;  %v335_v22 = vld [vmem:[%s3601_s3 + $0x5c0] sm:$0xff]  ;;  %v1029_v27 = vmul.f32 1.442695, %v334_v19 }
  0xe9   : > { %v2662_v36 = vpop.eup %2661  ;;  %1837 = vst [vmem:[%s3627_s16 + $0x4b0] sm:$0xff] %v2660_v33  ;;  %2681 = vpow2.f32 %v985_v25  ;;  %v336_v25 = vld [vmem:[%s3601_s3 + $0x5c8] sm:$0xff]  ;;  %v1031_v30 = vmul.f32 1.442695, %v335_v22 }
  0xea   : > { %v2664_v39 = vpop.eup %2663  ;;  %1838 = vst [vmem:[%s3627_s16 + $0x4b8] sm:$0xff] %v2662_v36  ;;  %2683 = vpow2.f32 %v987_v28  ;;  %v337_v28 = vld [vmem:[%s3601_s3 + $0x5d0] sm:$0xff]  ;;  %v1033_v33 = vmul.f32 1.442695, %v336_v25 }
  0xeb   : > { %v2666_v42 = vpop.eup %2665  ;;  %1839 = vst [vmem:[%s3627_s16 + $0x4c0] sm:$0xff] %v2664_v39  ;;  %2685 = vpow2.f32 %v989_v31  ;;  %v338_v31 = vld [vmem:[%s3601_s3 + $0x5d8] sm:$0xff]  ;;  %v1035_v36 = vmul.f32 1.442695, %v337_v28 }
  0xec   : > { %v2668_v45 = vpop.eup %2667  ;;  %1840 = vst [vmem:[%s3627_s16 + $0x4c8] sm:$0xff] %v2666_v42  ;;  %2687 = vpow2.f32 %v991_v34  ;;  %v339_v34 = vld [vmem:[%s3601_s3 + $0x5e0] sm:$0xff]  ;;  %v1037_v39 = vmul.f32 1.442695, %v338_v31 }
  0xed   : > { %v2670_v48 = vpop.eup %2669  ;;  %1841 = vst [vmem:[%s3627_s16 + $0x4d0] sm:$0xff] %v2668_v45  ;;  %2689 = vpow2.f32 %v993_v37  ;;  %v340_v37 = vld [vmem:[%s3601_s3 + $0x5e8] sm:$0xff]  ;;  %v1039_v42 = vmul.f32 1.442695, %v339_v34 }
  0xee   : > { %v2672_v51 = vpop.eup %2671  ;;  %1842 = vst [vmem:[%s3627_s16 + $0x4d8] sm:$0xff] %v2670_v48  ;;  %2691 = vpow2.f32 %v995_v40  ;;  %v341_v40 = vld [vmem:[%s3601_s3 + $0x5f0] sm:$0xff]  ;;  %v1041_v45 = vmul.f32 1.442695, %v340_v37 }
  0xef   : > { %v2674_v54 = vpop.eup %2673  ;;  %1843 = vst [vmem:[%s3627_s16 + $0x4e0] sm:$0xff] %v2672_v51  ;;  %2693 = vpow2.f32 %v997_v43  ;;  %v342_v43 = vld [vmem:[%s3601_s3 + $0x5f8] sm:$0xff]  ;;  %v1043_v48 = vmul.f32 1.442695, %v341_v40 }
  0xf0   : > { %v2676_v57 = vpop.eup %2675  ;;  %1844 = vst [vmem:[%s3627_s16 + $0x4e8] sm:$0xff] %v2674_v54  ;;  %2695 = vpow2.f32 %v999_v46  ;;  %v343_v46 = vld [vmem:[%s3601_s3 + $0x600] sm:$0xff]  ;;  %v1045_v51 = vmul.f32 1.442695, %v342_v43 }
  0xf1   : > { %v2678_v60 = vpop.eup %2677  ;;  %1845 = vst [vmem:[%s3627_s16 + $0x4f0] sm:$0xff] %v2676_v57  ;;  %2697 = vpow2.f32 %v1001_v49  ;;  %v344_v49 = vld [vmem:[%s3601_s3 + $0x608] sm:$0xff]  ;;  %v1047_v54 = vmul.f32 1.442695, %v343_v46 }
  0xf2   : > { %v2680_v63 = vpop.eup %2679  ;;  %1846 = vst [vmem:[%s3627_s16 + $0x4f8] sm:$0xff] %v2678_v60  ;;  %2699 = vpow2.f32 %v1003_v52  ;;  %v345_v52 = vld [vmem:[%s3601_s3 + $0x610] sm:$0xff]  ;;  %v1049_v57 = vmul.f32 1.442695, %v344_v49 }
  0xf3   : > { %v2682_v2 = vpop.eup %2681  ;;  %1847 = vst [vmem:[%s3627_s16 + $0x500] sm:$0xff] %v2680_v63  ;;  %2701 = vpow2.f32 %v1005_v55  ;;  %v346_v55 = vld [vmem:[%s3601_s3 + $0x618] sm:$0xff]  ;;  %v1051_v60 = vmul.f32 1.442695, %v345_v52 }
  0xf4   : > { %v2684_v5 = vpop.eup %2683  ;;  %1848 = vst [vmem:[%s3627_s16 + $0x508] sm:$0xff] %v2682_v2  ;;  %2703 = vpow2.f32 %v1007_v58  ;;  %v347_v58 = vld [vmem:[%s3601_s3 + $0x620] sm:$0xff]  ;;  %v1053_v63 = vmul.f32 1.442695, %v346_v55 }
  0xf5   : > { %v2686_v8 = vpop.eup %2685  ;;  %1849 = vst [vmem:[%s3627_s16 + $0x510] sm:$0xff] %v2684_v5  ;;  %2705 = vpow2.f32 %v1009_v61  ;;  %v348_v61 = vld [vmem:[%s3601_s3 + $0x628] sm:$0xff]  ;;  %v1055_v2 = vmul.f32 1.442695, %v347_v58 }
  0xf6   : > { %v2688_v11 = vpop.eup %2687  ;;  %1850 = vst [vmem:[%s3627_s16 + $0x518] sm:$0xff] %v2686_v8  ;;  %2707 = vpow2.f32 %v1011_v0  ;;  %v349_v0 = vld [vmem:[%s3601_s3 + $0x630] sm:$0xff]  ;;  %v1057_v5 = vmul.f32 1.442695, %v348_v61 }
  0xf7   : > { %v2690_v14 = vpop.eup %2689  ;;  %1851 = vst [vmem:[%s3627_s16 + $0x520] sm:$0xff] %v2688_v11  ;;  %2709 = vpow2.f32 %v1013_v3  ;;  %v350_v3 = vld [vmem:[%s3601_s3 + $0x638] sm:$0xff]  ;;  %v1059_v8 = vmul.f32 1.442695, %v349_v0 }
  0xf8   : > { %v2692_v17 = vpop.eup %2691  ;;  %1852 = vst [vmem:[%s3627_s16 + $0x528] sm:$0xff] %v2690_v14  ;;  %2711 = vpow2.f32 %v1015_v6  ;;  %v351_v6 = vld [vmem:[%s3601_s3 + $0x640] sm:$0xff]  ;;  %v1061_v11 = vmul.f32 1.442695, %v350_v3 }
  0xf9   : > { %v2694_v20 = vpop.eup %2693  ;;  %1853 = vst [vmem:[%s3627_s16 + $0x530] sm:$0xff] %v2692_v17  ;;  %2713 = vpow2.f32 %v1017_v9  ;;  %v352_v9 = vld [vmem:[%s3601_s3 + $0x648] sm:$0xff]  ;;  %v1063_v14 = vmul.f32 1.442695, %v351_v6 }
  0xfa   : > { %v2696_v23 = vpop.eup %2695  ;;  %1854 = vst [vmem:[%s3627_s16 + $0x538] sm:$0xff] %v2694_v20  ;;  %2715 = vpow2.f32 %v1019_v12  ;;  %v353_v12 = vld [vmem:[%s3601_s3 + $0x650] sm:$0xff]  ;;  %v1065_v17 = vmul.f32 1.442695, %v352_v9 }
  0xfb   : > { %v2698_v26 = vpop.eup %2697  ;;  %1855 = vst [vmem:[%s3627_s16 + $0x540] sm:$0xff] %v2696_v23  ;;  %2717 = vpow2.f32 %v1021_v15  ;;  %v354_v15 = vld [vmem:[%s3601_s3 + $0x658] sm:$0xff]  ;;  %v1067_v20 = vmul.f32 1.442695, %v353_v12 }
  0xfc   : > { %v2700_v29 = vpop.eup %2699  ;;  %1856 = vst [vmem:[%s3627_s16 + $0x548] sm:$0xff] %v2698_v26  ;;  %2719 = vpow2.f32 %v1023_v18  ;;  %v355_v18 = vld [vmem:[%s3601_s3 + $0x660] sm:$0xff]  ;;  %v1069_v23 = vmul.f32 1.442695, %v354_v15 }
  0xfd   : > { %v2702_v32 = vpop.eup %2701  ;;  %1857 = vst [vmem:[%s3627_s16 + $0x550] sm:$0xff] %v2700_v29  ;;  %2721 = vpow2.f32 %v1025_v21  ;;  %v356_v21 = vld [vmem:[%s3601_s3 + $0x668] sm:$0xff]  ;;  %v1071_v26 = vmul.f32 1.442695, %v355_v18 }
  0xfe   : > { %v2704_v35 = vpop.eup %2703  ;;  %1858 = vst [vmem:[%s3627_s16 + $0x558] sm:$0xff] %v2702_v32  ;;  %2723 = vpow2.f32 %v1027_v24  ;;  %v357_v24 = vld [vmem:[%s3601_s3 + $0x670] sm:$0xff]  ;;  %v1073_v29 = vmul.f32 1.442695, %v356_v21 }
  0xff   : > { %v2706_v38 = vpop.eup %2705  ;;  %1859 = vst [vmem:[%s3627_s16 + $0x560] sm:$0xff] %v2704_v35  ;;  %2725 = vpow2.f32 %v1029_v27  ;;  %v358_v27 = vld [vmem:[%s3601_s3 + $0x678] sm:$0xff]  ;;  %v1075_v32 = vmul.f32 1.442695, %v357_v24 }
 0x100   : > { %v2708_v41 = vpop.eup %2707  ;;  %1860 = vst [vmem:[%s3627_s16 + $0x568] sm:$0xff] %v2706_v38  ;;  %2727 = vpow2.f32 %v1031_v30  ;;  %v359_v30 = vld [vmem:[%s3601_s3 + $0x680] sm:$0xff]  ;;  %v1077_v35 = vmul.f32 1.442695, %v358_v27 }
 0x101   : > { %v2710_v44 = vpop.eup %2709  ;;  %1861 = vst [vmem:[%s3627_s16 + $0x570] sm:$0xff] %v2708_v41  ;;  %2729 = vpow2.f32 %v1033_v33  ;;  %v360_v33 = vld [vmem:[%s3601_s3 + $0x688] sm:$0xff]  ;;  %v1079_v38 = vmul.f32 1.442695, %v359_v30 }
 0x102   : > { %v2712_v47 = vpop.eup %2711  ;;  %1862 = vst [vmem:[%s3627_s16 + $0x578] sm:$0xff] %v2710_v44  ;;  %2731 = vpow2.f32 %v1035_v36  ;;  %v361_v36 = vld [vmem:[%s3601_s3 + $0x690] sm:$0xff]  ;;  %v1081_v41 = vmul.f32 1.442695, %v360_v33 }
 0x103   : > { %v2714_v50 = vpop.eup %2713  ;;  %1863 = vst [vmem:[%s3627_s16 + $0x580] sm:$0xff] %v2712_v47  ;;  %2733 = vpow2.f32 %v1037_v39  ;;  %v362_v39 = vld [vmem:[%s3601_s3 + $0x698] sm:$0xff]  ;;  %v1083_v44 = vmul.f32 1.442695, %v361_v36 }
 0x104   : > { %v2716_v53 = vpop.eup %2715  ;;  %1864 = vst [vmem:[%s3627_s16 + $0x588] sm:$0xff] %v2714_v50  ;;  %2735 = vpow2.f32 %v1039_v42  ;;  %v363_v42 = vld [vmem:[%s3601_s3 + $0x6a0] sm:$0xff]  ;;  %v1085_v47 = vmul.f32 1.442695, %v362_v39 }
 0x105   : > { %v2718_v56 = vpop.eup %2717  ;;  %1865 = vst [vmem:[%s3627_s16 + $0x590] sm:$0xff] %v2716_v53  ;;  %2737 = vpow2.f32 %v1041_v45  ;;  %v364_v45 = vld [vmem:[%s3601_s3 + $0x6a8] sm:$0xff]  ;;  %v1087_v50 = vmul.f32 1.442695, %v363_v42 }
 0x106   : > { %v2720_v59 = vpop.eup %2719  ;;  %1866 = vst [vmem:[%s3627_s16 + $0x598] sm:$0xff] %v2718_v56  ;;  %2739 = vpow2.f32 %v1043_v48  ;;  %v365_v48 = vld [vmem:[%s3601_s3 + $0x6b0] sm:$0xff]  ;;  %v1089_v53 = vmul.f32 1.442695, %v364_v45 }
 0x107   : > { %v2722_v62 = vpop.eup %2721  ;;  %1867 = vst [vmem:[%s3627_s16 + $0x5a0] sm:$0xff] %v2720_v59  ;;  %2741 = vpow2.f32 %v1045_v51  ;;  %v366_v51 = vld [vmem:[%s3601_s3 + $0x6b8] sm:$0xff]  ;;  %v1091_v56 = vmul.f32 1.442695, %v365_v48 }
 0x108   : > { %v2724_v1 = vpop.eup %2723  ;;  %1868 = vst [vmem:[%s3627_s16 + $0x5a8] sm:$0xff] %v2722_v62  ;;  %2743 = vpow2.f32 %v1047_v54  ;;  %v367_v54 = vld [vmem:[%s3601_s3 + $0x6c0] sm:$0xff]  ;;  %v1093_v59 = vmul.f32 1.442695, %v366_v51 }
 0x109   : > { %v2726_v4 = vpop.eup %2725  ;;  %1869 = vst [vmem:[%s3627_s16 + $0x5b0] sm:$0xff] %v2724_v1  ;;  %2745 = vpow2.f32 %v1049_v57  ;;  %v368_v57 = vld [vmem:[%s3601_s3 + $0x6c8] sm:$0xff]  ;;  %v1095_v62 = vmul.f32 1.442695, %v367_v54 }
 0x10a   : > { %v2728_v7 = vpop.eup %2727  ;;  %1870 = vst [vmem:[%s3627_s16 + $0x5b8] sm:$0xff] %v2726_v4  ;;  %2747 = vpow2.f32 %v1051_v60  ;;  %v369_v60 = vld [vmem:[%s3601_s3 + $0x6d0] sm:$0xff]  ;;  %v1097_v1 = vmul.f32 1.442695, %v368_v57 }
 0x10b   : > { %v2730_v10 = vpop.eup %2729  ;;  %1871 = vst [vmem:[%s3627_s16 + $0x5c0] sm:$0xff] %v2728_v7  ;;  %2749 = vpow2.f32 %v1053_v63  ;;  %v370_v63 = vld [vmem:[%s3601_s3 + $0x6d8] sm:$0xff]  ;;  %v1099_v4 = vmul.f32 1.442695, %v369_v60 }
 0x10c   : > { %v2732_v13 = vpop.eup %2731  ;;  %1872 = vst [vmem:[%s3627_s16 + $0x5c8] sm:$0xff] %v2730_v10  ;;  %2751 = vpow2.f32 %v1055_v2  ;;  %v371_v2 = vld [vmem:[%s3601_s3 + $0x6e0] sm:$0xff]  ;;  %v1101_v7 = vmul.f32 1.442695, %v370_v63 }
 0x10d   : > { %v2734_v16 = vpop.eup %2733  ;;  %1873 = vst [vmem:[%s3627_s16 + $0x5d0] sm:$0xff] %v2732_v13  ;;  %2753 = vpow2.f32 %v1057_v5  ;;  %v372_v5 = vld [vmem:[%s3601_s3 + $0x6e8] sm:$0xff]  ;;  %v1103_v10 = vmul.f32 1.442695, %v371_v2 }
 0x10e   : > { %v2736_v19 = vpop.eup %2735  ;;  %1874 = vst [vmem:[%s3627_s16 + $0x5d8] sm:$0xff] %v2734_v16  ;;  %2755 = vpow2.f32 %v1059_v8  ;;  %v373_v8 = vld [vmem:[%s3601_s3 + $0x6f0] sm:$0xff]  ;;  %v1105_v13 = vmul.f32 1.442695, %v372_v5 }
 0x10f   : > { %v2738_v22 = vpop.eup %2737  ;;  %1875 = vst [vmem:[%s3627_s16 + $0x5e0] sm:$0xff] %v2736_v19  ;;  %2757 = vpow2.f32 %v1061_v11  ;;  %v374_v11 = vld [vmem:[%s3601_s3 + $0x6f8] sm:$0xff]  ;;  %v1107_v16 = vmul.f32 1.442695, %v373_v8 }
 0x110   : > { %v2740_v25 = vpop.eup %2739  ;;  %1876 = vst [vmem:[%s3627_s16 + $0x5e8] sm:$0xff] %v2738_v22  ;;  %2759 = vpow2.f32 %v1063_v14  ;;  %v375_v14 = vld [vmem:[%s3601_s3 + $0x700] sm:$0xff]  ;;  %v1109_v19 = vmul.f32 1.442695, %v374_v11 }
 0x111   : > { %v2742_v28 = vpop.eup %2741  ;;  %1877 = vst [vmem:[%s3627_s16 + $0x5f0] sm:$0xff] %v2740_v25  ;;  %2761 = vpow2.f32 %v1065_v17  ;;  %v376_v17 = vld [vmem:[%s3601_s3 + $0x708] sm:$0xff]  ;;  %v1111_v22 = vmul.f32 1.442695, %v375_v14 }
 0x112   : > { %v2744_v31 = vpop.eup %2743  ;;  %1878 = vst [vmem:[%s3627_s16 + $0x5f8] sm:$0xff] %v2742_v28  ;;  %2763 = vpow2.f32 %v1067_v20  ;;  %v377_v20 = vld [vmem:[%s3601_s3 + $0x710] sm:$0xff]  ;;  %v1113_v25 = vmul.f32 1.442695, %v376_v17 }
 0x113   : > { %v2746_v34 = vpop.eup %2745  ;;  %1879 = vst [vmem:[%s3627_s16 + $0x600] sm:$0xff] %v2744_v31  ;;  %2765 = vpow2.f32 %v1069_v23  ;;  %v378_v23 = vld [vmem:[%s3601_s3 + $0x718] sm:$0xff]  ;;  %v1115_v28 = vmul.f32 1.442695, %v377_v20 }
 0x114   : > { %v2748_v37 = vpop.eup %2747  ;;  %1880 = vst [vmem:[%s3627_s16 + $0x608] sm:$0xff] %v2746_v34  ;;  %2767 = vpow2.f32 %v1071_v26  ;;  %v379_v26 = vld [vmem:[%s3601_s3 + $0x720] sm:$0xff]  ;;  %v1117_v31 = vmul.f32 1.442695, %v378_v23 }
 0x115   : > { %v2750_v40 = vpop.eup %2749  ;;  %1881 = vst [vmem:[%s3627_s16 + $0x610] sm:$0xff] %v2748_v37  ;;  %2769 = vpow2.f32 %v1073_v29  ;;  %v380_v29 = vld [vmem:[%s3601_s3 + $0x728] sm:$0xff]  ;;  %v1119_v34 = vmul.f32 1.442695, %v379_v26 }
 0x116   : > { %v2752_v43 = vpop.eup %2751  ;;  %1882 = vst [vmem:[%s3627_s16 + $0x618] sm:$0xff] %v2750_v40  ;;  %2771 = vpow2.f32 %v1075_v32  ;;  %v381_v32 = vld [vmem:[%s3601_s3 + $0x730] sm:$0xff]  ;;  %v1121_v37 = vmul.f32 1.442695, %v380_v29 }
 0x117   : > { %v2754_v46 = vpop.eup %2753  ;;  %1883 = vst [vmem:[%s3627_s16 + $0x620] sm:$0xff] %v2752_v43  ;;  %2773 = vpow2.f32 %v1077_v35  ;;  %v382_v35 = vld [vmem:[%s3601_s3 + $0x738] sm:$0xff]  ;;  %v1123_v40 = vmul.f32 1.442695, %v381_v32 }
 0x118   : > { %v2756_v49 = vpop.eup %2755  ;;  %1884 = vst [vmem:[%s3627_s16 + $0x628] sm:$0xff] %v2754_v46  ;;  %2775 = vpow2.f32 %v1079_v38  ;;  %v383_v38 = vld [vmem:[%s3601_s3 + $0x740] sm:$0xff]  ;;  %v1125_v43 = vmul.f32 1.442695, %v382_v35 }
 0x119   : > { %v2758_v52 = vpop.eup %2757  ;;  %1885 = vst [vmem:[%s3627_s16 + $0x630] sm:$0xff] %v2756_v49  ;;  %2777 = vpow2.f32 %v1081_v41  ;;  %v384_v41 = vld [vmem:[%s3601_s3 + $0x748] sm:$0xff]  ;;  %v1127_v46 = vmul.f32 1.442695, %v383_v38 }
 0x11a   : > { %v2760_v55 = vpop.eup %2759  ;;  %1886 = vst [vmem:[%s3627_s16 + $0x638] sm:$0xff] %v2758_v52  ;;  %2779 = vpow2.f32 %v1083_v44  ;;  %v385_v44 = vld [vmem:[%s3601_s3 + $0x750] sm:$0xff]  ;;  %v1129_v49 = vmul.f32 1.442695, %v384_v41 }
 0x11b   : > { %v2762_v58 = vpop.eup %2761  ;;  %1887 = vst [vmem:[%s3627_s16 + $0x640] sm:$0xff] %v2760_v55  ;;  %2781 = vpow2.f32 %v1085_v47  ;;  %v386_v47 = vld [vmem:[%s3601_s3 + $0x758] sm:$0xff]  ;;  %v1131_v52 = vmul.f32 1.442695, %v385_v44 }
 0x11c   : > { %v2764_v61 = vpop.eup %2763  ;;  %1888 = vst [vmem:[%s3627_s16 + $0x648] sm:$0xff] %v2762_v58  ;;  %2783 = vpow2.f32 %v1087_v50  ;;  %v387_v50 = vld [vmem:[%s3601_s3 + $0x760] sm:$0xff]  ;;  %v1133_v55 = vmul.f32 1.442695, %v386_v47 }
 0x11d   : > { %v2766_v0 = vpop.eup %2765  ;;  %1889 = vst [vmem:[%s3627_s16 + $0x650] sm:$0xff] %v2764_v61  ;;  %2785 = vpow2.f32 %v1089_v53  ;;  %v388_v53 = vld [vmem:[%s3601_s3 + $0x768] sm:$0xff]  ;;  %v1135_v58 = vmul.f32 1.442695, %v387_v50 }
 0x11e   : > { %v2768_v3 = vpop.eup %2767  ;;  %1890 = vst [vmem:[%s3627_s16 + $0x658] sm:$0xff] %v2766_v0  ;;  %2787 = vpow2.f32 %v1091_v56  ;;  %v389_v56 = vld [vmem:[%s3601_s3 + $0x770] sm:$0xff]  ;;  %v1137_v61 = vmul.f32 1.442695, %v388_v53 }
 0x11f   : > { %v2770_v6 = vpop.eup %2769  ;;  %1891 = vst [vmem:[%s3627_s16 + $0x660] sm:$0xff] %v2768_v3  ;;  %2789 = vpow2.f32 %v1093_v59  ;;  %v390_v59 = vld [vmem:[%s3601_s3 + $0x778] sm:$0xff]  ;;  %v1139_v0 = vmul.f32 1.442695, %v389_v56 }
 0x120   : > { %v2772_v9 = vpop.eup %2771  ;;  %1892 = vst [vmem:[%s3627_s16 + $0x668] sm:$0xff] %v2770_v6  ;;  %2791 = vpow2.f32 %v1095_v62  ;;  %v391_v62 = vld [vmem:[%s3601_s3 + $0x780] sm:$0xff]  ;;  %v1141_v3 = vmul.f32 1.442695, %v390_v59 }
 0x121   : > { %v2774_v12 = vpop.eup %2773  ;;  %1893 = vst [vmem:[%s3627_s16 + $0x670] sm:$0xff] %v2772_v9  ;;  %2793 = vpow2.f32 %v1097_v1  ;;  %v392_v1 = vld [vmem:[%s3601_s3 + $0x788] sm:$0xff]  ;;  %v1143_v6 = vmul.f32 1.442695, %v391_v62 }
 0x122   : > { %v2776_v15 = vpop.eup %2775  ;;  %1894 = vst [vmem:[%s3627_s16 + $0x678] sm:$0xff] %v2774_v12  ;;  %2795 = vpow2.f32 %v1099_v4  ;;  %v393_v4 = vld [vmem:[%s3601_s3 + $0x790] sm:$0xff]  ;;  %v1145_v9 = vmul.f32 1.442695, %v392_v1 }
 0x123   : > { %v2778_v18 = vpop.eup %2777  ;;  %1895 = vst [vmem:[%s3627_s16 + $0x680] sm:$0xff] %v2776_v15  ;;  %2797 = vpow2.f32 %v1101_v7  ;;  %v394_v7 = vld [vmem:[%s3601_s3 + $0x798] sm:$0xff]  ;;  %v1147_v12 = vmul.f32 1.442695, %v393_v4 }
 0x124   : > { %v2780_v21 = vpop.eup %2779  ;;  %1896 = vst [vmem:[%s3627_s16 + $0x688] sm:$0xff] %v2778_v18  ;;  %2799 = vpow2.f32 %v1103_v10  ;;  %v395_v10 = vld [vmem:[%s3601_s3 + $0x7a0] sm:$0xff]  ;;  %v1149_v15 = vmul.f32 1.442695, %v394_v7 }
 0x125   : > { %v2782_v24 = vpop.eup %2781  ;;  %1897 = vst [vmem:[%s3627_s16 + $0x690] sm:$0xff] %v2780_v21  ;;  %2801 = vpow2.f32 %v1105_v13  ;;  %v396_v13 = vld [vmem:[%s3601_s3 + $0x7a8] sm:$0xff]  ;;  %v1151_v18 = vmul.f32 1.442695, %v395_v10 }
 0x126   : > { %v2784_v27 = vpop.eup %2783  ;;  %1898 = vst [vmem:[%s3627_s16 + $0x698] sm:$0xff] %v2782_v24  ;;  %2803 = vpow2.f32 %v1107_v16  ;;  %v397_v16 = vld [vmem:[%s3601_s3 + $0x7b0] sm:$0xff]  ;;  %v1153_v21 = vmul.f32 1.442695, %v396_v13 }
 0x127   : > { %v2786_v30 = vpop.eup %2785  ;;  %1899 = vst [vmem:[%s3627_s16 + $0x6a0] sm:$0xff] %v2784_v27  ;;  %2805 = vpow2.f32 %v1109_v19  ;;  %v398_v19 = vld [vmem:[%s3601_s3 + $0x7b8] sm:$0xff]  ;;  %v1155_v24 = vmul.f32 1.442695, %v397_v16 }
 0x128   : > { %v2788_v33 = vpop.eup %2787  ;;  %1900 = vst [vmem:[%s3627_s16 + $0x6a8] sm:$0xff] %v2786_v30  ;;  %2807 = vpow2.f32 %v1111_v22  ;;  %v399_v22 = vld [vmem:[%s3601_s3 + $0x7c0] sm:$0xff]  ;;  %v1157_v27 = vmul.f32 1.442695, %v398_v19 }
 0x129   : > { %v2790_v36 = vpop.eup %2789  ;;  %1901 = vst [vmem:[%s3627_s16 + $0x6b0] sm:$0xff] %v2788_v33  ;;  %2809 = vpow2.f32 %v1113_v25  ;;  %v400_v25 = vld [vmem:[%s3601_s3 + $0x7c8] sm:$0xff]  ;;  %v1159_v30 = vmul.f32 1.442695, %v399_v22 }
 0x12a   : > { %v2792_v39 = vpop.eup %2791  ;;  %1902 = vst [vmem:[%s3627_s16 + $0x6b8] sm:$0xff] %v2790_v36  ;;  %2811 = vpow2.f32 %v1115_v28  ;;  %v401_v28 = vld [vmem:[%s3601_s3 + $0x7d0] sm:$0xff]  ;;  %v1161_v33 = vmul.f32 1.442695, %v400_v25 }
 0x12b   : > { %v2794_v42 = vpop.eup %2793  ;;  %1903 = vst [vmem:[%s3627_s16 + $0x6c0] sm:$0xff] %v2792_v39  ;;  %2813 = vpow2.f32 %v1117_v31  ;;  %v402_v31 = vld [vmem:[%s3601_s3 + $0x7d8] sm:$0xff]  ;;  %v1163_v36 = vmul.f32 1.442695, %v401_v28 }
 0x12c   : > { %v2796_v45 = vpop.eup %2795  ;;  %1904 = vst [vmem:[%s3627_s16 + $0x6c8] sm:$0xff] %v2794_v42  ;;  %2815 = vpow2.f32 %v1119_v34  ;;  %v403_v34 = vld [vmem:[%s3601_s3 + $0x7e0] sm:$0xff]  ;;  %v1165_v39 = vmul.f32 1.442695, %v402_v31 }
 0x12d   : > { %v2798_v48 = vpop.eup %2797  ;;  %1905 = vst [vmem:[%s3627_s16 + $0x6d0] sm:$0xff] %v2796_v45  ;;  %2817 = vpow2.f32 %v1121_v37  ;;  %v404_v37 = vld [vmem:[%s3601_s3 + $0x7e8] sm:$0xff]  ;;  %v1167_v42 = vmul.f32 1.442695, %v403_v34 }
 0x12e   : > { %v2800_v51 = vpop.eup %2799  ;;  %1906 = vst [vmem:[%s3627_s16 + $0x6d8] sm:$0xff] %v2798_v48  ;;  %2819 = vpow2.f32 %v1123_v40  ;;  %v405_v40 = vld [vmem:[%s3601_s3 + $0x7f0] sm:$0xff]  ;;  %v1169_v45 = vmul.f32 1.442695, %v404_v37 }
 0x12f   : > { %v2802_v54 = vpop.eup %2801  ;;  %1907 = vst [vmem:[%s3627_s16 + $0x6e0] sm:$0xff] %v2800_v51  ;;  %2821 = vpow2.f32 %v1125_v43  ;;  %v406_v43 = vld [vmem:[%s3601_s3 + $0x7f8] sm:$0xff]  ;;  %v1171_v48 = vmul.f32 1.442695, %v405_v40 }
 0x130   : > { %v2804_v57 = vpop.eup %2803  ;;  %1908 = vst [vmem:[%s3627_s16 + $0x6e8] sm:$0xff] %v2802_v54  ;;  %2823 = vpow2.f32 %v1127_v46  ;;  %v407_v46 = vld [vmem:[%s3601_s3 + $0x800] sm:$0xff]  ;;  %v1173_v51 = vmul.f32 1.442695, %v406_v43 }
 0x131   : > { %v2806_v60 = vpop.eup %2805  ;;  %1909 = vst [vmem:[%s3627_s16 + $0x6f0] sm:$0xff] %v2804_v57  ;;  %2825 = vpow2.f32 %v1129_v49  ;;  %v408_v49 = vld [vmem:[%s3601_s3 + $0x808] sm:$0xff]  ;;  %v1175_v54 = vmul.f32 1.442695, %v407_v46 }
 0x132   : > { %v2808_v63 = vpop.eup %2807  ;;  %1910 = vst [vmem:[%s3627_s16 + $0x6f8] sm:$0xff] %v2806_v60  ;;  %2827 = vpow2.f32 %v1131_v52  ;;  %v409_v52 = vld [vmem:[%s3601_s3 + $0x810] sm:$0xff]  ;;  %v1177_v57 = vmul.f32 1.442695, %v408_v49 }
 0x133   : > { %v2810_v2 = vpop.eup %2809  ;;  %1911 = vst [vmem:[%s3627_s16 + $0x700] sm:$0xff] %v2808_v63  ;;  %2829 = vpow2.f32 %v1133_v55  ;;  %v410_v55 = vld [vmem:[%s3601_s3 + $0x818] sm:$0xff]  ;;  %v1179_v60 = vmul.f32 1.442695, %v409_v52 }
 0x134   : > { %v2812_v5 = vpop.eup %2811  ;;  %1912 = vst [vmem:[%s3627_s16 + $0x708] sm:$0xff] %v2810_v2  ;;  %2831 = vpow2.f32 %v1135_v58  ;;  %v411_v58 = vld [vmem:[%s3601_s3 + $0x820] sm:$0xff]  ;;  %v1181_v63 = vmul.f32 1.442695, %v410_v55 }
 0x135   : > { %v2814_v8 = vpop.eup %2813  ;;  %1913 = vst [vmem:[%s3627_s16 + $0x710] sm:$0xff] %v2812_v5  ;;  %2833 = vpow2.f32 %v1137_v61  ;;  %v412_v61 = vld [vmem:[%s3601_s3 + $0x828] sm:$0xff]  ;;  %v1183_v2 = vmul.f32 1.442695, %v411_v58 }
 0x136   : > { %v2816_v11 = vpop.eup %2815  ;;  %1914 = vst [vmem:[%s3627_s16 + $0x718] sm:$0xff] %v2814_v8  ;;  %2835 = vpow2.f32 %v1139_v0  ;;  %v413_v0 = vld [vmem:[%s3601_s3 + $0x830] sm:$0xff]  ;;  %v1185_v5 = vmul.f32 1.442695, %v412_v61 }
 0x137   : > { %v2818_v14 = vpop.eup %2817  ;;  %1915 = vst [vmem:[%s3627_s16 + $0x720] sm:$0xff] %v2816_v11  ;;  %2837 = vpow2.f32 %v1141_v3  ;;  %v414_v3 = vld [vmem:[%s3601_s3 + $0x838] sm:$0xff]  ;;  %v1187_v8 = vmul.f32 1.442695, %v413_v0 }
 0x138   : > { %v2820_v17 = vpop.eup %2819  ;;  %1916 = vst [vmem:[%s3627_s16 + $0x728] sm:$0xff] %v2818_v14  ;;  %2839 = vpow2.f32 %v1143_v6  ;;  %v415_v6 = vld [vmem:[%s3601_s3 + $0x840] sm:$0xff]  ;;  %v1189_v11 = vmul.f32 1.442695, %v414_v3 }
 0x139   : > { %v2822_v20 = vpop.eup %2821  ;;  %1917 = vst [vmem:[%s3627_s16 + $0x730] sm:$0xff] %v2820_v17  ;;  %2841 = vpow2.f32 %v1145_v9  ;;  %v416_v9 = vld [vmem:[%s3601_s3 + $0x848] sm:$0xff]  ;;  %v1191_v14 = vmul.f32 1.442695, %v415_v6 }
 0x13a   : > { %v2824_v23 = vpop.eup %2823  ;;  %1918 = vst [vmem:[%s3627_s16 + $0x738] sm:$0xff] %v2822_v20  ;;  %2843 = vpow2.f32 %v1147_v12  ;;  %v417_v12 = vld [vmem:[%s3601_s3 + $0x850] sm:$0xff]  ;;  %v1193_v17 = vmul.f32 1.442695, %v416_v9 }
 0x13b   : > { %v2826_v26 = vpop.eup %2825  ;;  %1919 = vst [vmem:[%s3627_s16 + $0x740] sm:$0xff] %v2824_v23  ;;  %2845 = vpow2.f32 %v1149_v15  ;;  %v418_v15 = vld [vmem:[%s3601_s3 + $0x858] sm:$0xff]  ;;  %v1195_v20 = vmul.f32 1.442695, %v417_v12 }
 0x13c   : > { %v2828_v29 = vpop.eup %2827  ;;  %1920 = vst [vmem:[%s3627_s16 + $0x748] sm:$0xff] %v2826_v26  ;;  %2847 = vpow2.f32 %v1151_v18  ;;  %v419_v18 = vld [vmem:[%s3601_s3 + $0x860] sm:$0xff]  ;;  %v1197_v23 = vmul.f32 1.442695, %v418_v15 }
 0x13d   : > { %v2830_v32 = vpop.eup %2829  ;;  %1921 = vst [vmem:[%s3627_s16 + $0x750] sm:$0xff] %v2828_v29  ;;  %2849 = vpow2.f32 %v1153_v21  ;;  %v420_v21 = vld [vmem:[%s3601_s3 + $0x868] sm:$0xff]  ;;  %v1199_v26 = vmul.f32 1.442695, %v419_v18 }
 0x13e   : > { %v2832_v35 = vpop.eup %2831  ;;  %1922 = vst [vmem:[%s3627_s16 + $0x758] sm:$0xff] %v2830_v32  ;;  %2851 = vpow2.f32 %v1155_v24  ;;  %v421_v24 = vld [vmem:[%s3601_s3 + $0x870] sm:$0xff]  ;;  %v1201_v29 = vmul.f32 1.442695, %v420_v21 }
 0x13f   : > { %v2834_v38 = vpop.eup %2833  ;;  %1923 = vst [vmem:[%s3627_s16 + $0x760] sm:$0xff] %v2832_v35  ;;  %2853 = vpow2.f32 %v1157_v27  ;;  %v422_v27 = vld [vmem:[%s3601_s3 + $0x878] sm:$0xff]  ;;  %v1203_v32 = vmul.f32 1.442695, %v421_v24 }
 0x140   : > { %v2836_v41 = vpop.eup %2835  ;;  %1924 = vst [vmem:[%s3627_s16 + $0x768] sm:$0xff] %v2834_v38  ;;  %2855 = vpow2.f32 %v1159_v30  ;;  %v423_v30 = vld [vmem:[%s3601_s3 + $0x880] sm:$0xff]  ;;  %v1205_v35 = vmul.f32 1.442695, %v422_v27 }
 0x141   : > { %v2838_v44 = vpop.eup %2837  ;;  %1925 = vst [vmem:[%s3627_s16 + $0x770] sm:$0xff] %v2836_v41  ;;  %2857 = vpow2.f32 %v1161_v33  ;;  %v424_v33 = vld [vmem:[%s3601_s3 + $0x888] sm:$0xff]  ;;  %v1207_v38 = vmul.f32 1.442695, %v423_v30 }
 0x142   : > { %v2840_v47 = vpop.eup %2839  ;;  %1926 = vst [vmem:[%s3627_s16 + $0x778] sm:$0xff] %v2838_v44  ;;  %2859 = vpow2.f32 %v1163_v36  ;;  %v425_v36 = vld [vmem:[%s3601_s3 + $0x890] sm:$0xff]  ;;  %v1209_v41 = vmul.f32 1.442695, %v424_v33 }
 0x143   : > { %v2842_v50 = vpop.eup %2841  ;;  %1927 = vst [vmem:[%s3627_s16 + $0x780] sm:$0xff] %v2840_v47  ;;  %2861 = vpow2.f32 %v1165_v39  ;;  %v426_v39 = vld [vmem:[%s3601_s3 + $0x898] sm:$0xff]  ;;  %v1211_v44 = vmul.f32 1.442695, %v425_v36 }
 0x144   : > { %v2844_v53 = vpop.eup %2843  ;;  %1928 = vst [vmem:[%s3627_s16 + $0x788] sm:$0xff] %v2842_v50  ;;  %2863 = vpow2.f32 %v1167_v42  ;;  %v427_v42 = vld [vmem:[%s3601_s3 + $0x8a0] sm:$0xff]  ;;  %v1213_v47 = vmul.f32 1.442695, %v426_v39 }
 0x145   : > { %v2846_v56 = vpop.eup %2845  ;;  %1929 = vst [vmem:[%s3627_s16 + $0x790] sm:$0xff] %v2844_v53  ;;  %2865 = vpow2.f32 %v1169_v45  ;;  %v428_v45 = vld [vmem:[%s3601_s3 + $0x8a8] sm:$0xff]  ;;  %v1215_v50 = vmul.f32 1.442695, %v427_v42 }
 0x146   : > { %v2848_v59 = vpop.eup %2847  ;;  %1930 = vst [vmem:[%s3627_s16 + $0x798] sm:$0xff] %v2846_v56  ;;  %2867 = vpow2.f32 %v1171_v48  ;;  %v429_v48 = vld [vmem:[%s3601_s3 + $0x8b0] sm:$0xff]  ;;  %v1217_v53 = vmul.f32 1.442695, %v428_v45 }
 0x147   : > { %v2850_v62 = vpop.eup %2849  ;;  %1931 = vst [vmem:[%s3627_s16 + $0x7a0] sm:$0xff] %v2848_v59  ;;  %2869 = vpow2.f32 %v1173_v51  ;;  %v430_v51 = vld [vmem:[%s3601_s3 + $0x8b8] sm:$0xff]  ;;  %v1219_v56 = vmul.f32 1.442695, %v429_v48 }
 0x148   : > { %v2852_v1 = vpop.eup %2851  ;;  %1932 = vst [vmem:[%s3627_s16 + $0x7a8] sm:$0xff] %v2850_v62  ;;  %2871 = vpow2.f32 %v1175_v54  ;;  %v431_v54 = vld [vmem:[%s3601_s3 + $0x8c0] sm:$0xff]  ;;  %v1221_v59 = vmul.f32 1.442695, %v430_v51 }
 0x149   : > { %v2854_v4 = vpop.eup %2853  ;;  %1933 = vst [vmem:[%s3627_s16 + $0x7b0] sm:$0xff] %v2852_v1  ;;  %2873 = vpow2.f32 %v1177_v57  ;;  %v432_v57 = vld [vmem:[%s3601_s3 + $0x8c8] sm:$0xff]  ;;  %v1223_v62 = vmul.f32 1.442695, %v431_v54 }
 0x14a   : > { %v2856_v7 = vpop.eup %2855  ;;  %1934 = vst [vmem:[%s3627_s16 + $0x7b8] sm:$0xff] %v2854_v4  ;;  %2875 = vpow2.f32 %v1179_v60  ;;  %v433_v60 = vld [vmem:[%s3601_s3 + $0x8d0] sm:$0xff]  ;;  %v1225_v1 = vmul.f32 1.442695, %v432_v57 }
 0x14b   : > { %v2858_v10 = vpop.eup %2857  ;;  %1935 = vst [vmem:[%s3627_s16 + $0x7c0] sm:$0xff] %v2856_v7  ;;  %2877 = vpow2.f32 %v1181_v63  ;;  %v434_v63 = vld [vmem:[%s3601_s3 + $0x8d8] sm:$0xff]  ;;  %v1227_v4 = vmul.f32 1.442695, %v433_v60 }
 0x14c   : > { %v2860_v13 = vpop.eup %2859  ;;  %1936 = vst [vmem:[%s3627_s16 + $0x7c8] sm:$0xff] %v2858_v10  ;;  %2879 = vpow2.f32 %v1183_v2  ;;  %v435_v2 = vld [vmem:[%s3601_s3 + $0x8e0] sm:$0xff]  ;;  %v1229_v7 = vmul.f32 1.442695, %v434_v63 }
 0x14d   : > { %v2862_v16 = vpop.eup %2861  ;;  %1937 = vst [vmem:[%s3627_s16 + $0x7d0] sm:$0xff] %v2860_v13  ;;  %2881 = vpow2.f32 %v1185_v5  ;;  %v436_v5 = vld [vmem:[%s3601_s3 + $0x8e8] sm:$0xff]  ;;  %v1231_v10 = vmul.f32 1.442695, %v435_v2 }
 0x14e   : > { %v2864_v19 = vpop.eup %2863  ;;  %1938 = vst [vmem:[%s3627_s16 + $0x7d8] sm:$0xff] %v2862_v16  ;;  %2883 = vpow2.f32 %v1187_v8  ;;  %v437_v8 = vld [vmem:[%s3601_s3 + $0x8f0] sm:$0xff]  ;;  %v1233_v13 = vmul.f32 1.442695, %v436_v5 }
 0x14f   : > { %v2866_v22 = vpop.eup %2865  ;;  %1939 = vst [vmem:[%s3627_s16 + $0x7e0] sm:$0xff] %v2864_v19  ;;  %2885 = vpow2.f32 %v1189_v11  ;;  %v438_v11 = vld [vmem:[%s3601_s3 + $0x8f8] sm:$0xff]  ;;  %v1235_v16 = vmul.f32 1.442695, %v437_v8 }
 0x150   : > { %v2868_v25 = vpop.eup %2867  ;;  %1940 = vst [vmem:[%s3627_s16 + $0x7e8] sm:$0xff] %v2866_v22  ;;  %2887 = vpow2.f32 %v1191_v14  ;;  %v439_v14 = vld [vmem:[%s3601_s3 + $0x900] sm:$0xff]  ;;  %v1237_v19 = vmul.f32 1.442695, %v438_v11 }
 0x151   : > { %v2870_v28 = vpop.eup %2869  ;;  %1941 = vst [vmem:[%s3627_s16 + $0x7f0] sm:$0xff] %v2868_v25  ;;  %2889 = vpow2.f32 %v1193_v17  ;;  %v440_v17 = vld [vmem:[%s3601_s3 + $0x908] sm:$0xff]  ;;  %v1239_v22 = vmul.f32 1.442695, %v439_v14 }
 0x152   : > { %v2872_v31 = vpop.eup %2871  ;;  %1942 = vst [vmem:[%s3627_s16 + $0x7f8] sm:$0xff] %v2870_v28  ;;  %2891 = vpow2.f32 %v1195_v20  ;;  %v441_v20 = vld [vmem:[%s3601_s3 + $0x910] sm:$0xff]  ;;  %v1241_v25 = vmul.f32 1.442695, %v440_v17 }
 0x153   : > { %v2874_v34 = vpop.eup %2873  ;;  %1943 = vst [vmem:[%s3627_s16 + $0x800] sm:$0xff] %v2872_v31  ;;  %2893 = vpow2.f32 %v1197_v23  ;;  %v442_v23 = vld [vmem:[%s3601_s3 + $0x918] sm:$0xff]  ;;  %v1243_v28 = vmul.f32 1.442695, %v441_v20 }
 0x154   : > { %v2876_v37 = vpop.eup %2875  ;;  %1944 = vst [vmem:[%s3627_s16 + $0x808] sm:$0xff] %v2874_v34  ;;  %2895 = vpow2.f32 %v1199_v26  ;;  %v443_v26 = vld [vmem:[%s3601_s3 + $0x920] sm:$0xff]  ;;  %v1245_v31 = vmul.f32 1.442695, %v442_v23 }
 0x155   : > { %v2878_v40 = vpop.eup %2877  ;;  %1945 = vst [vmem:[%s3627_s16 + $0x810] sm:$0xff] %v2876_v37  ;;  %2897 = vpow2.f32 %v1201_v29  ;;  %v444_v29 = vld [vmem:[%s3601_s3 + $0x928] sm:$0xff]  ;;  %v1247_v34 = vmul.f32 1.442695, %v443_v26 }
 0x156   : > { %v2880_v43 = vpop.eup %2879  ;;  %1946 = vst [vmem:[%s3627_s16 + $0x818] sm:$0xff] %v2878_v40  ;;  %2899 = vpow2.f32 %v1203_v32  ;;  %v445_v32 = vld [vmem:[%s3601_s3 + $0x930] sm:$0xff]  ;;  %v1249_v37 = vmul.f32 1.442695, %v444_v29 }
 0x157   : > { %v2882_v46 = vpop.eup %2881  ;;  %1947 = vst [vmem:[%s3627_s16 + $0x820] sm:$0xff] %v2880_v43  ;;  %2901 = vpow2.f32 %v1205_v35  ;;  %v446_v35 = vld [vmem:[%s3601_s3 + $0x938] sm:$0xff]  ;;  %v1251_v40 = vmul.f32 1.442695, %v445_v32 }
 0x158   : > { %v2884_v49 = vpop.eup %2883  ;;  %1948 = vst [vmem:[%s3627_s16 + $0x828] sm:$0xff] %v2882_v46  ;;  %2903 = vpow2.f32 %v1207_v38  ;;  %v447_v38 = vld [vmem:[%s3601_s3 + $0x940] sm:$0xff]  ;;  %v1253_v43 = vmul.f32 1.442695, %v446_v35 }
 0x159   : > { %v2886_v52 = vpop.eup %2885  ;;  %1949 = vst [vmem:[%s3627_s16 + $0x830] sm:$0xff] %v2884_v49  ;;  %2905 = vpow2.f32 %v1209_v41  ;;  %v448_v41 = vld [vmem:[%s3601_s3 + $0x948] sm:$0xff]  ;;  %v1255_v46 = vmul.f32 1.442695, %v447_v38 }
 0x15a   : > { %v2888_v55 = vpop.eup %2887  ;;  %1950 = vst [vmem:[%s3627_s16 + $0x838] sm:$0xff] %v2886_v52  ;;  %2907 = vpow2.f32 %v1211_v44  ;;  %v449_v44 = vld [vmem:[%s3601_s3 + $0x950] sm:$0xff]  ;;  %v1257_v49 = vmul.f32 1.442695, %v448_v41 }
 0x15b   : > { %v2890_v58 = vpop.eup %2889  ;;  %1951 = vst [vmem:[%s3627_s16 + $0x840] sm:$0xff] %v2888_v55  ;;  %2909 = vpow2.f32 %v1213_v47  ;;  %v450_v47 = vld [vmem:[%s3601_s3 + $0x958] sm:$0xff]  ;;  %v1259_v52 = vmul.f32 1.442695, %v449_v44 }
 0x15c   : > { %v2892_v61 = vpop.eup %2891  ;;  %1952 = vst [vmem:[%s3627_s16 + $0x848] sm:$0xff] %v2890_v58  ;;  %2911 = vpow2.f32 %v1215_v50  ;;  %v451_v50 = vld [vmem:[%s3601_s3 + $0x960] sm:$0xff]  ;;  %v1261_v55 = vmul.f32 1.442695, %v450_v47 }
 0x15d   : > { %v2894_v0 = vpop.eup %2893  ;;  %1953 = vst [vmem:[%s3627_s16 + $0x850] sm:$0xff] %v2892_v61  ;;  %2913 = vpow2.f32 %v1217_v53  ;;  %v452_v53 = vld [vmem:[%s3601_s3 + $0x968] sm:$0xff]  ;;  %v1263_v58 = vmul.f32 1.442695, %v451_v50 }
 0x15e   : > { %v2896_v3 = vpop.eup %2895  ;;  %1954 = vst [vmem:[%s3627_s16 + $0x858] sm:$0xff] %v2894_v0  ;;  %2915 = vpow2.f32 %v1219_v56  ;;  %v453_v56 = vld [vmem:[%s3601_s3 + $0x970] sm:$0xff]  ;;  %v1265_v61 = vmul.f32 1.442695, %v452_v53 }
 0x15f   : > { %v2898_v6 = vpop.eup %2897  ;;  %1955 = vst [vmem:[%s3627_s16 + $0x860] sm:$0xff] %v2896_v3  ;;  %2917 = vpow2.f32 %v1221_v59  ;;  %v454_v59 = vld [vmem:[%s3601_s3 + $0x978] sm:$0xff]  ;;  %v1267_v0 = vmul.f32 1.442695, %v453_v56 }
 0x160   : > { %v2900_v9 = vpop.eup %2899  ;;  %1956 = vst [vmem:[%s3627_s16 + $0x868] sm:$0xff] %v2898_v6  ;;  %2919 = vpow2.f32 %v1223_v62  ;;  %v455_v62 = vld [vmem:[%s3601_s3 + $0x980] sm:$0xff]  ;;  %v1269_v3 = vmul.f32 1.442695, %v454_v59 }
 0x161   : > { %v2902_v12 = vpop.eup %2901  ;;  %1957 = vst [vmem:[%s3627_s16 + $0x870] sm:$0xff] %v2900_v9  ;;  %2921 = vpow2.f32 %v1225_v1  ;;  %v456_v1 = vld [vmem:[%s3601_s3 + $0x988] sm:$0xff]  ;;  %v1271_v6 = vmul.f32 1.442695, %v455_v62 }
 0x162   : > { %v2904_v15 = vpop.eup %2903  ;;  %1958 = vst [vmem:[%s3627_s16 + $0x878] sm:$0xff] %v2902_v12  ;;  %2923 = vpow2.f32 %v1227_v4  ;;  %v457_v4 = vld [vmem:[%s3601_s3 + $0x990] sm:$0xff]  ;;  %v1273_v9 = vmul.f32 1.442695, %v456_v1 }
 0x163   : > { %v2906_v18 = vpop.eup %2905  ;;  %1959 = vst [vmem:[%s3627_s16 + $0x880] sm:$0xff] %v2904_v15  ;;  %2925 = vpow2.f32 %v1229_v7  ;;  %v458_v7 = vld [vmem:[%s3601_s3 + $0x998] sm:$0xff]  ;;  %v1275_v12 = vmul.f32 1.442695, %v457_v4 }
 0x164   : > { %v2908_v21 = vpop.eup %2907  ;;  %1960 = vst [vmem:[%s3627_s16 + $0x888] sm:$0xff] %v2906_v18  ;;  %2927 = vpow2.f32 %v1231_v10  ;;  %v459_v10 = vld [vmem:[%s3601_s3 + $0x9a0] sm:$0xff]  ;;  %v1277_v15 = vmul.f32 1.442695, %v458_v7 }
 0x165   : > { %v2910_v24 = vpop.eup %2909  ;;  %1961 = vst [vmem:[%s3627_s16 + $0x890] sm:$0xff] %v2908_v21  ;;  %2929 = vpow2.f32 %v1233_v13  ;;  %v460_v13 = vld [vmem:[%s3601_s3 + $0x9a8] sm:$0xff]  ;;  %v1279_v18 = vmul.f32 1.442695, %v459_v10 }
 0x166   : > { %v2912_v27 = vpop.eup %2911  ;;  %1962 = vst [vmem:[%s3627_s16 + $0x898] sm:$0xff] %v2910_v24  ;;  %2931 = vpow2.f32 %v1235_v16  ;;  %v461_v16 = vld [vmem:[%s3601_s3 + $0x9b0] sm:$0xff]  ;;  %v1281_v21 = vmul.f32 1.442695, %v460_v13 }
 0x167   : > { %v2914_v30 = vpop.eup %2913  ;;  %1963 = vst [vmem:[%s3627_s16 + $0x8a0] sm:$0xff] %v2912_v27  ;;  %2933 = vpow2.f32 %v1237_v19  ;;  %v462_v19 = vld [vmem:[%s3601_s3 + $0x9b8] sm:$0xff]  ;;  %v1283_v24 = vmul.f32 1.442695, %v461_v16 }
 0x168   : > { %v2916_v33 = vpop.eup %2915  ;;  %1964 = vst [vmem:[%s3627_s16 + $0x8a8] sm:$0xff] %v2914_v30  ;;  %2935 = vpow2.f32 %v1239_v22  ;;  %v463_v22 = vld [vmem:[%s3601_s3 + $0x9c0] sm:$0xff]  ;;  %v1285_v27 = vmul.f32 1.442695, %v462_v19 }
 0x169   : > { %v2918_v36 = vpop.eup %2917  ;;  %1965 = vst [vmem:[%s3627_s16 + $0x8b0] sm:$0xff] %v2916_v33  ;;  %2937 = vpow2.f32 %v1241_v25  ;;  %v464_v25 = vld [vmem:[%s3601_s3 + $0x9c8] sm:$0xff]  ;;  %v1287_v30 = vmul.f32 1.442695, %v463_v22 }
 0x16a   : > { %v2920_v39 = vpop.eup %2919  ;;  %1966 = vst [vmem:[%s3627_s16 + $0x8b8] sm:$0xff] %v2918_v36  ;;  %2939 = vpow2.f32 %v1243_v28  ;;  %v465_v28 = vld [vmem:[%s3601_s3 + $0x9d0] sm:$0xff]  ;;  %v1289_v33 = vmul.f32 1.442695, %v464_v25 }
 0x16b   : > { %v2922_v42 = vpop.eup %2921  ;;  %1967 = vst [vmem:[%s3627_s16 + $0x8c0] sm:$0xff] %v2920_v39  ;;  %2941 = vpow2.f32 %v1245_v31  ;;  %v466_v31 = vld [vmem:[%s3601_s3 + $0x9d8] sm:$0xff]  ;;  %v1291_v36 = vmul.f32 1.442695, %v465_v28 }
 0x16c   : > { %v2924_v45 = vpop.eup %2923  ;;  %1968 = vst [vmem:[%s3627_s16 + $0x8c8] sm:$0xff] %v2922_v42  ;;  %2943 = vpow2.f32 %v1247_v34  ;;  %v467_v34 = vld [vmem:[%s3601_s3 + $0x9e0] sm:$0xff]  ;;  %v1293_v39 = vmul.f32 1.442695, %v466_v31 }
 0x16d   : > { %v2926_v48 = vpop.eup %2925  ;;  %1969 = vst [vmem:[%s3627_s16 + $0x8d0] sm:$0xff] %v2924_v45  ;;  %2945 = vpow2.f32 %v1249_v37  ;;  %v468_v37 = vld [vmem:[%s3601_s3 + $0x9e8] sm:$0xff]  ;;  %v1295_v42 = vmul.f32 1.442695, %v467_v34 }
 0x16e   : > { %v2928_v51 = vpop.eup %2927  ;;  %1970 = vst [vmem:[%s3627_s16 + $0x8d8] sm:$0xff] %v2926_v48  ;;  %2947 = vpow2.f32 %v1251_v40  ;;  %v469_v40 = vld [vmem:[%s3601_s3 + $0x9f0] sm:$0xff]  ;;  %v1297_v45 = vmul.f32 1.442695, %v468_v37 }
 0x16f   : > { %v2930_v54 = vpop.eup %2929  ;;  %1971 = vst [vmem:[%s3627_s16 + $0x8e0] sm:$0xff] %v2928_v51  ;;  %2949 = vpow2.f32 %v1253_v43  ;;  %v470_v43 = vld [vmem:[%s3601_s3 + $0x9f8] sm:$0xff]  ;;  %v1299_v48 = vmul.f32 1.442695, %v469_v40 }
 0x170   : > { %v2932_v57 = vpop.eup %2931  ;;  %1972 = vst [vmem:[%s3627_s16 + $0x8e8] sm:$0xff] %v2930_v54  ;;  %2951 = vpow2.f32 %v1255_v46  ;;  %v471_v46 = vld [vmem:[%s3601_s3 + $0xa00] sm:$0xff]  ;;  %v1301_v51 = vmul.f32 1.442695, %v470_v43 }
 0x171   : > { %v2934_v60 = vpop.eup %2933  ;;  %1973 = vst [vmem:[%s3627_s16 + $0x8f0] sm:$0xff] %v2932_v57  ;;  %2953 = vpow2.f32 %v1257_v49  ;;  %v472_v49 = vld [vmem:[%s3601_s3 + $0xa08] sm:$0xff]  ;;  %v1303_v54 = vmul.f32 1.442695, %v471_v46 }
 0x172   : > { %v2936_v63 = vpop.eup %2935  ;;  %1974 = vst [vmem:[%s3627_s16 + $0x8f8] sm:$0xff] %v2934_v60  ;;  %2955 = vpow2.f32 %v1259_v52  ;;  %v473_v52 = vld [vmem:[%s3601_s3 + $0xa10] sm:$0xff]  ;;  %v1305_v57 = vmul.f32 1.442695, %v472_v49 }
 0x173   : > { %v2938_v2 = vpop.eup %2937  ;;  %1975 = vst [vmem:[%s3627_s16 + $0x900] sm:$0xff] %v2936_v63  ;;  %2957 = vpow2.f32 %v1261_v55  ;;  %v474_v55 = vld [vmem:[%s3601_s3 + $0xa18] sm:$0xff]  ;;  %v1307_v60 = vmul.f32 1.442695, %v473_v52 }
 0x174   : > { %v2940_v5 = vpop.eup %2939  ;;  %1976 = vst [vmem:[%s3627_s16 + $0x908] sm:$0xff] %v2938_v2  ;;  %2959 = vpow2.f32 %v1263_v58  ;;  %v475_v58 = vld [vmem:[%s3601_s3 + $0xa20] sm:$0xff]  ;;  %v1309_v63 = vmul.f32 1.442695, %v474_v55 }
 0x175   : > { %v2942_v8 = vpop.eup %2941  ;;  %1977 = vst [vmem:[%s3627_s16 + $0x910] sm:$0xff] %v2940_v5  ;;  %2961 = vpow2.f32 %v1265_v61  ;;  %v476_v61 = vld [vmem:[%s3601_s3 + $0xa28] sm:$0xff]  ;;  %v1311_v2 = vmul.f32 1.442695, %v475_v58 }
 0x176   : > { %v2944_v11 = vpop.eup %2943  ;;  %1978 = vst [vmem:[%s3627_s16 + $0x918] sm:$0xff] %v2942_v8  ;;  %2963 = vpow2.f32 %v1267_v0  ;;  %v477_v0 = vld [vmem:[%s3601_s3 + $0xa30] sm:$0xff]  ;;  %v1313_v5 = vmul.f32 1.442695, %v476_v61 }
 0x177   : > { %v2946_v14 = vpop.eup %2945  ;;  %1979 = vst [vmem:[%s3627_s16 + $0x920] sm:$0xff] %v2944_v11  ;;  %2965 = vpow2.f32 %v1269_v3  ;;  %v478_v3 = vld [vmem:[%s3601_s3 + $0xa38] sm:$0xff]  ;;  %v1315_v8 = vmul.f32 1.442695, %v477_v0 }
 0x178   : > { %v2948_v17 = vpop.eup %2947  ;;  %1980 = vst [vmem:[%s3627_s16 + $0x928] sm:$0xff] %v2946_v14  ;;  %2967 = vpow2.f32 %v1271_v6  ;;  %v479_v6 = vld [vmem:[%s3601_s3 + $0xa40] sm:$0xff]  ;;  %v1317_v11 = vmul.f32 1.442695, %v478_v3 }
 0x179   : > { %v2950_v20 = vpop.eup %2949  ;;  %1981 = vst [vmem:[%s3627_s16 + $0x930] sm:$0xff] %v2948_v17  ;;  %2969 = vpow2.f32 %v1273_v9  ;;  %v480_v9 = vld [vmem:[%s3601_s3 + $0xa48] sm:$0xff]  ;;  %v1319_v14 = vmul.f32 1.442695, %v479_v6 }
 0x17a   : > { %v2952_v23 = vpop.eup %2951  ;;  %1982 = vst [vmem:[%s3627_s16 + $0x938] sm:$0xff] %v2950_v20  ;;  %2971 = vpow2.f32 %v1275_v12  ;;  %v481_v12 = vld [vmem:[%s3601_s3 + $0xa50] sm:$0xff]  ;;  %v1321_v17 = vmul.f32 1.442695, %v480_v9 }
 0x17b   : > { %v2954_v26 = vpop.eup %2953  ;;  %1983 = vst [vmem:[%s3627_s16 + $0x940] sm:$0xff] %v2952_v23  ;;  %2973 = vpow2.f32 %v1277_v15  ;;  %v482_v15 = vld [vmem:[%s3601_s3 + $0xa58] sm:$0xff]  ;;  %v1323_v20 = vmul.f32 1.442695, %v481_v12 }
 0x17c   : > { %v2956_v29 = vpop.eup %2955  ;;  %1984 = vst [vmem:[%s3627_s16 + $0x948] sm:$0xff] %v2954_v26  ;;  %2975 = vpow2.f32 %v1279_v18  ;;  %v483_v18 = vld [vmem:[%s3601_s3 + $0xa60] sm:$0xff]  ;;  %v1325_v23 = vmul.f32 1.442695, %v482_v15 }
 0x17d   : > { %v2958_v32 = vpop.eup %2957  ;;  %1985 = vst [vmem:[%s3627_s16 + $0x950] sm:$0xff] %v2956_v29  ;;  %2977 = vpow2.f32 %v1281_v21  ;;  %v484_v21 = vld [vmem:[%s3601_s3 + $0xa68] sm:$0xff]  ;;  %v1327_v26 = vmul.f32 1.442695, %v483_v18 }
 0x17e   : > { %v2960_v35 = vpop.eup %2959  ;;  %1986 = vst [vmem:[%s3627_s16 + $0x958] sm:$0xff] %v2958_v32  ;;  %2979 = vpow2.f32 %v1283_v24  ;;  %v485_v24 = vld [vmem:[%s3601_s3 + $0xa70] sm:$0xff]  ;;  %v1329_v29 = vmul.f32 1.442695, %v484_v21 }
 0x17f   : > { %v2962_v38 = vpop.eup %2961  ;;  %1987 = vst [vmem:[%s3627_s16 + $0x960] sm:$0xff] %v2960_v35  ;;  %2981 = vpow2.f32 %v1285_v27  ;;  %v486_v27 = vld [vmem:[%s3601_s3 + $0xa78] sm:$0xff]  ;;  %v1331_v32 = vmul.f32 1.442695, %v485_v24 }
 0x180   : > { %v2964_v41 = vpop.eup %2963  ;;  %1988 = vst [vmem:[%s3627_s16 + $0x968] sm:$0xff] %v2962_v38  ;;  %2983 = vpow2.f32 %v1287_v30  ;;  %v487_v30 = vld [vmem:[%s3601_s3 + $0xa80] sm:$0xff]  ;;  %v1333_v35 = vmul.f32 1.442695, %v486_v27 }
 0x181   : > { %v2966_v44 = vpop.eup %2965  ;;  %1989 = vst [vmem:[%s3627_s16 + $0x970] sm:$0xff] %v2964_v41  ;;  %2985 = vpow2.f32 %v1289_v33  ;;  %v488_v33 = vld [vmem:[%s3601_s3 + $0xa88] sm:$0xff]  ;;  %v1335_v38 = vmul.f32 1.442695, %v487_v30 }
 0x182   : > { %v2968_v47 = vpop.eup %2967  ;;  %1990 = vst [vmem:[%s3627_s16 + $0x978] sm:$0xff] %v2966_v44  ;;  %2987 = vpow2.f32 %v1291_v36  ;;  %v489_v36 = vld [vmem:[%s3601_s3 + $0xa90] sm:$0xff]  ;;  %v1337_v41 = vmul.f32 1.442695, %v488_v33 }
 0x183   : > { %v2970_v50 = vpop.eup %2969  ;;  %1991 = vst [vmem:[%s3627_s16 + $0x980] sm:$0xff] %v2968_v47  ;;  %2989 = vpow2.f32 %v1293_v39  ;;  %v490_v39 = vld [vmem:[%s3601_s3 + $0xa98] sm:$0xff]  ;;  %v1339_v44 = vmul.f32 1.442695, %v489_v36 }
 0x184   : > { %v2972_v53 = vpop.eup %2971  ;;  %1992 = vst [vmem:[%s3627_s16 + $0x988] sm:$0xff] %v2970_v50  ;;  %2991 = vpow2.f32 %v1295_v42  ;;  %v491_v42 = vld [vmem:[%s3601_s3 + $0xaa0] sm:$0xff]  ;;  %v1341_v47 = vmul.f32 1.442695, %v490_v39 }
 0x185   : > { %v2974_v56 = vpop.eup %2973  ;;  %1993 = vst [vmem:[%s3627_s16 + $0x990] sm:$0xff] %v2972_v53  ;;  %2993 = vpow2.f32 %v1297_v45  ;;  %v492_v45 = vld [vmem:[%s3601_s3 + $0xaa8] sm:$0xff]  ;;  %v1343_v50 = vmul.f32 1.442695, %v491_v42 }
 0x186   : > { %v2976_v59 = vpop.eup %2975  ;;  %1994 = vst [vmem:[%s3627_s16 + $0x998] sm:$0xff] %v2974_v56  ;;  %2995 = vpow2.f32 %v1299_v48  ;;  %v493_v48 = vld [vmem:[%s3601_s3 + $0xab0] sm:$0xff]  ;;  %v1345_v53 = vmul.f32 1.442695, %v492_v45 }
 0x187   : > { %v2978_v62 = vpop.eup %2977  ;;  %1995 = vst [vmem:[%s3627_s16 + $0x9a0] sm:$0xff] %v2976_v59  ;;  %2997 = vpow2.f32 %v1301_v51  ;;  %v494_v51 = vld [vmem:[%s3601_s3 + $0xab8] sm:$0xff]  ;;  %v1347_v56 = vmul.f32 1.442695, %v493_v48 }
 0x188   : > { %v2980_v1 = vpop.eup %2979  ;;  %1996 = vst [vmem:[%s3627_s16 + $0x9a8] sm:$0xff] %v2978_v62  ;;  %2999 = vpow2.f32 %v1303_v54  ;;  %v495_v54 = vld [vmem:[%s3601_s3 + $0xac0] sm:$0xff]  ;;  %v1349_v59 = vmul.f32 1.442695, %v494_v51 }
 0x189   : > { %v2982_v4 = vpop.eup %2981  ;;  %1997 = vst [vmem:[%s3627_s16 + $0x9b0] sm:$0xff] %v2980_v1  ;;  %3001 = vpow2.f32 %v1305_v57  ;;  %v496_v57 = vld [vmem:[%s3601_s3 + $0xac8] sm:$0xff]  ;;  %v1351_v62 = vmul.f32 1.442695, %v495_v54 }
 0x18a   : > { %v2984_v7 = vpop.eup %2983  ;;  %1998 = vst [vmem:[%s3627_s16 + $0x9b8] sm:$0xff] %v2982_v4  ;;  %3003 = vpow2.f32 %v1307_v60  ;;  %v497_v60 = vld [vmem:[%s3601_s3 + $0xad0] sm:$0xff]  ;;  %v1353_v1 = vmul.f32 1.442695, %v496_v57 }
 0x18b   : > { %v2986_v10 = vpop.eup %2985  ;;  %1999 = vst [vmem:[%s3627_s16 + $0x9c0] sm:$0xff] %v2984_v7  ;;  %3005 = vpow2.f32 %v1309_v63  ;;  %v498_v63 = vld [vmem:[%s3601_s3 + $0xad8] sm:$0xff]  ;;  %v1355_v4 = vmul.f32 1.442695, %v497_v60 }
 0x18c   : > { %v2988_v13 = vpop.eup %2987  ;;  %2000 = vst [vmem:[%s3627_s16 + $0x9c8] sm:$0xff] %v2986_v10  ;;  %3007 = vpow2.f32 %v1311_v2  ;;  %v499_v2 = vld [vmem:[%s3601_s3 + $0xae0] sm:$0xff]  ;;  %v1357_v7 = vmul.f32 1.442695, %v498_v63 }
 0x18d   : > { %v2990_v16 = vpop.eup %2989  ;;  %2001 = vst [vmem:[%s3627_s16 + $0x9d0] sm:$0xff] %v2988_v13  ;;  %3009 = vpow2.f32 %v1313_v5  ;;  %v500_v5 = vld [vmem:[%s3601_s3 + $0xae8] sm:$0xff]  ;;  %v1359_v10 = vmul.f32 1.442695, %v499_v2 }
 0x18e   : > { %v2992_v19 = vpop.eup %2991  ;;  %2002 = vst [vmem:[%s3627_s16 + $0x9d8] sm:$0xff] %v2990_v16  ;;  %3011 = vpow2.f32 %v1315_v8  ;;  %v501_v8 = vld [vmem:[%s3601_s3 + $0xaf0] sm:$0xff]  ;;  %v1361_v13 = vmul.f32 1.442695, %v500_v5 }
 0x18f   : > { %v2994_v22 = vpop.eup %2993  ;;  %2003 = vst [vmem:[%s3627_s16 + $0x9e0] sm:$0xff] %v2992_v19  ;;  %3013 = vpow2.f32 %v1317_v11  ;;  %v502_v11 = vld [vmem:[%s3601_s3 + $0xaf8] sm:$0xff]  ;;  %v1363_v16 = vmul.f32 1.442695, %v501_v8 }
 0x190   : > { %v2996_v25 = vpop.eup %2995  ;;  %2004 = vst [vmem:[%s3627_s16 + $0x9e8] sm:$0xff] %v2994_v22  ;;  %3015 = vpow2.f32 %v1319_v14  ;;  %v503_v14 = vld [vmem:[%s3601_s3 + $0xb00] sm:$0xff]  ;;  %v1365_v19 = vmul.f32 1.442695, %v502_v11 }
 0x191   : > { %v2998_v28 = vpop.eup %2997  ;;  %2005 = vst [vmem:[%s3627_s16 + $0x9f0] sm:$0xff] %v2996_v25  ;;  %3017 = vpow2.f32 %v1321_v17  ;;  %v504_v17 = vld [vmem:[%s3601_s3 + $0xb08] sm:$0xff]  ;;  %v1367_v22 = vmul.f32 1.442695, %v503_v14 }
 0x192   : > { %v3000_v31 = vpop.eup %2999  ;;  %2006 = vst [vmem:[%s3627_s16 + $0x9f8] sm:$0xff] %v2998_v28  ;;  %3019 = vpow2.f32 %v1323_v20  ;;  %v505_v20 = vld [vmem:[%s3601_s3 + $0xb10] sm:$0xff]  ;;  %v1369_v25 = vmul.f32 1.442695, %v504_v17 }
 0x193   : > { %v3002_v34 = vpop.eup %3001  ;;  %2007 = vst [vmem:[%s3627_s16 + $0xa00] sm:$0xff] %v3000_v31  ;;  %3021 = vpow2.f32 %v1325_v23  ;;  %v506_v23 = vld [vmem:[%s3601_s3 + $0xb18] sm:$0xff]  ;;  %v1371_v28 = vmul.f32 1.442695, %v505_v20 }
 0x194   : > { %v3004_v37 = vpop.eup %3003  ;;  %2008 = vst [vmem:[%s3627_s16 + $0xa08] sm:$0xff] %v3002_v34  ;;  %3023 = vpow2.f32 %v1327_v26  ;;  %v507_v26 = vld [vmem:[%s3601_s3 + $0xb20] sm:$0xff]  ;;  %v1373_v31 = vmul.f32 1.442695, %v506_v23 }
 0x195   : > { %v3006_v40 = vpop.eup %3005  ;;  %2009 = vst [vmem:[%s3627_s16 + $0xa10] sm:$0xff] %v3004_v37  ;;  %3025 = vpow2.f32 %v1329_v29  ;;  %v508_v29 = vld [vmem:[%s3601_s3 + $0xb28] sm:$0xff]  ;;  %v1375_v34 = vmul.f32 1.442695, %v507_v26 }
 0x196   : > { %v3008_v43 = vpop.eup %3007  ;;  %2010 = vst [vmem:[%s3627_s16 + $0xa18] sm:$0xff] %v3006_v40  ;;  %3027 = vpow2.f32 %v1331_v32  ;;  %v509_v32 = vld [vmem:[%s3601_s3 + $0xb30] sm:$0xff]  ;;  %v1377_v37 = vmul.f32 1.442695, %v508_v29 }
 0x197   : > { %v3010_v46 = vpop.eup %3009  ;;  %2011 = vst [vmem:[%s3627_s16 + $0xa20] sm:$0xff] %v3008_v43  ;;  %3029 = vpow2.f32 %v1333_v35  ;;  %v510_v35 = vld [vmem:[%s3601_s3 + $0xb38] sm:$0xff]  ;;  %v1379_v40 = vmul.f32 1.442695, %v509_v32 }
 0x198   : > { %v3012_v49 = vpop.eup %3011  ;;  %2012 = vst [vmem:[%s3627_s16 + $0xa28] sm:$0xff] %v3010_v46  ;;  %3031 = vpow2.f32 %v1335_v38  ;;  %v511_v38 = vld [vmem:[%s3601_s3 + $0xb40] sm:$0xff]  ;;  %v1381_v43 = vmul.f32 1.442695, %v510_v35 }
 0x199   : > { %v3014_v52 = vpop.eup %3013  ;;  %2013 = vst [vmem:[%s3627_s16 + $0xa30] sm:$0xff] %v3012_v49  ;;  %3033 = vpow2.f32 %v1337_v41  ;;  %v512_v41 = vld [vmem:[%s3601_s3 + $0xb48] sm:$0xff]  ;;  %v1383_v46 = vmul.f32 1.442695, %v511_v38 }
 0x19a   : > { %v3016_v55 = vpop.eup %3015  ;;  %2014 = vst [vmem:[%s3627_s16 + $0xa38] sm:$0xff] %v3014_v52  ;;  %3035 = vpow2.f32 %v1339_v44  ;;  %v513_v44 = vld [vmem:[%s3601_s3 + $0xb50] sm:$0xff]  ;;  %v1385_v49 = vmul.f32 1.442695, %v512_v41 }
 0x19b   : > { %v3018_v58 = vpop.eup %3017  ;;  %2015 = vst [vmem:[%s3627_s16 + $0xa40] sm:$0xff] %v3016_v55  ;;  %3037 = vpow2.f32 %v1341_v47  ;;  %v514_v47 = vld [vmem:[%s3601_s3 + $0xb58] sm:$0xff]  ;;  %v1387_v52 = vmul.f32 1.442695, %v513_v44 }
 0x19c   : > { %v3020_v61 = vpop.eup %3019  ;;  %2016 = vst [vmem:[%s3627_s16 + $0xa48] sm:$0xff] %v3018_v58  ;;  %3039 = vpow2.f32 %v1343_v50  ;;  %v515_v50 = vld [vmem:[%s3601_s3 + $0xb60] sm:$0xff]  ;;  %v1389_v55 = vmul.f32 1.442695, %v514_v47 }
 0x19d   : > { %v3022_v0 = vpop.eup %3021  ;;  %2017 = vst [vmem:[%s3627_s16 + $0xa50] sm:$0xff] %v3020_v61  ;;  %3041 = vpow2.f32 %v1345_v53  ;;  %v516_v53 = vld [vmem:[%s3601_s3 + $0xb68] sm:$0xff]  ;;  %v1391_v58 = vmul.f32 1.442695, %v515_v50 }
 0x19e   : > { %v3024_v3 = vpop.eup %3023  ;;  %2018 = vst [vmem:[%s3627_s16 + $0xa58] sm:$0xff] %v3022_v0  ;;  %3043 = vpow2.f32 %v1347_v56  ;;  %v517_v56 = vld [vmem:[%s3601_s3 + $0xb70] sm:$0xff]  ;;  %v1393_v61 = vmul.f32 1.442695, %v516_v53 }
 0x19f   : > { %v3026_v6 = vpop.eup %3025  ;;  %2019 = vst [vmem:[%s3627_s16 + $0xa60] sm:$0xff] %v3024_v3  ;;  %3045 = vpow2.f32 %v1349_v59  ;;  %v518_v59 = vld [vmem:[%s3601_s3 + $0xb78] sm:$0xff]  ;;  %v1395_v0 = vmul.f32 1.442695, %v517_v56 }
 0x1a0   : > { %v3028_v9 = vpop.eup %3027  ;;  %2020 = vst [vmem:[%s3627_s16 + $0xa68] sm:$0xff] %v3026_v6  ;;  %3047 = vpow2.f32 %v1351_v62  ;;  %v519_v62 = vld [vmem:[%s3601_s3 + $0xb80] sm:$0xff]  ;;  %v1397_v3 = vmul.f32 1.442695, %v518_v59 }
 0x1a1   : > { %v3030_v12 = vpop.eup %3029  ;;  %2021 = vst [vmem:[%s3627_s16 + $0xa70] sm:$0xff] %v3028_v9  ;;  %3049 = vpow2.f32 %v1353_v1  ;;  %v520_v1 = vld [vmem:[%s3601_s3 + $0xb88] sm:$0xff]  ;;  %v1399_v6 = vmul.f32 1.442695, %v519_v62 }
 0x1a2   : > { %v3032_v15 = vpop.eup %3031  ;;  %2022 = vst [vmem:[%s3627_s16 + $0xa78] sm:$0xff] %v3030_v12  ;;  %3051 = vpow2.f32 %v1355_v4  ;;  %v521_v4 = vld [vmem:[%s3601_s3 + $0xb90] sm:$0xff]  ;;  %v1401_v9 = vmul.f32 1.442695, %v520_v1 }
 0x1a3   : > { %v3034_v18 = vpop.eup %3033  ;;  %2023 = vst [vmem:[%s3627_s16 + $0xa80] sm:$0xff] %v3032_v15  ;;  %3053 = vpow2.f32 %v1357_v7  ;;  %v522_v7 = vld [vmem:[%s3601_s3 + $0xb98] sm:$0xff]  ;;  %v1403_v12 = vmul.f32 1.442695, %v521_v4 }
 0x1a4   : > { %v3036_v21 = vpop.eup %3035  ;;  %2024 = vst [vmem:[%s3627_s16 + $0xa88] sm:$0xff] %v3034_v18  ;;  %3055 = vpow2.f32 %v1359_v10  ;;  %v523_v10 = vld [vmem:[%s3601_s3 + $0xba0] sm:$0xff]  ;;  %v1405_v15 = vmul.f32 1.442695, %v522_v7 }
 0x1a5   : > { %v3038_v24 = vpop.eup %3037  ;;  %2025 = vst [vmem:[%s3627_s16 + $0xa90] sm:$0xff] %v3036_v21  ;;  %3057 = vpow2.f32 %v1361_v13  ;;  %v524_v13 = vld [vmem:[%s3601_s3 + $0xba8] sm:$0xff]  ;;  %v1407_v18 = vmul.f32 1.442695, %v523_v10 }
 0x1a6   : > { %v3040_v27 = vpop.eup %3039  ;;  %2026 = vst [vmem:[%s3627_s16 + $0xa98] sm:$0xff] %v3038_v24  ;;  %3059 = vpow2.f32 %v1363_v16  ;;  %v525_v16 = vld [vmem:[%s3601_s3 + $0xbb0] sm:$0xff]  ;;  %v1409_v21 = vmul.f32 1.442695, %v524_v13 }
 0x1a7   : > { %v3042_v30 = vpop.eup %3041  ;;  %2027 = vst [vmem:[%s3627_s16 + $0xaa0] sm:$0xff] %v3040_v27  ;;  %3061 = vpow2.f32 %v1365_v19  ;;  %v526_v19 = vld [vmem:[%s3601_s3 + $0xbb8] sm:$0xff]  ;;  %v1411_v24 = vmul.f32 1.442695, %v525_v16 }
 0x1a8   : > { %v3044_v33 = vpop.eup %3043  ;;  %2028 = vst [vmem:[%s3627_s16 + $0xaa8] sm:$0xff] %v3042_v30  ;;  %3063 = vpow2.f32 %v1367_v22  ;;  %v527_v22 = vld [vmem:[%s3601_s3 + $0xbc0] sm:$0xff]  ;;  %v1413_v27 = vmul.f32 1.442695, %v526_v19 }
 0x1a9   : > { %v3046_v36 = vpop.eup %3045  ;;  %2029 = vst [vmem:[%s3627_s16 + $0xab0] sm:$0xff] %v3044_v33  ;;  %3065 = vpow2.f32 %v1369_v25  ;;  %v528_v25 = vld [vmem:[%s3601_s3 + $0xbc8] sm:$0xff]  ;;  %v1415_v30 = vmul.f32 1.442695, %v527_v22 }
 0x1aa   : > { %v3048_v39 = vpop.eup %3047  ;;  %2030 = vst [vmem:[%s3627_s16 + $0xab8] sm:$0xff] %v3046_v36  ;;  %3067 = vpow2.f32 %v1371_v28  ;;  %v529_v28 = vld [vmem:[%s3601_s3 + $0xbd0] sm:$0xff]  ;;  %v1417_v33 = vmul.f32 1.442695, %v528_v25 }
 0x1ab   : > { %v3050_v42 = vpop.eup %3049  ;;  %2031 = vst [vmem:[%s3627_s16 + $0xac0] sm:$0xff] %v3048_v39  ;;  %3069 = vpow2.f32 %v1373_v31  ;;  %v530_v31 = vld [vmem:[%s3601_s3 + $0xbd8] sm:$0xff]  ;;  %v1419_v36 = vmul.f32 1.442695, %v529_v28 }
 0x1ac   : > { %v3052_v45 = vpop.eup %3051  ;;  %2032 = vst [vmem:[%s3627_s16 + $0xac8] sm:$0xff] %v3050_v42  ;;  %3071 = vpow2.f32 %v1375_v34  ;;  %v531_v34 = vld [vmem:[%s3601_s3 + $0xbe0] sm:$0xff]  ;;  %v1421_v39 = vmul.f32 1.442695, %v530_v31 }
 0x1ad   : > { %v3054_v48 = vpop.eup %3053  ;;  %2033 = vst [vmem:[%s3627_s16 + $0xad0] sm:$0xff] %v3052_v45  ;;  %3073 = vpow2.f32 %v1377_v37  ;;  %v532_v37 = vld [vmem:[%s3601_s3 + $0xbe8] sm:$0xff]  ;;  %v1423_v42 = vmul.f32 1.442695, %v531_v34 }
 0x1ae   : > { %v3056_v51 = vpop.eup %3055  ;;  %2034 = vst [vmem:[%s3627_s16 + $0xad8] sm:$0xff] %v3054_v48  ;;  %3075 = vpow2.f32 %v1379_v40  ;;  %v533_v40 = vld [vmem:[%s3601_s3 + $0xbf0] sm:$0xff]  ;;  %v1425_v45 = vmul.f32 1.442695, %v532_v37 }
 0x1af   : > { %v3058_v54 = vpop.eup %3057  ;;  %2035 = vst [vmem:[%s3627_s16 + $0xae0] sm:$0xff] %v3056_v51  ;;  %3077 = vpow2.f32 %v1381_v43  ;;  %v534_v43 = vld [vmem:[%s3601_s3 + $0xbf8] sm:$0xff]  ;;  %v1427_v48 = vmul.f32 1.442695, %v533_v40 }
 0x1b0   : > { %v3060_v57 = vpop.eup %3059  ;;  %2036 = vst [vmem:[%s3627_s16 + $0xae8] sm:$0xff] %v3058_v54  ;;  %3079 = vpow2.f32 %v1383_v46  ;;  %v535_v46 = vld [vmem:[%s3601_s3 + $0xc00] sm:$0xff]  ;;  %v1429_v51 = vmul.f32 1.442695, %v534_v43 }
 0x1b1   : > { %v3062_v60 = vpop.eup %3061  ;;  %2037 = vst [vmem:[%s3627_s16 + $0xaf0] sm:$0xff] %v3060_v57  ;;  %3081 = vpow2.f32 %v1385_v49  ;;  %v536_v49 = vld [vmem:[%s3601_s3 + $0xc08] sm:$0xff]  ;;  %v1431_v54 = vmul.f32 1.442695, %v535_v46 }
 0x1b2   : > { %v3064_v63 = vpop.eup %3063  ;;  %2038 = vst [vmem:[%s3627_s16 + $0xaf8] sm:$0xff] %v3062_v60  ;;  %3083 = vpow2.f32 %v1387_v52  ;;  %v537_v52 = vld [vmem:[%s3601_s3 + $0xc10] sm:$0xff]  ;;  %v1433_v57 = vmul.f32 1.442695, %v536_v49 }
 0x1b3   : > { %v3066_v2 = vpop.eup %3065  ;;  %2039 = vst [vmem:[%s3627_s16 + $0xb00] sm:$0xff] %v3064_v63  ;;  %3085 = vpow2.f32 %v1389_v55  ;;  %v538_v55 = vld [vmem:[%s3601_s3 + $0xc18] sm:$0xff]  ;;  %v1435_v60 = vmul.f32 1.442695, %v537_v52 }
 0x1b4   : > { %v3068_v5 = vpop.eup %3067  ;;  %2040 = vst [vmem:[%s3627_s16 + $0xb08] sm:$0xff] %v3066_v2  ;;  %3087 = vpow2.f32 %v1391_v58  ;;  %v539_v58 = vld [vmem:[%s3601_s3 + $0xc20] sm:$0xff]  ;;  %v1437_v63 = vmul.f32 1.442695, %v538_v55 }
 0x1b5   : > { %v3070_v8 = vpop.eup %3069  ;;  %2041 = vst [vmem:[%s3627_s16 + $0xb10] sm:$0xff] %v3068_v5  ;;  %3089 = vpow2.f32 %v1393_v61  ;;  %v540_v61 = vld [vmem:[%s3601_s3 + $0xc28] sm:$0xff]  ;;  %v1439_v2 = vmul.f32 1.442695, %v539_v58 }
 0x1b6   : > { %v3072_v11 = vpop.eup %3071  ;;  %2042 = vst [vmem:[%s3627_s16 + $0xb18] sm:$0xff] %v3070_v8  ;;  %3091 = vpow2.f32 %v1395_v0  ;;  %v541_v0 = vld [vmem:[%s3601_s3 + $0xc30] sm:$0xff]  ;;  %v1441_v5 = vmul.f32 1.442695, %v540_v61 }
 0x1b7   : > { %v3074_v14 = vpop.eup %3073  ;;  %2043 = vst [vmem:[%s3627_s16 + $0xb20] sm:$0xff] %v3072_v11  ;;  %3093 = vpow2.f32 %v1397_v3  ;;  %v542_v3 = vld [vmem:[%s3601_s3 + $0xc38] sm:$0xff]  ;;  %v1443_v8 = vmul.f32 1.442695, %v541_v0 }
 0x1b8   : > { %v3076_v17 = vpop.eup %3075  ;;  %2044 = vst [vmem:[%s3627_s16 + $0xb28] sm:$0xff] %v3074_v14  ;;  %3095 = vpow2.f32 %v1399_v6  ;;  %v543_v6 = vld [vmem:[%s3601_s3 + $0xc40] sm:$0xff]  ;;  %v1445_v11 = vmul.f32 1.442695, %v542_v3 }
 0x1b9   : > { %v3078_v20 = vpop.eup %3077  ;;  %2045 = vst [vmem:[%s3627_s16 + $0xb30] sm:$0xff] %v3076_v17  ;;  %3097 = vpow2.f32 %v1401_v9  ;;  %v544_v9 = vld [vmem:[%s3601_s3 + $0xc48] sm:$0xff]  ;;  %v1447_v14 = vmul.f32 1.442695, %v543_v6 }
 0x1ba   : > { %v3080_v23 = vpop.eup %3079  ;;  %2046 = vst [vmem:[%s3627_s16 + $0xb38] sm:$0xff] %v3078_v20  ;;  %3099 = vpow2.f32 %v1403_v12  ;;  %v545_v12 = vld [vmem:[%s3601_s3 + $0xc50] sm:$0xff]  ;;  %v1449_v17 = vmul.f32 1.442695, %v544_v9 }
 0x1bb   : > { %v3082_v26 = vpop.eup %3081  ;;  %2047 = vst [vmem:[%s3627_s16 + $0xb40] sm:$0xff] %v3080_v23  ;;  %3101 = vpow2.f32 %v1405_v15  ;;  %v546_v15 = vld [vmem:[%s3601_s3 + $0xc58] sm:$0xff]  ;;  %v1451_v20 = vmul.f32 1.442695, %v545_v12 }
 0x1bc   : > { %v3084_v29 = vpop.eup %3083  ;;  %2048 = vst [vmem:[%s3627_s16 + $0xb48] sm:$0xff] %v3082_v26  ;;  %3103 = vpow2.f32 %v1407_v18  ;;  %v547_v18 = vld [vmem:[%s3601_s3 + $0xc60] sm:$0xff]  ;;  %v1453_v23 = vmul.f32 1.442695, %v546_v15 }
 0x1bd   : > { %v3086_v32 = vpop.eup %3085  ;;  %2049 = vst [vmem:[%s3627_s16 + $0xb50] sm:$0xff] %v3084_v29  ;;  %3105 = vpow2.f32 %v1409_v21  ;;  %v548_v21 = vld [vmem:[%s3601_s3 + $0xc68] sm:$0xff]  ;;  %v1455_v26 = vmul.f32 1.442695, %v547_v18 }
 0x1be   : > { %v3088_v35 = vpop.eup %3087  ;;  %2050 = vst [vmem:[%s3627_s16 + $0xb58] sm:$0xff] %v3086_v32  ;;  %3107 = vpow2.f32 %v1411_v24  ;;  %v549_v24 = vld [vmem:[%s3601_s3 + $0xc70] sm:$0xff]  ;;  %v1457_v29 = vmul.f32 1.442695, %v548_v21 }
 0x1bf   : > { %v3090_v38 = vpop.eup %3089  ;;  %2051 = vst [vmem:[%s3627_s16 + $0xb60] sm:$0xff] %v3088_v35  ;;  %3109 = vpow2.f32 %v1413_v27  ;;  %v550_v27 = vld [vmem:[%s3601_s3 + $0xc78] sm:$0xff]  ;;  %v1459_v32 = vmul.f32 1.442695, %v549_v24 }
 0x1c0   : > { %v3092_v41 = vpop.eup %3091  ;;  %2052 = vst [vmem:[%s3627_s16 + $0xb68] sm:$0xff] %v3090_v38  ;;  %3111 = vpow2.f32 %v1415_v30  ;;  %v551_v30 = vld [vmem:[%s3601_s3 + $0xc80] sm:$0xff]  ;;  %v1461_v35 = vmul.f32 1.442695, %v550_v27 }
 0x1c1   : > { %v3094_v44 = vpop.eup %3093  ;;  %2053 = vst [vmem:[%s3627_s16 + $0xb70] sm:$0xff] %v3092_v41  ;;  %3113 = vpow2.f32 %v1417_v33  ;;  %v552_v33 = vld [vmem:[%s3601_s3 + $0xc88] sm:$0xff]  ;;  %v1463_v38 = vmul.f32 1.442695, %v551_v30 }
 0x1c2   : > { %v3096_v47 = vpop.eup %3095  ;;  %2054 = vst [vmem:[%s3627_s16 + $0xb78] sm:$0xff] %v3094_v44  ;;  %3115 = vpow2.f32 %v1419_v36  ;;  %v553_v36 = vld [vmem:[%s3601_s3 + $0xc90] sm:$0xff]  ;;  %v1465_v41 = vmul.f32 1.442695, %v552_v33 }
 0x1c3   : > { %v3098_v50 = vpop.eup %3097  ;;  %2055 = vst [vmem:[%s3627_s16 + $0xb80] sm:$0xff] %v3096_v47  ;;  %3117 = vpow2.f32 %v1421_v39  ;;  %v554_v39 = vld [vmem:[%s3601_s3 + $0xc98] sm:$0xff]  ;;  %v1467_v44 = vmul.f32 1.442695, %v553_v36 }
 0x1c4   : > { %v3100_v53 = vpop.eup %3099  ;;  %2056 = vst [vmem:[%s3627_s16 + $0xb88] sm:$0xff] %v3098_v50  ;;  %3119 = vpow2.f32 %v1423_v42  ;;  %v555_v42 = vld [vmem:[%s3601_s3 + $0xca0] sm:$0xff]  ;;  %v1469_v47 = vmul.f32 1.442695, %v554_v39 }
 0x1c5   : > { %v3102_v56 = vpop.eup %3101  ;;  %2057 = vst [vmem:[%s3627_s16 + $0xb90] sm:$0xff] %v3100_v53  ;;  %3121 = vpow2.f32 %v1425_v45  ;;  %v556_v45 = vld [vmem:[%s3601_s3 + $0xca8] sm:$0xff]  ;;  %v1471_v50 = vmul.f32 1.442695, %v555_v42 }
 0x1c6   : > { %v3104_v59 = vpop.eup %3103  ;;  %2058 = vst [vmem:[%s3627_s16 + $0xb98] sm:$0xff] %v3102_v56  ;;  %3123 = vpow2.f32 %v1427_v48  ;;  %v557_v48 = vld [vmem:[%s3601_s3 + $0xcb0] sm:$0xff]  ;;  %v1473_v53 = vmul.f32 1.442695, %v556_v45 }
 0x1c7   : > { %v3106_v62 = vpop.eup %3105  ;;  %2059 = vst [vmem:[%s3627_s16 + $0xba0] sm:$0xff] %v3104_v59  ;;  %3125 = vpow2.f32 %v1429_v51  ;;  %v558_v51 = vld [vmem:[%s3601_s3 + $0xcb8] sm:$0xff]  ;;  %v1475_v56 = vmul.f32 1.442695, %v557_v48 }
 0x1c8   : > { %v3108_v1 = vpop.eup %3107  ;;  %2060 = vst [vmem:[%s3627_s16 + $0xba8] sm:$0xff] %v3106_v62  ;;  %3127 = vpow2.f32 %v1431_v54  ;;  %v559_v54 = vld [vmem:[%s3601_s3 + $0xcc0] sm:$0xff]  ;;  %v1477_v59 = vmul.f32 1.442695, %v558_v51 }
 0x1c9   : > { %v3110_v4 = vpop.eup %3109  ;;  %2061 = vst [vmem:[%s3627_s16 + $0xbb0] sm:$0xff] %v3108_v1  ;;  %3129 = vpow2.f32 %v1433_v57  ;;  %v560_v57 = vld [vmem:[%s3601_s3 + $0xcc8] sm:$0xff]  ;;  %v1479_v62 = vmul.f32 1.442695, %v559_v54 }
 0x1ca   : > { %v3112_v7 = vpop.eup %3111  ;;  %2062 = vst [vmem:[%s3627_s16 + $0xbb8] sm:$0xff] %v3110_v4  ;;  %3131 = vpow2.f32 %v1435_v60  ;;  %v561_v60 = vld [vmem:[%s3601_s3 + $0xcd0] sm:$0xff]  ;;  %v1481_v1 = vmul.f32 1.442695, %v560_v57 }
 0x1cb   : > { %v3114_v10 = vpop.eup %3113  ;;  %2063 = vst [vmem:[%s3627_s16 + $0xbc0] sm:$0xff] %v3112_v7  ;;  %3133 = vpow2.f32 %v1437_v63  ;;  %v562_v63 = vld [vmem:[%s3601_s3 + $0xcd8] sm:$0xff]  ;;  %v1483_v4 = vmul.f32 1.442695, %v561_v60 }
 0x1cc   : > { %v3116_v13 = vpop.eup %3115  ;;  %2064 = vst [vmem:[%s3627_s16 + $0xbc8] sm:$0xff] %v3114_v10  ;;  %3135 = vpow2.f32 %v1439_v2  ;;  %v563_v2 = vld [vmem:[%s3601_s3 + $0xce0] sm:$0xff]  ;;  %v1485_v7 = vmul.f32 1.442695, %v562_v63 }
 0x1cd   : > { %v3118_v16 = vpop.eup %3117  ;;  %2065 = vst [vmem:[%s3627_s16 + $0xbd0] sm:$0xff] %v3116_v13  ;;  %3137 = vpow2.f32 %v1441_v5  ;;  %v564_v5 = vld [vmem:[%s3601_s3 + $0xce8] sm:$0xff]  ;;  %v1487_v10 = vmul.f32 1.442695, %v563_v2 }
 0x1ce   : > { %v3120_v19 = vpop.eup %3119  ;;  %2066 = vst [vmem:[%s3627_s16 + $0xbd8] sm:$0xff] %v3118_v16  ;;  %3139 = vpow2.f32 %v1443_v8  ;;  %v565_v8 = vld [vmem:[%s3601_s3 + $0xcf0] sm:$0xff]  ;;  %v1489_v13 = vmul.f32 1.442695, %v564_v5 }
 0x1cf   : > { %v3122_v22 = vpop.eup %3121  ;;  %2067 = vst [vmem:[%s3627_s16 + $0xbe0] sm:$0xff] %v3120_v19  ;;  %3141 = vpow2.f32 %v1445_v11  ;;  %v566_v11 = vld [vmem:[%s3601_s3 + $0xcf8] sm:$0xff]  ;;  %v1491_v16 = vmul.f32 1.442695, %v565_v8 }
 0x1d0   : > { %v3124_v25 = vpop.eup %3123  ;;  %2068 = vst [vmem:[%s3627_s16 + $0xbe8] sm:$0xff] %v3122_v22  ;;  %3143 = vpow2.f32 %v1447_v14  ;;  %v567_v14 = vld [vmem:[%s3601_s3 + $0xd00] sm:$0xff]  ;;  %v1493_v19 = vmul.f32 1.442695, %v566_v11 }
 0x1d1   : > { %v3126_v28 = vpop.eup %3125  ;;  %2069 = vst [vmem:[%s3627_s16 + $0xbf0] sm:$0xff] %v3124_v25  ;;  %3145 = vpow2.f32 %v1449_v17  ;;  %v568_v17 = vld [vmem:[%s3601_s3 + $0xd08] sm:$0xff]  ;;  %v1495_v22 = vmul.f32 1.442695, %v567_v14 }
 0x1d2   : > { %v3128_v31 = vpop.eup %3127  ;;  %2070 = vst [vmem:[%s3627_s16 + $0xbf8] sm:$0xff] %v3126_v28  ;;  %3147 = vpow2.f32 %v1451_v20  ;;  %v569_v20 = vld [vmem:[%s3601_s3 + $0xd10] sm:$0xff]  ;;  %v1497_v25 = vmul.f32 1.442695, %v568_v17 }
 0x1d3   : > { %v3130_v34 = vpop.eup %3129  ;;  %2071 = vst [vmem:[%s3627_s16 + $0xc00] sm:$0xff] %v3128_v31  ;;  %3149 = vpow2.f32 %v1453_v23  ;;  %v570_v23 = vld [vmem:[%s3601_s3 + $0xd18] sm:$0xff]  ;;  %v1499_v28 = vmul.f32 1.442695, %v569_v20 }
 0x1d4   : > { %v3132_v37 = vpop.eup %3131  ;;  %2072 = vst [vmem:[%s3627_s16 + $0xc08] sm:$0xff] %v3130_v34  ;;  %3151 = vpow2.f32 %v1455_v26  ;;  %v571_v26 = vld [vmem:[%s3601_s3 + $0xd20] sm:$0xff]  ;;  %v1501_v31 = vmul.f32 1.442695, %v570_v23 }
 0x1d5   : > { %v3134_v40 = vpop.eup %3133  ;;  %2073 = vst [vmem:[%s3627_s16 + $0xc10] sm:$0xff] %v3132_v37  ;;  %3153 = vpow2.f32 %v1457_v29  ;;  %v572_v29 = vld [vmem:[%s3601_s3 + $0xd28] sm:$0xff]  ;;  %v1503_v34 = vmul.f32 1.442695, %v571_v26 }
 0x1d6   : > { %v3136_v43 = vpop.eup %3135  ;;  %2074 = vst [vmem:[%s3627_s16 + $0xc18] sm:$0xff] %v3134_v40  ;;  %3155 = vpow2.f32 %v1459_v32  ;;  %v573_v32 = vld [vmem:[%s3601_s3 + $0xd30] sm:$0xff]  ;;  %v1505_v37 = vmul.f32 1.442695, %v572_v29 }
 0x1d7   : > { %v3138_v46 = vpop.eup %3137  ;;  %2075 = vst [vmem:[%s3627_s16 + $0xc20] sm:$0xff] %v3136_v43  ;;  %3157 = vpow2.f32 %v1461_v35  ;;  %v574_v35 = vld [vmem:[%s3601_s3 + $0xd38] sm:$0xff]  ;;  %v1507_v40 = vmul.f32 1.442695, %v573_v32 }
 0x1d8   : > { %v3140_v49 = vpop.eup %3139  ;;  %2076 = vst [vmem:[%s3627_s16 + $0xc28] sm:$0xff] %v3138_v46  ;;  %3159 = vpow2.f32 %v1463_v38  ;;  %v575_v38 = vld [vmem:[%s3601_s3 + $0xd40] sm:$0xff]  ;;  %v1509_v43 = vmul.f32 1.442695, %v574_v35 }
 0x1d9   : > { %v3142_v52 = vpop.eup %3141  ;;  %2077 = vst [vmem:[%s3627_s16 + $0xc30] sm:$0xff] %v3140_v49  ;;  %3161 = vpow2.f32 %v1465_v41  ;;  %v576_v41 = vld [vmem:[%s3601_s3 + $0xd48] sm:$0xff]  ;;  %v1511_v46 = vmul.f32 1.442695, %v575_v38 }
 0x1da   : > { %v3144_v55 = vpop.eup %3143  ;;  %2078 = vst [vmem:[%s3627_s16 + $0xc38] sm:$0xff] %v3142_v52  ;;  %3163 = vpow2.f32 %v1467_v44  ;;  %v577_v44 = vld [vmem:[%s3601_s3 + $0xd50] sm:$0xff]  ;;  %v1513_v49 = vmul.f32 1.442695, %v576_v41 }
 0x1db   : > { %v3146_v58 = vpop.eup %3145  ;;  %2079 = vst [vmem:[%s3627_s16 + $0xc40] sm:$0xff] %v3144_v55  ;;  %3165 = vpow2.f32 %v1469_v47  ;;  %v578_v47 = vld [vmem:[%s3601_s3 + $0xd58] sm:$0xff]  ;;  %v1515_v52 = vmul.f32 1.442695, %v577_v44 }
 0x1dc   : > { %v3148_v61 = vpop.eup %3147  ;;  %2080 = vst [vmem:[%s3627_s16 + $0xc48] sm:$0xff] %v3146_v58  ;;  %3167 = vpow2.f32 %v1471_v50  ;;  %v579_v50 = vld [vmem:[%s3601_s3 + $0xd60] sm:$0xff]  ;;  %v1517_v55 = vmul.f32 1.442695, %v578_v47 }
 0x1dd   : > { %v3150_v0 = vpop.eup %3149  ;;  %2081 = vst [vmem:[%s3627_s16 + $0xc50] sm:$0xff] %v3148_v61  ;;  %3169 = vpow2.f32 %v1473_v53  ;;  %v580_v53 = vld [vmem:[%s3601_s3 + $0xd68] sm:$0xff]  ;;  %v1519_v58 = vmul.f32 1.442695, %v579_v50 }
 0x1de   : > { %v3152_v3 = vpop.eup %3151  ;;  %2082 = vst [vmem:[%s3627_s16 + $0xc58] sm:$0xff] %v3150_v0  ;;  %3171 = vpow2.f32 %v1475_v56  ;;  %v581_v56 = vld [vmem:[%s3601_s3 + $0xd70] sm:$0xff]  ;;  %v1521_v61 = vmul.f32 1.442695, %v580_v53 }
 0x1df   : > { %v3154_v6 = vpop.eup %3153  ;;  %2083 = vst [vmem:[%s3627_s16 + $0xc60] sm:$0xff] %v3152_v3  ;;  %3173 = vpow2.f32 %v1477_v59  ;;  %v582_v59 = vld [vmem:[%s3601_s3 + $0xd78] sm:$0xff]  ;;  %v1523_v0 = vmul.f32 1.442695, %v581_v56 }
 0x1e0   : > { %v3156_v9 = vpop.eup %3155  ;;  %2084 = vst [vmem:[%s3627_s16 + $0xc68] sm:$0xff] %v3154_v6  ;;  %3175 = vpow2.f32 %v1479_v62  ;;  %v583_v62 = vld [vmem:[%s3601_s3 + $0xd80] sm:$0xff]  ;;  %v1525_v3 = vmul.f32 1.442695, %v582_v59 }
 0x1e1   : > { %v3158_v12 = vpop.eup %3157  ;;  %2085 = vst [vmem:[%s3627_s16 + $0xc70] sm:$0xff] %v3156_v9  ;;  %3177 = vpow2.f32 %v1481_v1  ;;  %v584_v1 = vld [vmem:[%s3601_s3 + $0xd88] sm:$0xff]  ;;  %v1527_v6 = vmul.f32 1.442695, %v583_v62 }
 0x1e2   : > { %v3160_v15 = vpop.eup %3159  ;;  %2086 = vst [vmem:[%s3627_s16 + $0xc78] sm:$0xff] %v3158_v12  ;;  %3179 = vpow2.f32 %v1483_v4  ;;  %v585_v4 = vld [vmem:[%s3601_s3 + $0xd90] sm:$0xff]  ;;  %v1529_v9 = vmul.f32 1.442695, %v584_v1 }
 0x1e3   : > { %v3162_v18 = vpop.eup %3161  ;;  %2087 = vst [vmem:[%s3627_s16 + $0xc80] sm:$0xff] %v3160_v15  ;;  %3181 = vpow2.f32 %v1485_v7  ;;  %v586_v7 = vld [vmem:[%s3601_s3 + $0xd98] sm:$0xff]  ;;  %v1531_v12 = vmul.f32 1.442695, %v585_v4 }
 0x1e4   : > { %v3164_v21 = vpop.eup %3163  ;;  %2088 = vst [vmem:[%s3627_s16 + $0xc88] sm:$0xff] %v3162_v18  ;;  %3183 = vpow2.f32 %v1487_v10  ;;  %v587_v10 = vld [vmem:[%s3601_s3 + $0xda0] sm:$0xff]  ;;  %v1533_v15 = vmul.f32 1.442695, %v586_v7 }
 0x1e5   : > { %v3166_v24 = vpop.eup %3165  ;;  %2089 = vst [vmem:[%s3627_s16 + $0xc90] sm:$0xff] %v3164_v21  ;;  %3185 = vpow2.f32 %v1489_v13  ;;  %v588_v13 = vld [vmem:[%s3601_s3 + $0xda8] sm:$0xff]  ;;  %v1535_v18 = vmul.f32 1.442695, %v587_v10 }
 0x1e6   : > { %v3168_v27 = vpop.eup %3167  ;;  %2090 = vst [vmem:[%s3627_s16 + $0xc98] sm:$0xff] %v3166_v24  ;;  %3187 = vpow2.f32 %v1491_v16  ;;  %v589_v16 = vld [vmem:[%s3601_s3 + $0xdb0] sm:$0xff]  ;;  %v1537_v21 = vmul.f32 1.442695, %v588_v13 }
 0x1e7   : > { %v3170_v30 = vpop.eup %3169  ;;  %2091 = vst [vmem:[%s3627_s16 + $0xca0] sm:$0xff] %v3168_v27  ;;  %3189 = vpow2.f32 %v1493_v19  ;;  %v590_v19 = vld [vmem:[%s3601_s3 + $0xdb8] sm:$0xff]  ;;  %v1539_v24 = vmul.f32 1.442695, %v589_v16 }
 0x1e8   : > { %v3172_v33 = vpop.eup %3171  ;;  %2092 = vst [vmem:[%s3627_s16 + $0xca8] sm:$0xff] %v3170_v30  ;;  %3191 = vpow2.f32 %v1495_v22  ;;  %v591_v22 = vld [vmem:[%s3601_s3 + $0xdc0] sm:$0xff]  ;;  %v1541_v27 = vmul.f32 1.442695, %v590_v19 }
 0x1e9   : > { %v3174_v36 = vpop.eup %3173  ;;  %2093 = vst [vmem:[%s3627_s16 + $0xcb0] sm:$0xff] %v3172_v33  ;;  %3193 = vpow2.f32 %v1497_v25  ;;  %v592_v25 = vld [vmem:[%s3601_s3 + $0xdc8] sm:$0xff]  ;;  %v1543_v30 = vmul.f32 1.442695, %v591_v22 }
 0x1ea   : > { %v3176_v39 = vpop.eup %3175  ;;  %2094 = vst [vmem:[%s3627_s16 + $0xcb8] sm:$0xff] %v3174_v36  ;;  %3195 = vpow2.f32 %v1499_v28  ;;  %v593_v28 = vld [vmem:[%s3601_s3 + $0xdd0] sm:$0xff]  ;;  %v1545_v33 = vmul.f32 1.442695, %v592_v25 }
 0x1eb   : > { %v3178_v42 = vpop.eup %3177  ;;  %2095 = vst [vmem:[%s3627_s16 + $0xcc0] sm:$0xff] %v3176_v39  ;;  %3197 = vpow2.f32 %v1501_v31  ;;  %v594_v31 = vld [vmem:[%s3601_s3 + $0xdd8] sm:$0xff]  ;;  %v1547_v36 = vmul.f32 1.442695, %v593_v28 }
 0x1ec   : > { %v3180_v45 = vpop.eup %3179  ;;  %2096 = vst [vmem:[%s3627_s16 + $0xcc8] sm:$0xff] %v3178_v42  ;;  %3199 = vpow2.f32 %v1503_v34  ;;  %v595_v34 = vld [vmem:[%s3601_s3 + $0xde0] sm:$0xff]  ;;  %v1549_v39 = vmul.f32 1.442695, %v594_v31 }
 0x1ed   : > { %v3182_v48 = vpop.eup %3181  ;;  %2097 = vst [vmem:[%s3627_s16 + $0xcd0] sm:$0xff] %v3180_v45  ;;  %3201 = vpow2.f32 %v1505_v37  ;;  %v596_v37 = vld [vmem:[%s3601_s3 + $0xde8] sm:$0xff]  ;;  %v1551_v42 = vmul.f32 1.442695, %v595_v34 }
 0x1ee   : > { %v3184_v51 = vpop.eup %3183  ;;  %2098 = vst [vmem:[%s3627_s16 + $0xcd8] sm:$0xff] %v3182_v48  ;;  %3203 = vpow2.f32 %v1507_v40  ;;  %v597_v40 = vld [vmem:[%s3601_s3 + $0xdf0] sm:$0xff]  ;;  %v1553_v45 = vmul.f32 1.442695, %v596_v37 }
 0x1ef   : > { %v3186_v54 = vpop.eup %3185  ;;  %2099 = vst [vmem:[%s3627_s16 + $0xce0] sm:$0xff] %v3184_v51  ;;  %3205 = vpow2.f32 %v1509_v43  ;;  %v598_v43 = vld [vmem:[%s3601_s3 + $0xdf8] sm:$0xff]  ;;  %v1555_v48 = vmul.f32 1.442695, %v597_v40 }
 0x1f0   : > { %v3188_v57 = vpop.eup %3187  ;;  %2100 = vst [vmem:[%s3627_s16 + $0xce8] sm:$0xff] %v3186_v54  ;;  %3207 = vpow2.f32 %v1511_v46  ;;  %v599_v46 = vld [vmem:[%s3601_s3 + $0xe00] sm:$0xff]  ;;  %v1557_v51 = vmul.f32 1.442695, %v598_v43 }
 0x1f1   : > { %v3190_v60 = vpop.eup %3189  ;;  %2101 = vst [vmem:[%s3627_s16 + $0xcf0] sm:$0xff] %v3188_v57  ;;  %3209 = vpow2.f32 %v1513_v49  ;;  %v600_v49 = vld [vmem:[%s3601_s3 + $0xe08] sm:$0xff]  ;;  %v1559_v54 = vmul.f32 1.442695, %v599_v46 }
 0x1f2   : > { %v3192_v63 = vpop.eup %3191  ;;  %2102 = vst [vmem:[%s3627_s16 + $0xcf8] sm:$0xff] %v3190_v60  ;;  %3211 = vpow2.f32 %v1515_v52  ;;  %v601_v52 = vld [vmem:[%s3601_s3 + $0xe10] sm:$0xff]  ;;  %v1561_v57 = vmul.f32 1.442695, %v600_v49 }
 0x1f3   : > { %v3194_v2 = vpop.eup %3193  ;;  %2103 = vst [vmem:[%s3627_s16 + $0xd00] sm:$0xff] %v3192_v63  ;;  %3213 = vpow2.f32 %v1517_v55  ;;  %v602_v55 = vld [vmem:[%s3601_s3 + $0xe18] sm:$0xff]  ;;  %v1563_v60 = vmul.f32 1.442695, %v601_v52 }
 0x1f4   : > { %v3196_v5 = vpop.eup %3195  ;;  %2104 = vst [vmem:[%s3627_s16 + $0xd08] sm:$0xff] %v3194_v2  ;;  %3215 = vpow2.f32 %v1519_v58  ;;  %v603_v58 = vld [vmem:[%s3601_s3 + $0xe20] sm:$0xff]  ;;  %v1565_v63 = vmul.f32 1.442695, %v602_v55 }
 0x1f5   : > { %v3198_v8 = vpop.eup %3197  ;;  %2105 = vst [vmem:[%s3627_s16 + $0xd10] sm:$0xff] %v3196_v5  ;;  %3217 = vpow2.f32 %v1521_v61  ;;  %v604_v61 = vld [vmem:[%s3601_s3 + $0xe28] sm:$0xff]  ;;  %v1567_v2 = vmul.f32 1.442695, %v603_v58 }
 0x1f6   : > { %v3200_v11 = vpop.eup %3199  ;;  %2106 = vst [vmem:[%s3627_s16 + $0xd18] sm:$0xff] %v3198_v8  ;;  %3219 = vpow2.f32 %v1523_v0  ;;  %v605_v0 = vld [vmem:[%s3601_s3 + $0xe30] sm:$0xff]  ;;  %v1569_v5 = vmul.f32 1.442695, %v604_v61 }
 0x1f7   : > { %v3202_v14 = vpop.eup %3201  ;;  %2107 = vst [vmem:[%s3627_s16 + $0xd20] sm:$0xff] %v3200_v11  ;;  %3221 = vpow2.f32 %v1525_v3  ;;  %v606_v3 = vld [vmem:[%s3601_s3 + $0xe38] sm:$0xff]  ;;  %v1571_v8 = vmul.f32 1.442695, %v605_v0 }
 0x1f8   : > { %v3204_v17 = vpop.eup %3203  ;;  %2108 = vst [vmem:[%s3627_s16 + $0xd28] sm:$0xff] %v3202_v14  ;;  %3223 = vpow2.f32 %v1527_v6  ;;  %v607_v6 = vld [vmem:[%s3601_s3 + $0xe40] sm:$0xff]  ;;  %v1573_v11 = vmul.f32 1.442695, %v606_v3 }
 0x1f9   : > { %v3206_v20 = vpop.eup %3205  ;;  %2109 = vst [vmem:[%s3627_s16 + $0xd30] sm:$0xff] %v3204_v17  ;;  %3225 = vpow2.f32 %v1529_v9  ;;  %v608_v9 = vld [vmem:[%s3601_s3 + $0xe48] sm:$0xff]  ;;  %v1575_v14 = vmul.f32 1.442695, %v607_v6 }
 0x1fa   : > { %v3208_v23 = vpop.eup %3207  ;;  %2110 = vst [vmem:[%s3627_s16 + $0xd38] sm:$0xff] %v3206_v20  ;;  %3227 = vpow2.f32 %v1531_v12  ;;  %v609_v12 = vld [vmem:[%s3601_s3 + $0xe50] sm:$0xff]  ;;  %v1577_v17 = vmul.f32 1.442695, %v608_v9 }
 0x1fb   : > { %v3210_v26 = vpop.eup %3209  ;;  %2111 = vst [vmem:[%s3627_s16 + $0xd40] sm:$0xff] %v3208_v23  ;;  %3229 = vpow2.f32 %v1533_v15  ;;  %v610_v15 = vld [vmem:[%s3601_s3 + $0xe58] sm:$0xff]  ;;  %v1579_v20 = vmul.f32 1.442695, %v609_v12 }
 0x1fc   : > { %v3212_v29 = vpop.eup %3211  ;;  %2112 = vst [vmem:[%s3627_s16 + $0xd48] sm:$0xff] %v3210_v26  ;;  %3231 = vpow2.f32 %v1535_v18  ;;  %v611_v18 = vld [vmem:[%s3601_s3 + $0xe60] sm:$0xff]  ;;  %v1581_v23 = vmul.f32 1.442695, %v610_v15 }
 0x1fd   : > { %v3214_v32 = vpop.eup %3213  ;;  %2113 = vst [vmem:[%s3627_s16 + $0xd50] sm:$0xff] %v3212_v29  ;;  %3233 = vpow2.f32 %v1537_v21  ;;  %v612_v21 = vld [vmem:[%s3601_s3 + $0xe68] sm:$0xff]  ;;  %v1583_v26 = vmul.f32 1.442695, %v611_v18 }
 0x1fe   : > { %v3216_v35 = vpop.eup %3215  ;;  %2114 = vst [vmem:[%s3627_s16 + $0xd58] sm:$0xff] %v3214_v32  ;;  %3235 = vpow2.f32 %v1539_v24  ;;  %v613_v24 = vld [vmem:[%s3601_s3 + $0xe70] sm:$0xff]  ;;  %v1585_v29 = vmul.f32 1.442695, %v612_v21 }
 0x1ff   : > { %v3218_v38 = vpop.eup %3217  ;;  %2115 = vst [vmem:[%s3627_s16 + $0xd60] sm:$0xff] %v3216_v35  ;;  %3237 = vpow2.f32 %v1541_v27  ;;  %v614_v27 = vld [vmem:[%s3601_s3 + $0xe78] sm:$0xff]  ;;  %v1587_v32 = vmul.f32 1.442695, %v613_v24 }
 0x200   : > { %v3220_v41 = vpop.eup %3219  ;;  %2116 = vst [vmem:[%s3627_s16 + $0xd68] sm:$0xff] %v3218_v38  ;;  %3239 = vpow2.f32 %v1543_v30  ;;  %v615_v30 = vld [vmem:[%s3601_s3 + $0xe80] sm:$0xff]  ;;  %v1589_v35 = vmul.f32 1.442695, %v614_v27 }
 0x201   : > { %v3222_v44 = vpop.eup %3221  ;;  %2117 = vst [vmem:[%s3627_s16 + $0xd70] sm:$0xff] %v3220_v41  ;;  %3241 = vpow2.f32 %v1545_v33  ;;  %v616_v33 = vld [vmem:[%s3601_s3 + $0xe88] sm:$0xff]  ;;  %v1591_v38 = vmul.f32 1.442695, %v615_v30 }
 0x202   : > { %v3224_v47 = vpop.eup %3223  ;;  %2118 = vst [vmem:[%s3627_s16 + $0xd78] sm:$0xff] %v3222_v44  ;;  %3243 = vpow2.f32 %v1547_v36  ;;  %v617_v36 = vld [vmem:[%s3601_s3 + $0xe90] sm:$0xff]  ;;  %v1593_v41 = vmul.f32 1.442695, %v616_v33 }
 0x203   : > { %v3226_v50 = vpop.eup %3225  ;;  %2119 = vst [vmem:[%s3627_s16 + $0xd80] sm:$0xff] %v3224_v47  ;;  %3245 = vpow2.f32 %v1549_v39  ;;  %v618_v39 = vld [vmem:[%s3601_s3 + $0xe98] sm:$0xff]  ;;  %v1595_v44 = vmul.f32 1.442695, %v617_v36 }
 0x204   : > { %v3228_v53 = vpop.eup %3227  ;;  %2120 = vst [vmem:[%s3627_s16 + $0xd88] sm:$0xff] %v3226_v50  ;;  %3247 = vpow2.f32 %v1551_v42  ;;  %v619_v42 = vld [vmem:[%s3601_s3 + $0xea0] sm:$0xff]  ;;  %v1597_v47 = vmul.f32 1.442695, %v618_v39 }
 0x205   : > { %v3230_v56 = vpop.eup %3229  ;;  %2121 = vst [vmem:[%s3627_s16 + $0xd90] sm:$0xff] %v3228_v53  ;;  %3249 = vpow2.f32 %v1553_v45  ;;  %v620_v45 = vld [vmem:[%s3601_s3 + $0xea8] sm:$0xff]  ;;  %v1599_v50 = vmul.f32 1.442695, %v619_v42 }
 0x206   : > { %v3232_v59 = vpop.eup %3231  ;;  %2122 = vst [vmem:[%s3627_s16 + $0xd98] sm:$0xff] %v3230_v56  ;;  %3251 = vpow2.f32 %v1555_v48  ;;  %v621_v48 = vld [vmem:[%s3601_s3 + $0xeb0] sm:$0xff]  ;;  %v1601_v53 = vmul.f32 1.442695, %v620_v45 }
 0x207   : > { %v3234_v62 = vpop.eup %3233  ;;  %2123 = vst [vmem:[%s3627_s16 + $0xda0] sm:$0xff] %v3232_v59  ;;  %3253 = vpow2.f32 %v1557_v51  ;;  %v622_v51 = vld [vmem:[%s3601_s3 + $0xeb8] sm:$0xff]  ;;  %v1603_v56 = vmul.f32 1.442695, %v621_v48 }
 0x208   : > { %v3236_v1 = vpop.eup %3235  ;;  %2124 = vst [vmem:[%s3627_s16 + $0xda8] sm:$0xff] %v3234_v62  ;;  %3255 = vpow2.f32 %v1559_v54  ;;  %v623_v54 = vld [vmem:[%s3601_s3 + $0xec0] sm:$0xff]  ;;  %v1605_v59 = vmul.f32 1.442695, %v622_v51 }
 0x209   : > { %v3238_v4 = vpop.eup %3237  ;;  %2125 = vst [vmem:[%s3627_s16 + $0xdb0] sm:$0xff] %v3236_v1  ;;  %3257 = vpow2.f32 %v1561_v57  ;;  %v624_v57 = vld [vmem:[%s3601_s3 + $0xec8] sm:$0xff]  ;;  %v1607_v62 = vmul.f32 1.442695, %v623_v54 }
 0x20a   : > { %v3240_v7 = vpop.eup %3239  ;;  %2126 = vst [vmem:[%s3627_s16 + $0xdb8] sm:$0xff] %v3238_v4  ;;  %3259 = vpow2.f32 %v1563_v60  ;;  %v625_v60 = vld [vmem:[%s3601_s3 + $0xed0] sm:$0xff]  ;;  %v1609_v1 = vmul.f32 1.442695, %v624_v57 }
 0x20b   : > { %v3242_v10 = vpop.eup %3241  ;;  %2127 = vst [vmem:[%s3627_s16 + $0xdc0] sm:$0xff] %v3240_v7  ;;  %3261 = vpow2.f32 %v1565_v63  ;;  %v626_v63 = vld [vmem:[%s3601_s3 + $0xed8] sm:$0xff]  ;;  %v1611_v4 = vmul.f32 1.442695, %v625_v60 }
 0x20c   : > { %v3244_v13 = vpop.eup %3243  ;;  %2128 = vst [vmem:[%s3627_s16 + $0xdc8] sm:$0xff] %v3242_v10  ;;  %3263 = vpow2.f32 %v1567_v2  ;;  %v627_v2 = vld [vmem:[%s3601_s3 + $0xee0] sm:$0xff]  ;;  %v1613_v7 = vmul.f32 1.442695, %v626_v63 }
 0x20d   : > { %v3246_v16 = vpop.eup %3245  ;;  %2129 = vst [vmem:[%s3627_s16 + $0xdd0] sm:$0xff] %v3244_v13  ;;  %3265 = vpow2.f32 %v1569_v5  ;;  %v628_v5 = vld [vmem:[%s3601_s3 + $0xee8] sm:$0xff]  ;;  %v1615_v10 = vmul.f32 1.442695, %v627_v2 }
 0x20e   : > { %v3248_v19 = vpop.eup %3247  ;;  %2130 = vst [vmem:[%s3627_s16 + $0xdd8] sm:$0xff] %v3246_v16  ;;  %3267 = vpow2.f32 %v1571_v8  ;;  %v629_v8 = vld [vmem:[%s3601_s3 + $0xef0] sm:$0xff]  ;;  %v1617_v13 = vmul.f32 1.442695, %v628_v5 }
 0x20f   : > { %v3250_v22 = vpop.eup %3249  ;;  %2131 = vst [vmem:[%s3627_s16 + $0xde0] sm:$0xff] %v3248_v19  ;;  %3269 = vpow2.f32 %v1573_v11  ;;  %v630_v11 = vld [vmem:[%s3601_s3 + $0xef8] sm:$0xff]  ;;  %v1619_v16 = vmul.f32 1.442695, %v629_v8 }
 0x210   : > { %v3252_v25 = vpop.eup %3251  ;;  %2132 = vst [vmem:[%s3627_s16 + $0xde8] sm:$0xff] %v3250_v22  ;;  %3271 = vpow2.f32 %v1575_v14  ;;  %v631_v14 = vld [vmem:[%s3601_s3 + $0xf00] sm:$0xff]  ;;  %v1621_v19 = vmul.f32 1.442695, %v630_v11 }
 0x211   : > { %v3254_v28 = vpop.eup %3253  ;;  %2133 = vst [vmem:[%s3627_s16 + $0xdf0] sm:$0xff] %v3252_v25  ;;  %3273 = vpow2.f32 %v1577_v17  ;;  %v632_v17 = vld [vmem:[%s3601_s3 + $0xf08] sm:$0xff]  ;;  %v1623_v22 = vmul.f32 1.442695, %v631_v14 }
 0x212   : > { %v3256_v31 = vpop.eup %3255  ;;  %2134 = vst [vmem:[%s3627_s16 + $0xdf8] sm:$0xff] %v3254_v28  ;;  %3275 = vpow2.f32 %v1579_v20  ;;  %v633_v20 = vld [vmem:[%s3601_s3 + $0xf10] sm:$0xff]  ;;  %v1625_v25 = vmul.f32 1.442695, %v632_v17 }
 0x213   : > { %v3258_v34 = vpop.eup %3257  ;;  %2135 = vst [vmem:[%s3627_s16 + $0xe00] sm:$0xff] %v3256_v31  ;;  %3277 = vpow2.f32 %v1581_v23  ;;  %v634_v23 = vld [vmem:[%s3601_s3 + $0xf18] sm:$0xff]  ;;  %v1627_v28 = vmul.f32 1.442695, %v633_v20 }
 0x214   : > { %v3260_v37 = vpop.eup %3259  ;;  %2136 = vst [vmem:[%s3627_s16 + $0xe08] sm:$0xff] %v3258_v34  ;;  %3279 = vpow2.f32 %v1583_v26  ;;  %v635_v26 = vld [vmem:[%s3601_s3 + $0xf20] sm:$0xff]  ;;  %v1629_v31 = vmul.f32 1.442695, %v634_v23 }
 0x215   : > { %v3262_v40 = vpop.eup %3261  ;;  %2137 = vst [vmem:[%s3627_s16 + $0xe10] sm:$0xff] %v3260_v37  ;;  %3281 = vpow2.f32 %v1585_v29  ;;  %v636_v29 = vld [vmem:[%s3601_s3 + $0xf28] sm:$0xff]  ;;  %v1631_v34 = vmul.f32 1.442695, %v635_v26 }
 0x216   : > { %v3264_v43 = vpop.eup %3263  ;;  %2138 = vst [vmem:[%s3627_s16 + $0xe18] sm:$0xff] %v3262_v40  ;;  %3283 = vpow2.f32 %v1587_v32  ;;  %v637_v32 = vld [vmem:[%s3601_s3 + $0xf30] sm:$0xff]  ;;  %v1633_v37 = vmul.f32 1.442695, %v636_v29 }
 0x217   : > { %v3266_v46 = vpop.eup %3265  ;;  %2139 = vst [vmem:[%s3627_s16 + $0xe20] sm:$0xff] %v3264_v43  ;;  %3285 = vpow2.f32 %v1589_v35  ;;  %v638_v35 = vld [vmem:[%s3601_s3 + $0xf38] sm:$0xff]  ;;  %v1635_v40 = vmul.f32 1.442695, %v637_v32 }
 0x218   : > { %v3268_v49 = vpop.eup %3267  ;;  %2140 = vst [vmem:[%s3627_s16 + $0xe28] sm:$0xff] %v3266_v46  ;;  %3287 = vpow2.f32 %v1591_v38  ;;  %v639_v38 = vld [vmem:[%s3601_s3 + $0xf40] sm:$0xff]  ;;  %v1637_v43 = vmul.f32 1.442695, %v638_v35 }
 0x219   : > { %v3270_v52 = vpop.eup %3269  ;;  %2141 = vst [vmem:[%s3627_s16 + $0xe30] sm:$0xff] %v3268_v49  ;;  %3289 = vpow2.f32 %v1593_v41  ;;  %v640_v41 = vld [vmem:[%s3601_s3 + $0xf48] sm:$0xff]  ;;  %v1639_v46 = vmul.f32 1.442695, %v639_v38 }
 0x21a   : > { %v3272_v55 = vpop.eup %3271  ;;  %2142 = vst [vmem:[%s3627_s16 + $0xe38] sm:$0xff] %v3270_v52  ;;  %3291 = vpow2.f32 %v1595_v44  ;;  %v641_v44 = vld [vmem:[%s3601_s3 + $0xf50] sm:$0xff]  ;;  %v1641_v49 = vmul.f32 1.442695, %v640_v41 }
 0x21b   : > { %v3274_v58 = vpop.eup %3273  ;;  %2143 = vst [vmem:[%s3627_s16 + $0xe40] sm:$0xff] %v3272_v55  ;;  %3293 = vpow2.f32 %v1597_v47  ;;  %v642_v47 = vld [vmem:[%s3601_s3 + $0xf58] sm:$0xff]  ;;  %v1643_v52 = vmul.f32 1.442695, %v641_v44 }
 0x21c   : > { %v3276_v61 = vpop.eup %3275  ;;  %2144 = vst [vmem:[%s3627_s16 + $0xe48] sm:$0xff] %v3274_v58  ;;  %3295 = vpow2.f32 %v1599_v50  ;;  %v643_v50 = vld [vmem:[%s3601_s3 + $0xf60] sm:$0xff]  ;;  %v1645_v55 = vmul.f32 1.442695, %v642_v47 }
 0x21d   : > { %v3278_v0 = vpop.eup %3277  ;;  %2145 = vst [vmem:[%s3627_s16 + $0xe50] sm:$0xff] %v3276_v61  ;;  %3297 = vpow2.f32 %v1601_v53  ;;  %v644_v53 = vld [vmem:[%s3601_s3 + $0xf68] sm:$0xff]  ;;  %v1647_v58 = vmul.f32 1.442695, %v643_v50 }
 0x21e   : > { %v3280_v3 = vpop.eup %3279  ;;  %2146 = vst [vmem:[%s3627_s16 + $0xe58] sm:$0xff] %v3278_v0  ;;  %3299 = vpow2.f32 %v1603_v56  ;;  %v645_v56 = vld [vmem:[%s3601_s3 + $0xf70] sm:$0xff]  ;;  %v1649_v61 = vmul.f32 1.442695, %v644_v53 }
 0x21f   : > { %v3282_v6 = vpop.eup %3281  ;;  %2147 = vst [vmem:[%s3627_s16 + $0xe60] sm:$0xff] %v3280_v3  ;;  %3301 = vpow2.f32 %v1605_v59  ;;  %v646_v59 = vld [vmem:[%s3601_s3 + $0xf78] sm:$0xff]  ;;  %v1651_v0 = vmul.f32 1.442695, %v645_v56 }
 0x220   : > { %v3284_v9 = vpop.eup %3283  ;;  %2148 = vst [vmem:[%s3627_s16 + $0xe68] sm:$0xff] %v3282_v6  ;;  %3303 = vpow2.f32 %v1607_v62  ;;  %v647_v62 = vld [vmem:[%s3601_s3 + $0xf80] sm:$0xff]  ;;  %v1653_v3 = vmul.f32 1.442695, %v646_v59 }
 0x221   : > { %v3286_v12 = vpop.eup %3285  ;;  %2149 = vst [vmem:[%s3627_s16 + $0xe70] sm:$0xff] %v3284_v9  ;;  %3305 = vpow2.f32 %v1609_v1  ;;  %v648_v1 = vld [vmem:[%s3601_s3 + $0xf88] sm:$0xff]  ;;  %v1655_v6 = vmul.f32 1.442695, %v647_v62 }
 0x222   : > { %v3288_v15 = vpop.eup %3287  ;;  %2150 = vst [vmem:[%s3627_s16 + $0xe78] sm:$0xff] %v3286_v12  ;;  %3307 = vpow2.f32 %v1611_v4  ;;  %v649_v4 = vld [vmem:[%s3601_s3 + $0xf90] sm:$0xff]  ;;  %v1657_v9 = vmul.f32 1.442695, %v648_v1 }
 0x223   : > { %v3290_v18 = vpop.eup %3289  ;;  %2151 = vst [vmem:[%s3627_s16 + $0xe80] sm:$0xff] %v3288_v15  ;;  %3309 = vpow2.f32 %v1613_v7  ;;  %v650_v7 = vld [vmem:[%s3601_s3 + $0xf98] sm:$0xff]  ;;  %v1659_v12 = vmul.f32 1.442695, %v649_v4 }
 0x224   : > { %v3292_v21 = vpop.eup %3291  ;;  %2152 = vst [vmem:[%s3627_s16 + $0xe88] sm:$0xff] %v3290_v18  ;;  %3311 = vpow2.f32 %v1615_v10  ;;  %v651_v10 = vld [vmem:[%s3601_s3 + $0xfa0] sm:$0xff]  ;;  %v1661_v15 = vmul.f32 1.442695, %v650_v7 }
 0x225   : > { %v3294_v24 = vpop.eup %3293  ;;  %2153 = vst [vmem:[%s3627_s16 + $0xe90] sm:$0xff] %v3292_v21  ;;  %3313 = vpow2.f32 %v1617_v13  ;;  %v652_v13 = vld [vmem:[%s3601_s3 + $0xfa8] sm:$0xff]  ;;  %v1663_v18 = vmul.f32 1.442695, %v651_v10 }
 0x226   : > { %v3296_v27 = vpop.eup %3295  ;;  %2154 = vst [vmem:[%s3627_s16 + $0xe98] sm:$0xff] %v3294_v24  ;;  %3315 = vpow2.f32 %v1619_v16  ;;  %v653_v16 = vld [vmem:[%s3601_s3 + $0xfb0] sm:$0xff]  ;;  %v1665_v21 = vmul.f32 1.442695, %v652_v13 }
 0x227   : > { %v3298_v30 = vpop.eup %3297  ;;  %2155 = vst [vmem:[%s3627_s16 + $0xea0] sm:$0xff] %v3296_v27  ;;  %3317 = vpow2.f32 %v1621_v19  ;;  %v654_v19 = vld [vmem:[%s3601_s3 + $0xfb8] sm:$0xff]  ;;  %v1667_v24 = vmul.f32 1.442695, %v653_v16 }
 0x228   : > { %v3300_v33 = vpop.eup %3299  ;;  %2156 = vst [vmem:[%s3627_s16 + $0xea8] sm:$0xff] %v3298_v30  ;;  %3319 = vpow2.f32 %v1623_v22  ;;  %v655_v22 = vld [vmem:[%s3601_s3 + $0xfc0] sm:$0xff]  ;;  %v1669_v27 = vmul.f32 1.442695, %v654_v19 }
 0x229   : > { %v3302_v36 = vpop.eup %3301  ;;  %2157 = vst [vmem:[%s3627_s16 + $0xeb0] sm:$0xff] %v3300_v33  ;;  %3321 = vpow2.f32 %v1625_v25  ;;  %v656_v25 = vld [vmem:[%s3601_s3 + $0xfc8] sm:$0xff]  ;;  %v1671_v30 = vmul.f32 1.442695, %v655_v22 }
 0x22a   : > { %v3304_v39 = vpop.eup %3303  ;;  %2158 = vst [vmem:[%s3627_s16 + $0xeb8] sm:$0xff] %v3302_v36  ;;  %3323 = vpow2.f32 %v1627_v28  ;;  %v657_v28 = vld [vmem:[%s3601_s3 + $0xfd0] sm:$0xff]  ;;  %v1673_v33 = vmul.f32 1.442695, %v656_v25 }
 0x22b   : > { %v3306_v42 = vpop.eup %3305  ;;  %2159 = vst [vmem:[%s3627_s16 + $0xec0] sm:$0xff] %v3304_v39  ;;  %3325 = vpow2.f32 %v1629_v31  ;;  %v658_v31 = vld [vmem:[%s3601_s3 + $0xfd8] sm:$0xff]  ;;  %v1675_v36 = vmul.f32 1.442695, %v657_v28 }
 0x22c   : > { %v3308_v45 = vpop.eup %3307  ;;  %2160 = vst [vmem:[%s3627_s16 + $0xec8] sm:$0xff] %v3306_v42  ;;  %3327 = vpow2.f32 %v1631_v34  ;;  %v659_v34 = vld [vmem:[%s3601_s3 + $0xfe0] sm:$0xff]  ;;  %v1677_v39 = vmul.f32 1.442695, %v658_v31 }
 0x22d   : > { %v3310_v48 = vpop.eup %3309  ;;  %2161 = vst [vmem:[%s3627_s16 + $0xed0] sm:$0xff] %v3308_v45  ;;  %3329 = vpow2.f32 %v1633_v37  ;;  %v660_v37 = vld [vmem:[%s3601_s3 + $0xfe8] sm:$0xff]  ;;  %v1679_v42 = vmul.f32 1.442695, %v659_v34 }
 0x22e   : > { %v3312_v51 = vpop.eup %3311  ;;  %2162 = vst [vmem:[%s3627_s16 + $0xed8] sm:$0xff] %v3310_v48  ;;  %3331 = vpow2.f32 %v1635_v40  ;;  %v661_v40 = vld [vmem:[%s3601_s3 + $0xff0] sm:$0xff]  ;;  %v1681_v45 = vmul.f32 1.442695, %v660_v37 }
 0x22f   : > { %v3314_v54 = vpop.eup %3313  ;;  %2163 = vst [vmem:[%s3627_s16 + $0xee0] sm:$0xff] %v3312_v51  ;;  %3333 = vpow2.f32 %v1637_v43  ;;  %v662_v43 = vld [vmem:[%s3601_s3 + $0xff8] sm:$0xff]  ;;  %v1683_v47 = vmul.f32 1.442695, %v661_v40 }
 0x230   : > { %v3316_v57 = vpop.eup %3315  ;;  %2164 = vst [vmem:[%s3627_s16 + $0xee8] sm:$0xff] %v3314_v54  ;;  %3335 = vpow2.f32 %v1639_v46 }
 0x231   : > { %v3318_v60 = vpop.eup %3317  ;;  %2165 = vst [vmem:[%s3627_s16 + $0xef0] sm:$0xff] %v3316_v57  ;;  %3337 = vpow2.f32 %v1641_v49  ;;  %v1685_v49 = vmul.f32 1.442695, %v662_v43 }
 0x232   : > { %v3320_v63 = vpop.eup %3319  ;;  %2166 = vst [vmem:[%s3627_s16 + $0xef8] sm:$0xff] %v3318_v60  ;;  %3339 = vpow2.f32 %v1643_v52 }
 0x233   : > { %v3322_v2 = vpop.eup %3321  ;;  %2167 = vst [vmem:[%s3627_s16 + $0xf00] sm:$0xff] %v3320_v63  ;;  %3341 = vpow2.f32 %v1645_v55 }
 0x234   : > { %v3324_v5 = vpop.eup %3323  ;;  %2168 = vst [vmem:[%s3627_s16 + $0xf08] sm:$0xff] %v3322_v2  ;;  %3343 = vpow2.f32 %v1647_v58 }
 0x235   : > { %v3326_v8 = vpop.eup %3325  ;;  %2169 = vst [vmem:[%s3627_s16 + $0xf10] sm:$0xff] %v3324_v5  ;;  %3345 = vpow2.f32 %v1649_v61 }
 0x236   : > { %v3328_v11 = vpop.eup %3327  ;;  %2170 = vst [vmem:[%s3627_s16 + $0xf18] sm:$0xff] %v3326_v8  ;;  %3347 = vpow2.f32 %v1651_v0 }
 0x237   : > { %v3330_v14 = vpop.eup %3329  ;;  %2171 = vst [vmem:[%s3627_s16 + $0xf20] sm:$0xff] %v3328_v11  ;;  %3349 = vpow2.f32 %v1653_v3 }
 0x238   : > { %v3332_v17 = vpop.eup %3331  ;;  %2172 = vst [vmem:[%s3627_s16 + $0xf28] sm:$0xff] %v3330_v14  ;;  %3351 = vpow2.f32 %v1655_v6 }
 0x239   : > { %v3334_v20 = vpop.eup %3333  ;;  %2173 = vst [vmem:[%s3627_s16 + $0xf30] sm:$0xff] %v3332_v17  ;;  %3353 = vpow2.f32 %v1657_v9 }
 0x23a   : > { %v3336_v23 = vpop.eup %3335  ;;  %2174 = vst [vmem:[%s3627_s16 + $0xf38] sm:$0xff] %v3334_v20  ;;  %3355 = vpow2.f32 %v1659_v12 }
 0x23b   : > { %v3338_v26 = vpop.eup %3337  ;;  %2175 = vst [vmem:[%s3627_s16 + $0xf40] sm:$0xff] %v3336_v23  ;;  %3357 = vpow2.f32 %v1661_v15 }
 0x23c   : > { %v3340_v29 = vpop.eup %3339  ;;  %2176 = vst [vmem:[%s3627_s16 + $0xf48] sm:$0xff] %v3338_v26  ;;  %3359 = vpow2.f32 %v1663_v18 }
 0x23d   : > { %v3342_v32 = vpop.eup %3341  ;;  %2177 = vst [vmem:[%s3627_s16 + $0xf50] sm:$0xff] %v3340_v29  ;;  %3361 = vpow2.f32 %v1665_v21 }
 0x23e   : > { %v3344_v35 = vpop.eup %3343  ;;  %2178 = vst [vmem:[%s3627_s16 + $0xf58] sm:$0xff] %v3342_v32  ;;  %3363 = vpow2.f32 %v1667_v24 }
 0x23f   : > { %v3346_v38 = vpop.eup %3345  ;;  %2179 = vst [vmem:[%s3627_s16 + $0xf60] sm:$0xff] %v3344_v35  ;;  %3365 = vpow2.f32 %v1669_v27 }
 0x240   : > { %v3348_v41 = vpop.eup %3347  ;;  %2180 = vst [vmem:[%s3627_s16 + $0xf68] sm:$0xff] %v3346_v38  ;;  %3367 = vpow2.f32 %v1671_v30 }
 0x241   : > { %v3350_v44 = vpop.eup %3349  ;;  %2181 = vst [vmem:[%s3627_s16 + $0xf70] sm:$0xff] %v3348_v41  ;;  %3369 = vpow2.f32 %v1673_v33 }
 0x242   : > { %v3352_v46 = vpop.eup %3351  ;;  %2182 = vst [vmem:[%s3627_s16 + $0xf78] sm:$0xff] %v3350_v44  ;;  %3371 = vpow2.f32 %v1675_v36 }
 0x243   : > { %v3354_v48 = vpop.eup %3353  ;;  %2183 = vst [vmem:[%s3627_s16 + $0xf80] sm:$0xff] %v3352_v46  ;;  %3373 = vpow2.f32 %v1677_v39 }
 0x244   : > { %v3356_v50 = vpop.eup %3355  ;;  %2184 = vst [vmem:[%s3627_s16 + $0xf88] sm:$0xff] %v3354_v48  ;;  %3375 = vpow2.f32 %v1679_v42 }
 0x245   : > { %v3358_v51 = vpop.eup %3357  ;;  %2185 = vst [vmem:[%s3627_s16 + $0xf90] sm:$0xff] %v3356_v50  ;;  %3377 = vpow2.f32 %v1681_v45 }
 0x246   : > { %v3360_v52 = vpop.eup %3359  ;;  %2186 = vst [vmem:[%s3627_s16 + $0xf98] sm:$0xff] %v3358_v51  ;;  %3379 = vpow2.f32 %v1683_v47 }
 0x247   : > { %v3362_v53 = vpop.eup %3361  ;;  %2187 = vst [vmem:[%s3627_s16 + $0xfa0] sm:$0xff] %v3360_v52  ;;  %3381 = vpow2.f32 %v1685_v49 }
 0x248   : > { %v3364_v54 = vpop.eup %3363  ;;  %2188 = vst [vmem:[%s3627_s16 + $0xfa8] sm:$0xff] %v3362_v53 }
 0x249   : > { %v3366_v55 = vpop.eup %3365  ;;  %2189 = vst [vmem:[%s3627_s16 + $0xfb0] sm:$0xff] %v3364_v54 }
 0x24a   : > { %v3368_v56 = vpop.eup %3367  ;;  %2190 = vst [vmem:[%s3627_s16 + $0xfb8] sm:$0xff] %v3366_v55 }
 0x24b   : > { %v3370_v57 = vpop.eup %3369  ;;  %2191 = vst [vmem:[%s3627_s16 + $0xfc0] sm:$0xff] %v3368_v56 }
 0x24c   : > { %v3372_v58 = vpop.eup %3371  ;;  %2192 = vst [vmem:[%s3627_s16 + $0xfc8] sm:$0xff] %v3370_v57  ;;  %2206 = sbr.rel (!%p3539_p9) target bundleno = 623 (0x26f), region = 32 }
 0x24d   : > { %v3374_v59 = vpop.eup %3373  ;;  %2193 = vst [vmem:[%s3627_s16 + $0xfd0] sm:$0xff] %v3372_v58 }
 0x24e   : > { %v3376_v60 = vpop.eup %3375  ;;  %2194 = vst [vmem:[%s3627_s16 + $0xfd8] sm:$0xff] %v3374_v59 }
 0x24f   : > { %v3378_v61 = vpop.eup %3377  ;;  %2195 = vst [vmem:[%s3627_s16 + $0xfe0] sm:$0xff] %v3376_v60 }
 0x250   : > { %v3380_v62 = vpop.eup %3379  ;;  %2196 = vst [vmem:[%s3627_s16 + $0xfe8] sm:$0xff] %v3378_v61 }
 0x251   : > { %v3382_v63 = vpop.eup %3381  ;;  %2197 = vst [vmem:[%s3627_s16 + $0xff0] sm:$0xff] %v3380_v62 }
 0x252   : > { %2198 = vst [vmem:[%s3627_s16 + $0xff8] sm:$0xff] %v3382_v63 }
 0x253   : > { %s4713_s30 = smov (!%p2209_p6, %s2208_s30), 512 }
 0x254   : > { %s4639_s2 = sshll.u32 %s4713_s30, 7 }
 0x255   : > { %s2213_s4 = ssub.s32 65536, %s4639_s2 }
 0x256   : > { %2214 = vsyncadd %s2200_s23, %s2213_s4  ;;  %p2308_p10 = scmp.ne.s32.totalorder %s4639_s2, 0  ;;  %s2315_s17 = sshll.u32 %s3516_s10, 16 }
 0x257   : > { %s4649_s13 = scalar_lea.hbm %s4699_s1, %s2315_s17  ;;  %s2219_s14 = sshll.u32 %s3627_s16, 4  ;;  %s4652_s14 = int_to_ptr.vmem [resolvable:$true] %s2219_s14 }
 0x258   : > { %s3411_s19 = scalar_lea.vmem %s4652_s14, %s4639_s2  ;;  %s3482_s20 = smov [#allocation5]  }
 0x259   : > { %p3412_p9 = scmp.ne.s32.totalorder %s4652_s14, %s3411_s19  ;;  %s3415_s21 = sshll.u32 %s3482_s20, 4  ;;  %s3416_s21 = int_to_ptr.vmem [resolvable:$false] %s3415_s21 }
 0x25a   : > { %s3417_s10 = scalar_lea.vmem %s3416_s21, 131072  ;;  %p3418_p12 = scmp.lt.s32.totalorder %s4652_s14, %s3416_s21 }
 0x25b   : > { %p3413_p11 = pnand %p3412_p9, %p2308_p10  ;;  %p3419_p0 = scmp.lt.s32.totalorder %s3417_s10, %s3411_s19 }
 0x25d   : > { %p3414_p13 = pneg %p3413_p11  ;;  %p3420_p1 = por %p3419_p0, %p3418_p12 }
 0x25f   : > { %p3421_p3 = pnand %p3420_p1, %p3414_p13 }
 0x261   : > { %3424 = shalt.err (!%p3421_p3)
}
 0x262   : > { %s3425_s22 = scalar_lea.hbm %s4649_s13, %s4639_s2  ;;  %s3429_s28 = scalar_lea.hbm %s4699_s1, 102400 }
 0x263   : > { %p3426_p4 = scmp.ne.s32.totalorder %s4649_s13, %s3425_s22  ;;  %p3430_p7 = scmp.lt.u32.totalorder %s4649_s13, %s4699_s1 }
 0x264   : > { %p3431_p8 = scmp.lt.u32.totalorder %s3429_s28, %s3425_s22  ;;  %p3433_p9 = scmp.lt.u32.totalorder %s3425_s22, %s4649_s13 }
 0x265   : > { %p3427_p5 = pnand %p3426_p4, %p2308_p10 }
 0x266   : > { %p3432_p6 = por %p3431_p8, %p3430_p7 }
 0x267   : > { %p3428_p2 = pneg %p3427_p5 }
 0x268   : > { %p3434_p11 = por %p3433_p9, %p3432_p6 }
 0x26a   : > { %p3435_p13 = pnand %p3434_p11, %p3428_p2 }
 0x26c   : > { %3438 = shalt.err (!%p3435_p13)
}
 0x26d   : > { %s3483_s16 = smov 128   ;;  %s3484_s25 = smov 8  }
 0x26e   : > { %2225 = dma.vmem_to_hbm [thread:$0]  (%p2308_p10), %s4652_s14, %s4639_s2, %s4649_s13, %s2200_s23, %s3483_s16, %s3483_s16, %s3484_s25  }
 0x26f PF: > { %s2234_s30 = sand.u32 1, %s3465_s6   ;;  %p4704_p12 = scmp.ne.s32.totalorder %s4703_s18, 0 }
 0x270   : > { %p4705_p0 = scmp.ge.s32.totalorder %s3477_s9, 2  ;;  %s2235_s4 = scalar_lea.sflag [#allocation4], %s2234_s30 }
 0x272   : > { %p2319_p1 = pnand %p4705_p0, %p4704_p12 }
 0x274   : > { %3460 = dma.done.wait (!%p2319_p1), %s2235_s4, 65536  }
 0x275   : > { %3462 = vsyncadd (!%p2319_p1), %s2235_s4, 4294901760  ;;  %p14_p3 = scmp.ge.s32.totalorder %s3520_s12, 4   ;;  %s4706_s6 = smov %s3469_s7 }
 0x276   : > { %s4707_s7 = smov %s3473_s8  ;;  %s4708_s8 = smov %s3532_s15 }
 0x277   : > { %s4709_s9 = smov %s3520_s12  ;;  %16 = sbr.rel (!%p14_p3) target bundleno = 5 (0x5), region = 69 }
 0x27e   :  { %2240 = vsyncpa [#allocation3], 1 }
 0x27f   :  { %2242 = vsyncpa [#allocation3 + $0x1], 1 }
 0x280   :  { %2243 = vsyncpa [#allocation4], 1 }
 0x281   :  { %2245 = vsyncpa [#allocation4 + $0x1], 1 }

</bundles_post_ra>
